<compile_context>
chip_gen: v5e
topology: v5e:2x2
jax: 0.10.0
libtpu: 0.0.40
codegen_flags: <defaults>
</compile_context>

<pallas_src>
import functools

import jax
import jax.numpy as jnp
import numpy as np
from jax.experimental import pallas as pl
from jax.experimental.pallas import tpu as pltpu

BN_EPS = 1e-5
# bf16 operands on the MXU (f32 accumulation).  Set to jnp.float32 to recover
# exact fp32 matmuls (the reference mirrors this dtype, so the check stays valid).
MXU_DTYPE = jnp.bfloat16


def _round_up(x, m):
    return (x + m - 1) // m * m


# ----------------------------------------------------------------------------
# Packed-parameter layouts (pure Python ints -> static in-kernel slices)
# ----------------------------------------------------------------------------
def weight_layout(dims):
    """Weight slab: each FC weight occupies rows [r, r+fan_in), cols [0, fan_out).
    Row offsets are multiples of 8 (f32 sublane tile)."""
    xc = dims["input"] + dims["cond"]
    zc = dims["latent"] + dims["cond"]
    order = [
        ("w1",  xc,          dims["h1"]),
        ("w2",  dims["h1"],  dims["h2"]),
        ("wml", dims["h2"],  2 * dims["latent"]),   # [fc21 | fc22]
        ("w3",  zc,          dims["d1"]),
        ("w4",  dims["d1"],  dims["d2"]),
        ("w5",  dims["d2"],  dims["out"]),
    ]
    lay, row = {}, 0
    for name, fan_in, fan_out in order:
        lay[name] = (row, fan_in, fan_out)
        row += _round_up(fan_in, 8)
    cols = max(fo for _, _, fo in order)
    return lay, row, cols


def vector_layout(dims):
    """Vector slab: one row per bias / gamma / beta."""
    order = [
        ("b1", dims["h1"]), ("g1", dims["h1"]), ("be1", dims["h1"]),
        ("b2", dims["h2"]), ("g2", dims["h2"]), ("be2", dims["h2"]),
        ("bml", 2 * dims["latent"]),                 # [b21 | b22]
        ("b3", dims["d1"]), ("g3", dims["d1"]), ("be3", dims["d1"]),
        ("b4", dims["d2"]), ("g4", dims["d2"]), ("be4", dims["d2"]),
        ("b5", dims["out"]),
    ]
    lay = {name: (i, width) for i, (name, width) in enumerate(order)}
    return lay, len(order), max(w for _, w in order)


def pack_params(p, dims):
    """Pack the per-layer parameters into two lane-friendly slabs (2 DMAs total)."""
    wlay, wrows, wcols = weight_layout(dims)
    vlay, vrows, vcols = vector_layout(dims)

    weights = {
        "w1": p["w1"], "w2": p["w2"],
        "wml": jnp.concatenate([p["w21"], p["w22"]], axis=1),
        "w3": p["w3"], "w4": p["w4"], "w5": p["w5"],
    }
    wslab = jnp.zeros((wrows, wcols), jnp.float32)
    for name, w in weights.items():
        r, fi, fo = wlay[name]
        wslab = wslab.at[r:r + fi, :fo].set(w)

    vectors = {
        "b1": p["b1"], "g1": p["g1"], "be1": p["be1"],
        "b2": p["b2"], "g2": p["g2"], "be2": p["be2"],
        "bml": jnp.concatenate([p["b21"], p["b22"]], axis=0),
        "b3": p["b3"], "g3": p["g3"], "be3": p["be3"],
        "b4": p["b4"], "g4": p["g4"], "be4": p["be4"],
        "b5": p["b5"],
    }
    vslab = jnp.zeros((vrows, vcols), jnp.float32)
    for name, v in vectors.items():
        row, width = vlay[name]
        vslab = vslab.at[row, :width].set(v.reshape(-1))

    return wslab, vslab


# ----------------------------------------------------------------------------
# Kernel
# ----------------------------------------------------------------------------
def cvae_kernel(xc_ref, eps_ref, w_ref, v_ref, out_ref, zc_ref, *,
                dims, wlay, vlay, mxu_dtype):
    f32 = jnp.float32
    IN, COND, LAT, OUT = dims["input"], dims["cond"], dims["latent"], dims["out"]

    def weight(name):
        r, fan_in, fan_out = wlay[name]
        # static, 8-row-aligned sub-block load; cast once for the MXU
        return w_ref[r:r + fan_in, 0:fan_out].astype(mxu_dtype)

    def vec(name):
        row, width = vlay[name]
        return v_ref[row:row + 1, 0:width]          # (1, width) f32, broadcasts over batch

    def dot(a, w):
        # bf16 MXU operands, f32 accumulation
        return jnp.dot(a.astype(mxu_dtype), w, preferred_element_type=f32)

    def bn_relu(h, gamma, beta):
        # BatchNorm1d (training mode: batch mean, biased batch variance) + ReLU, all f32.
        mean = jnp.mean(h, axis=0, keepdims=True)
        d = h - mean                                 # computed once, reused
        var = jnp.mean(d * d, axis=0, keepdims=True)
        hn = d * jax.lax.rsqrt(var + BN_EPS)         # rsqrt -> EUP slot
        return jnp.maximum(hn * gamma + beta, 0.0)

    xc = xc_ref[...]                                 # (B, IN+COND), f32

    # ---------------- encoder ----------------
    h1 = bn_relu(dot(xc, weight("w1")) + vec("b1"), vec("g1"), vec("be1"))
    h2 = bn_relu(dot(h1, weight("w2")) + vec("b2"), vec("g2"), vec("be2"))

    # fused latent heads: columns [0:LAT] -> mu, [LAT:2*LAT] -> logvar
    ml = dot(h2, weight("wml")) + vec("bml")         # (B, 2*LAT), f32
    mu = ml[:, :LAT]
    logvar = ml[:, LAT:]

    # ---------------- reparameterize ----------------
    z = mu + eps_ref[...] * jnp.exp(0.5 * logvar)

    # ---------------- decoder ----------------
    # build [z, c] in a small VMEM scratch so fc3 is a single MXU matmul
    zc_ref[:, 0:LAT] = z
    zc_ref[:, LAT:LAT + COND] = xc[:, IN:IN + COND]
    h3 = bn_relu(dot(zc_ref[...], weight("w3")) + vec("b3"), vec("g3"), vec("be3"))
    h4 = bn_relu(dot(h3, weight("w4")) + vec("b4"), vec("g4"), vec("be4"))
    y = dot(h4, weight("w5")) + vec("b5")

    # single lane-packed output: [ y | mu | logvar ]
    out_ref[:, 0:OUT] = y
    out_ref[:, OUT:OUT + 2 * LAT] = ml


# ----------------------------------------------------------------------------
# Wrapper
# ----------------------------------------------------------------------------
def cvae_forward(x, c, eps, wslab, vslab, *, dims):
    B = x.shape[0]
    IN, COND = dims["input"], dims["cond"]
    LAT, OUT = dims["latent"], dims["out"]
    wlay, _, _ = weight_layout(dims)
    vlay, _, _ = vector_layout(dims)

    # concatenate [x, c] outside the kernel so fc1 is a single dot inside
    xc = jnp.concatenate([x, c], axis=1)

    kernel = functools.partial(
        cvae_kernel, dims=dims, wlay=wlay, vlay=vlay, mxu_dtype=MXU_DTYPE)

    vmem = pl.BlockSpec(memory_space=pltpu.MemorySpace.VMEM)
    out_width = OUT + 2 * LAT

    # VMEM budget: ~32 live (B, <=128-lane) f32 buffers, capped at v7x's 64 MiB.
    # (Full batch must stay in one block because BatchNorm uses batch statistics;
    #  scaling far beyond this would need a two-pass BN, not a batch grid.)
    vmem_bytes = int(min(64 << 20, max(16 << 20, 32 * 4 * 128 * B)))

    out = pl.pallas_call(
        kernel,
        out_shape=jax.ShapeDtypeStruct((B, out_width), jnp.float32),
        in_specs=[vmem, vmem, vmem, vmem],
        out_specs=vmem,
        scratch_shapes=[pltpu.VMEM((B, LAT + COND), jnp.float32)],
        compiler_params=pltpu.CompilerParams(vmem_limit_bytes=vmem_bytes),
    )(xc, eps, wslab, vslab)

    y = out[:, :OUT]
    mu = out[:, OUT:OUT + LAT]
    logvar = out[:, OUT + LAT:OUT + 2 * LAT]
    return y, mu, logvar


# ----------------------------------------------------------------------------
# Synthetic init + pure-JAX reference
# ----------------------------------------------------------------------------
def init_params(key, dims):
    def lin(k, fan_in, fan_out):
        kw, kb = jax.random.split(k)
        w = 0.05 * jax.random.normal(kw, (fan_in, fan_out), jnp.float32)
        b = 0.05 * jax.random.normal(kb, (fan_out,), jnp.float32)
        return w, b

    keys = jax.random.split(key, 7)
    IN, COND, LAT, OUT = dims["input"], dims["cond"], dims["latent"], dims["out"]
    H1, H2, D1, D2 = dims["h1"], dims["h2"], dims["d1"], dims["d2"]

    w1, b1 = lin(keys[0], IN + COND, H1)
    w2, b2 = lin(keys[1], H1, H2)
    w21, b21 = lin(keys[2], H2, LAT)
    w22, b22 = lin(keys[3], H2, LAT)
    w3, b3 = lin(keys[4], LAT + COND, D1)
    w4, b4 = lin(keys[5], D1, D2)
    w5, b5 = lin(keys[6], D2, OUT)

    ones = lambda n: jnp.ones((n,), jnp.float32)
    zeros = lambda n: jnp.zeros((n,), jnp.float32)
    return dict(
        w1=w1, b1=b1, g1=ones(H1), be1=zeros(H1),
        w2=w2, b2=b2, g2=ones(H2), be2=zeros(H2),
        w21=w21, b21=b21, w22=w22, b22=b22,
        w3=w3, b3=b3, g3=ones(D1), be3=zeros(D1),
        w4=w4, b4=b4, g4=ones(D2), be4=zeros(D2),
        w5=w5, b5=b5,
    )


def cvae_reference(x, c, eps, p):
    """Pure-JAX reference (same bf16-operand / f32-accumulate matmul convention)."""
    def dot(a, w):
        return jnp.dot(a.astype(MXU_DTYPE), w.astype(MXU_DTYPE),
                       preferred_element_type=jnp.float32)

    def bn_relu(h, g, b):
        m = jnp.mean(h, axis=0, keepdims=True)
        v = jnp.mean((h - m) ** 2, axis=0, keepdims=True)
        return jnp.maximum((h - m) / jnp.sqrt(v + BN_EPS) * g + b, 0.0)

    xc = jnp.concatenate([x, c], axis=1)
    h1 = bn_relu(dot(xc, p["w1"]) + p["b1"], p["g1"], p["be1"])
    h2 = bn_relu(dot(h1, p["w2"]) + p["b2"], p["g2"], p["be2"])
    mu = dot(h2, p["w21"]) + p["b21"]
    logvar = dot(h2, p["w22"]) + p["b22"]
    z = mu + eps * jnp.exp(0.5 * logvar)
    zc = jnp.concatenate([z, c], axis=1)
    h3 = bn_relu(dot(zc, p["w3"]) + p["b3"], p["g3"], p["be3"])
    h4 = bn_relu(dot(h3, p["w4"]) + p["b4"], p["g4"], p["be4"])
    y = dot(h4, p["w5"]) + p["b5"]
    return y, mu, logvar


if __name__ == "__main__":
    DIMS = dict(input=4, cond=4, latent=2, out=6, h1=32, h2=32, d1=32, d2=32)
    # >=256 events per call so the MXU sees many sublane tiles per matmul and the
    # ~0.35 us pallas_call overhead is amortized (BN keeps the batch in ONE block).
    B = 256

    key = jax.random.PRNGKey(0)
    kx, kc, keps, kp = jax.random.split(key, 4)

    x = jax.random.normal(kx, (B, DIMS["input"]), jnp.float32)           # scaled momenta
    c = jnp.abs(x) + 0.1 * jax.random.normal(kc, (B, DIMS["cond"]), jnp.float32)
    eps = jax.random.normal(keps, (B, DIMS["latent"]), jnp.float32)      # reparam noise

    params = init_params(kp, DIMS)
    wslab, vslab = pack_params(params, DIMS)

    @jax.jit
    def fwd(x, c, eps, wslab, vslab):
        return cvae_forward(x, c, eps, wslab, vslab, dims=DIMS)

    y, mu, logvar = fwd(x, c, eps, wslab, vslab)
    jax.block_until_ready((y, mu, logvar))

    y_ref, mu_ref, lv_ref = cvae_reference(x, c, eps, params)
    np.testing.assert_allclose(np.asarray(y), np.asarray(y_ref), rtol=2e-3, atol=2e-3)
    np.testing.assert_allclose(np.asarray(mu), np.asarray(mu_ref), rtol=2e-3, atol=2e-3)
    np.testing.assert_allclose(np.asarray(logvar), np.asarray(lv_ref), rtol=2e-3, atol=2e-3)

    print("KERNEL_OK")
</pallas_src>

<mosaic_0001>
module attributes {stable_mosaic.version = 11 : i64} {
  func.func @cvae_kernel(%arg0: memref<256x8xf32, #tpu.memory_space<vmem>>, %arg1: memref<256x2xf32, #tpu.memory_space<vmem>>, %arg2: memref<144x32xf32, #tpu.memory_space<vmem>>, %arg3: memref<14x32xf32, #tpu.memory_space<vmem>>, %arg4: memref<256x10xf32, #tpu.memory_space<vmem>>, %arg5: memref<256x6xf32, #tpu.memory_space<vmem>>) attributes {dimension_semantics = [], scalar_prefetch = 0 : i64, scratch_operands = 1 : i64, tpu.core_type = #tpu.core_type<tc>} {
    %c0 = arith.constant 0 : index
    %c0_0 = arith.constant 0 : index
    %0 = vector.load %arg0[%c0, %c0_0] : memref<256x8xf32, #tpu.memory_space<vmem>>, vector<256x8xf32>
    %c0_1 = arith.constant 0 : index
    %c0_2 = arith.constant 0 : index
    %1 = vector.load %arg2[%c0_1, %c0_2] : memref<144x32xf32, #tpu.memory_space<vmem>>, vector<8x32xf32>
    %2 = arith.truncf %1 : vector<8x32xf32> to vector<8x32xbf16>
    %3 = arith.truncf %0 : vector<256x8xf32> to vector<256x8xbf16>
    %cst = arith.constant dense<0.000000e+00> : vector<256x32xf32>
    %4 = tpu.matmul %3, %2, %cst {dimension_numbers = #tpu.dot_dimension_numbers<[1], [0], [0], [1], [0, 0, 1, 1], [], []>} : vector<256x8xbf16>, vector<8x32xbf16>, vector<256x32xf32> -> vector<256x32xf32>
    %c0_3 = arith.constant 0 : index
    %c0_4 = arith.constant 0 : index
    %5 = vector.load %arg3[%c0_3, %c0_4] : memref<14x32xf32, #tpu.memory_space<vmem>>, vector<1x32xf32>
    %6 = vector.broadcast %5 : vector<1x32xf32> to vector<256x32xf32>
    %7 = arith.addf %4, %6 : vector<256x32xf32>
    %c1 = arith.constant 1 : index
    %c0_5 = arith.constant 0 : index
    %8 = vector.load %arg3[%c1, %c0_5] : memref<14x32xf32, #tpu.memory_space<vmem>>, vector<1x32xf32>
    %c2 = arith.constant 2 : index
    %c0_6 = arith.constant 0 : index
    %9 = vector.load %arg3[%c2, %c0_6] : memref<14x32xf32, #tpu.memory_space<vmem>>, vector<1x32xf32>
    %cst_7 = arith.constant dense<0.000000e+00> : vector<32xf32>
    %10 = vector.multi_reduction <add>, %7, %cst_7 [0] : vector<256x32xf32> to vector<32xf32>
    %11 = vector.shape_cast %10 : vector<32xf32> to vector<1x32xf32>
    %cst_8 = arith.constant 2.560000e+02 : f32
    %12 = vector.broadcast %cst_8 : f32 to vector<1x32xf32>
    %13 = arith.divf %11, %12 : vector<1x32xf32>
    %14 = vector.broadcast %13 : vector<1x32xf32> to vector<256x32xf32>
    %15 = arith.subf %7, %14 : vector<256x32xf32>
    %16 = arith.mulf %15, %15 : vector<256x32xf32>
    %cst_9 = arith.constant dense<0.000000e+00> : vector<32xf32>
    %17 = vector.multi_reduction <add>, %16, %cst_9 [0] : vector<256x32xf32> to vector<32xf32>
    %18 = vector.shape_cast %17 : vector<32xf32> to vector<1x32xf32>
    %cst_10 = arith.constant 2.560000e+02 : f32
    %19 = vector.broadcast %cst_10 : f32 to vector<1x32xf32>
    %20 = arith.divf %18, %19 : vector<1x32xf32>
    %cst_11 = arith.constant 9.99999974E-6 : f32
    %21 = vector.broadcast %cst_11 : f32 to vector<1x32xf32>
    %22 = arith.addf %20, %21 : vector<1x32xf32>
    %23 = math.rsqrt %22 : vector<1x32xf32>
    %24 = vector.broadcast %23 : vector<1x32xf32> to vector<256x32xf32>
    %25 = arith.mulf %15, %24 : vector<256x32xf32>
    %26 = vector.broadcast %8 : vector<1x32xf32> to vector<256x32xf32>
    %27 = arith.mulf %25, %26 : vector<256x32xf32>
    %28 = vector.broadcast %9 : vector<1x32xf32> to vector<256x32xf32>
    %29 = arith.addf %27, %28 : vector<256x32xf32>
    %cst_12 = arith.constant 0.000000e+00 : f32
    %30 = vector.broadcast %cst_12 : f32 to vector<256x32xf32>
    %31 = arith.maximumf %29, %30 : vector<256x32xf32>
    %c8 = arith.constant 8 : index
    %c0_13 = arith.constant 0 : index
    %32 = vector.load %arg2[%c8, %c0_13] : memref<144x32xf32, #tpu.memory_space<vmem>>, vector<32x32xf32>
    %33 = arith.truncf %32 : vector<32x32xf32> to vector<32x32xbf16>
    %34 = arith.truncf %31 : vector<256x32xf32> to vector<256x32xbf16>
    %cst_14 = arith.constant dense<0.000000e+00> : vector<256x32xf32>
    %35 = tpu.matmul %34, %33, %cst_14 {dimension_numbers = #tpu.dot_dimension_numbers<[1], [0], [0], [1], [0, 0, 1, 1], [], []>} : vector<256x32xbf16>, vector<32x32xbf16>, vector<256x32xf32> -> vector<256x32xf32>
    %c3 = arith.constant 3 : index
    %c0_15 = arith.constant 0 : index
    %36 = vector.load %arg3[%c3, %c0_15] : memref<14x32xf32, #tpu.memory_space<vmem>>, vector<1x32xf32>
    %37 = vector.broadcast %36 : vector<1x32xf32> to vector<256x32xf32>
    %38 = arith.addf %35, %37 : vector<256x32xf32>
    %c4 = arith.constant 4 : index
    %c0_16 = arith.constant 0 : index
    %39 = vector.load %arg3[%c4, %c0_16] : memref<14x32xf32, #tpu.memory_space<vmem>>, vector<1x32xf32>
    %c5 = arith.constant 5 : index
    %c0_17 = arith.constant 0 : index
    %40 = vector.load %arg3[%c5, %c0_17] : memref<14x32xf32, #tpu.memory_space<vmem>>, vector<1x32xf32>
    %cst_18 = arith.constant dense<0.000000e+00> : vector<32xf32>
    %41 = vector.multi_reduction <add>, %38, %cst_18 [0] : vector<256x32xf32> to vector<32xf32>
    %42 = vector.shape_cast %41 : vector<32xf32> to vector<1x32xf32>
    %cst_19 = arith.constant 2.560000e+02 : f32
    %43 = vector.broadcast %cst_19 : f32 to vector<1x32xf32>
    %44 = arith.divf %42, %43 : vector<1x32xf32>
    %45 = vector.broadcast %44 : vector<1x32xf32> to vector<256x32xf32>
    %46 = arith.subf %38, %45 : vector<256x32xf32>
    %47 = arith.mulf %46, %46 : vector<256x32xf32>
    %cst_20 = arith.constant dense<0.000000e+00> : vector<32xf32>
    %48 = vector.multi_reduction <add>, %47, %cst_20 [0] : vector<256x32xf32> to vector<32xf32>
    %49 = vector.shape_cast %48 : vector<32xf32> to vector<1x32xf32>
    %cst_21 = arith.constant 2.560000e+02 : f32
    %50 = vector.broadcast %cst_21 : f32 to vector<1x32xf32>
    %51 = arith.divf %49, %50 : vector<1x32xf32>
    %cst_22 = arith.constant 9.99999974E-6 : f32
    %52 = vector.broadcast %cst_22 : f32 to vector<1x32xf32>
    %53 = arith.addf %51, %52 : vector<1x32xf32>
    %54 = math.rsqrt %53 : vector<1x32xf32>
    %55 = vector.broadcast %54 : vector<1x32xf32> to vector<256x32xf32>
    %56 = arith.mulf %46, %55 : vector<256x32xf32>
    %57 = vector.broadcast %39 : vector<1x32xf32> to vector<256x32xf32>
    %58 = arith.mulf %56, %57 : vector<256x32xf32>
    %59 = vector.broadcast %40 : vector<1x32xf32> to vector<256x32xf32>
    %60 = arith.addf %58, %59 : vector<256x32xf32>
    %cst_23 = arith.constant 0.000000e+00 : f32
    %61 = vector.broadcast %cst_23 : f32 to vector<256x32xf32>
    %62 = arith.maximumf %60, %61 : vector<256x32xf32>
    %c40 = arith.constant 40 : index
    %c0_24 = arith.constant 0 : index
    %63 = vector.load %arg2[%c40, %c0_24] : memref<144x32xf32, #tpu.memory_space<vmem>>, vector<32x4xf32>
    %64 = arith.truncf %63 : vector<32x4xf32> to vector<32x4xbf16>
    %65 = arith.truncf %62 : vector<256x32xf32> to vector<256x32xbf16>
    %cst_25 = arith.constant dense<0.000000e+00> : vector<256x4xf32>
    %66 = tpu.matmul %65, %64, %cst_25 {dimension_numbers = #tpu.dot_dimension_numbers<[1], [0], [0], [1], [0, 0, 1, 1], [], []>} : vector<256x32xbf16>, vector<32x4xbf16>, vector<256x4xf32> -> vector<256x4xf32>
    %c6 = arith.constant 6 : index
    %c0_26 = arith.constant 0 : index
    %67 = vector.load %arg3[%c6, %c0_26] : memref<14x32xf32, #tpu.memory_space<vmem>>, vector<1x4xf32>
    %68 = vector.broadcast %67 : vector<1x4xf32> to vector<256x4xf32>
    %69 = arith.addf %66, %68 : vector<256x4xf32>
    %70 = vector.extract_strided_slice %69 {offsets = [0, 0], sizes = [256, 2], strides = [1, 1]} : vector<256x4xf32> to vector<256x2xf32>
    %71 = vector.extract_strided_slice %69 {offsets = [0, 2], sizes = [256, 2], strides = [1, 1]} : vector<256x4xf32> to vector<256x2xf32>
    %c0_27 = arith.constant 0 : index
    %c0_28 = arith.constant 0 : index
    %72 = vector.load %arg1[%c0_27, %c0_28] : memref<256x2xf32, #tpu.memory_space<vmem>>, vector<256x2xf32>
    %cst_29 = arith.constant 5.000000e-01 : f32
    %73 = vector.broadcast %cst_29 : f32 to vector<256x2xf32>
    %74 = arith.mulf %73, %71 : vector<256x2xf32>
    %75 = math.exp %74 : vector<256x2xf32>
    %76 = arith.mulf %72, %75 : vector<256x2xf32>
    %77 = arith.addf %70, %76 : vector<256x2xf32>
    %c0_30 = arith.constant 0 : index
    %c0_31 = arith.constant 0 : index
    %78 = vector.load %arg5[%c0_30, %c0_31] : memref<256x6xf32, #tpu.memory_space<vmem>>, vector<256x2xf32>
    tpu.vector_store %arg5[%c0_30, %c0_31], %77 {strides = array<i32>} : memref<256x6xf32, #tpu.memory_space<vmem>>, vector<256x2xf32>,
    %79 = vector.extract_strided_slice %0 {offsets = [0, 4], sizes = [256, 4], strides = [1, 1]} : vector<256x8xf32> to vector<256x4xf32>
    %c0_32 = arith.constant 0 : index
    %c2_33 = arith.constant 2 : index
    %80 = vector.load %arg5[%c0_32, %c2_33] : memref<256x6xf32, #tpu.memory_space<vmem>>, vector<256x4xf32>
    tpu.vector_store %arg5[%c0_32, %c2_33], %79 {strides = array<i32>} : memref<256x6xf32, #tpu.memory_space<vmem>>, vector<256x4xf32>,
    %c0_34 = arith.constant 0 : index
    %c0_35 = arith.constant 0 : index
    %81 = vector.load %arg5[%c0_34, %c0_35] : memref<256x6xf32, #tpu.memory_space<vmem>>, vector<256x6xf32>
    %c72 = arith.constant 72 : index
    %c0_36 = arith.constant 0 : index
    %82 = vector.load %arg2[%c72, %c0_36] : memref<144x32xf32, #tpu.memory_space<vmem>>, vector<6x32xf32>
    %83 = arith.truncf %82 : vector<6x32xf32> to vector<6x32xbf16>
    %84 = arith.truncf %81 : vector<256x6xf32> to vector<256x6xbf16>
    %cst_37 = arith.constant dense<0.000000e+00> : vector<256x32xf32>
    %85 = tpu.matmul %84, %83, %cst_37 {dimension_numbers = #tpu.dot_dimension_numbers<[1], [0], [0], [1], [0, 0, 1, 1], [], []>} : vector<256x6xbf16>, vector<6x32xbf16>, vector<256x32xf32> -> vector<256x32xf32>
    %c7 = arith.constant 7 : index
    %c0_38 = arith.constant 0 : index
    %86 = vector.load %arg3[%c7, %c0_38] : memref<14x32xf32, #tpu.memory_space<vmem>>, vector<1x32xf32>
    %87 = vector.broadcast %86 : vector<1x32xf32> to vector<256x32xf32>
    %88 = arith.addf %85, %87 : vector<256x32xf32>
    %c8_39 = arith.constant 8 : index
    %c0_40 = arith.constant 0 : index
    %89 = vector.load %arg3[%c8_39, %c0_40] : memref<14x32xf32, #tpu.memory_space<vmem>>, vector<1x32xf32>
    %c9 = arith.constant 9 : index
    %c0_41 = arith.constant 0 : index
    %90 = vector.load %arg3[%c9, %c0_41] : memref<14x32xf32, #tpu.memory_space<vmem>>, vector<1x32xf32>
    %cst_42 = arith.constant dense<0.000000e+00> : vector<32xf32>
    %91 = vector.multi_reduction <add>, %88, %cst_42 [0] : vector<256x32xf32> to vector<32xf32>
    %92 = vector.shape_cast %91 : vector<32xf32> to vector<1x32xf32>
    %cst_43 = arith.constant 2.560000e+02 : f32
    %93 = vector.broadcast %cst_43 : f32 to vector<1x32xf32>
    %94 = arith.divf %92, %93 : vector<1x32xf32>
    %95 = vector.broadcast %94 : vector<1x32xf32> to vector<256x32xf32>
    %96 = arith.subf %88, %95 : vector<256x32xf32>
    %97 = arith.mulf %96, %96 : vector<256x32xf32>
    %cst_44 = arith.constant dense<0.000000e+00> : vector<32xf32>
    %98 = vector.multi_reduction <add>, %97, %cst_44 [0] : vector<256x32xf32> to vector<32xf32>
    %99 = vector.shape_cast %98 : vector<32xf32> to vector<1x32xf32>
    %cst_45 = arith.constant 2.560000e+02 : f32
    %100 = vector.broadcast %cst_45 : f32 to vector<1x32xf32>
    %101 = arith.divf %99, %100 : vector<1x32xf32>
    %cst_46 = arith.constant 9.99999974E-6 : f32
    %102 = vector.broadcast %cst_46 : f32 to vector<1x32xf32>
    %103 = arith.addf %101, %102 : vector<1x32xf32>
    %104 = math.rsqrt %103 : vector<1x32xf32>
    %105 = vector.broadcast %104 : vector<1x32xf32> to vector<256x32xf32>
    %106 = arith.mulf %96, %105 : vector<256x32xf32>
    %107 = vector.broadcast %89 : vector<1x32xf32> to vector<256x32xf32>
    %108 = arith.mulf %106, %107 : vector<256x32xf32>
    %109 = vector.broadcast %90 : vector<1x32xf32> to vector<256x32xf32>
    %110 = arith.addf %108, %109 : vector<256x32xf32>
    %cst_47 = arith.constant 0.000000e+00 : f32
    %111 = vector.broadcast %cst_47 : f32 to vector<256x32xf32>
    %112 = arith.maximumf %110, %111 : vector<256x32xf32>
    %c80 = arith.constant 80 : index
    %c0_48 = arith.constant 0 : index
    %113 = vector.load %arg2[%c80, %c0_48] : memref<144x32xf32, #tpu.memory_space<vmem>>, vector<32x32xf32>
    %114 = arith.truncf %113 : vector<32x32xf32> to vector<32x32xbf16>
    %115 = arith.truncf %112 : vector<256x32xf32> to vector<256x32xbf16>
    %cst_49 = arith.constant dense<0.000000e+00> : vector<256x32xf32>
    %116 = tpu.matmul %115, %114, %cst_49 {dimension_numbers = #tpu.dot_dimension_numbers<[1], [0], [0], [1], [0, 0, 1, 1], [], []>} : vector<256x32xbf16>, vector<32x32xbf16>, vector<256x32xf32> -> vector<256x32xf32>
    %c10 = arith.constant 10 : index
    %c0_50 = arith.constant 0 : index
    %117 = vector.load %arg3[%c10, %c0_50] : memref<14x32xf32, #tpu.memory_space<vmem>>, vector<1x32xf32>
    %118 = vector.broadcast %117 : vector<1x32xf32> to vector<256x32xf32>
    %119 = arith.addf %116, %118 : vector<256x32xf32>
    %c11 = arith.constant 11 : index
    %c0_51 = arith.constant 0 : index
    %120 = vector.load %arg3[%c11, %c0_51] : memref<14x32xf32, #tpu.memory_space<vmem>>, vector<1x32xf32>
    %c12 = arith.constant 12 : index
    %c0_52 = arith.constant 0 : index
    %121 = vector.load %arg3[%c12, %c0_52] : memref<14x32xf32, #tpu.memory_space<vmem>>, vector<1x32xf32>
    %cst_53 = arith.constant dense<0.000000e+00> : vector<32xf32>
    %122 = vector.multi_reduction <add>, %119, %cst_53 [0] : vector<256x32xf32> to vector<32xf32>
    %123 = vector.shape_cast %122 : vector<32xf32> to vector<1x32xf32>
    %cst_54 = arith.constant 2.560000e+02 : f32
    %124 = vector.broadcast %cst_54 : f32 to vector<1x32xf32>
    %125 = arith.divf %123, %124 : vector<1x32xf32>
    %126 = vector.broadcast %125 : vector<1x32xf32> to vector<256x32xf32>
    %127 = arith.subf %119, %126 : vector<256x32xf32>
    %128 = arith.mulf %127, %127 : vector<256x32xf32>
    %cst_55 = arith.constant dense<0.000000e+00> : vector<32xf32>
    %129 = vector.multi_reduction <add>, %128, %cst_55 [0] : vector<256x32xf32> to vector<32xf32>
    %130 = vector.shape_cast %129 : vector<32xf32> to vector<1x32xf32>
    %cst_56 = arith.constant 2.560000e+02 : f32
    %131 = vector.broadcast %cst_56 : f32 to vector<1x32xf32>
    %132 = arith.divf %130, %131 : vector<1x32xf32>
    %cst_57 = arith.constant 9.99999974E-6 : f32
    %133 = vector.broadcast %cst_57 : f32 to vector<1x32xf32>
    %134 = arith.addf %132, %133 : vector<1x32xf32>
    %135 = math.rsqrt %134 : vector<1x32xf32>
    %136 = vector.broadcast %135 : vector<1x32xf32> to vector<256x32xf32>
    %137 = arith.mulf %127, %136 : vector<256x32xf32>
    %138 = vector.broadcast %120 : vector<1x32xf32> to vector<256x32xf32>
    %139 = arith.mulf %137, %138 : vector<256x32xf32>
    %140 = vector.broadcast %121 : vector<1x32xf32> to vector<256x32xf32>
    %141 = arith.addf %139, %140 : vector<256x32xf32>
    %cst_58 = arith.constant 0.000000e+00 : f32
    %142 = vector.broadcast %cst_58 : f32 to vector<256x32xf32>
    %143 = arith.maximumf %141, %142 : vector<256x32xf32>
    %c112 = arith.constant 112 : index
    %c0_59 = arith.constant 0 : index
    %144 = vector.load %arg2[%c112, %c0_59] : memref<144x32xf32, #tpu.memory_space<vmem>>, vector<32x6xf32>
    %145 = arith.truncf %144 : vector<32x6xf32> to vector<32x6xbf16>
    %146 = arith.truncf %143 : vector<256x32xf32> to vector<256x32xbf16>
    %cst_60 = arith.constant dense<0.000000e+00> : vector<256x6xf32>
    %147 = tpu.matmul %146, %145, %cst_60 {dimension_numbers = #tpu.dot_dimension_numbers<[1], [0], [0], [1], [0, 0, 1, 1], [], []>} : vector<256x32xbf16>, vector<32x6xbf16>, vector<256x6xf32> -> vector<256x6xf32>
    %c13 = arith.constant 13 : index
    %c0_61 = arith.constant 0 : index
    %148 = vector.load %arg3[%c13, %c0_61] : memref<14x32xf32, #tpu.memory_space<vmem>>, vector<1x6xf32>
    %149 = vector.broadcast %148 : vector<1x6xf32> to vector<256x6xf32>
    %150 = arith.addf %147, %149 : vector<256x6xf32>
    %c0_62 = arith.constant 0 : index
    %c0_63 = arith.constant 0 : index
    %151 = vector.load %arg4[%c0_62, %c0_63] : memref<256x10xf32, #tpu.memory_space<vmem>>, vector<256x6xf32>
    tpu.vector_store %arg4[%c0_62, %c0_63], %150 {strides = array<i32>} : memref<256x10xf32, #tpu.memory_space<vmem>>, vector<256x6xf32>,
    %c0_64 = arith.constant 0 : index
    %c6_65 = arith.constant 6 : index
    %152 = vector.load %arg4[%c0_64, %c6_65] : memref<256x10xf32, #tpu.memory_space<vmem>>, vector<256x4xf32>
    tpu.vector_store %arg4[%c0_64, %c6_65], %69 {strides = array<i32>} : memref<256x10xf32, #tpu.memory_space<vmem>>, vector<256x4xf32>,
    return
  }
}

</mosaic_0001>

<bundles_post_ra>
// kernel: fwd.1
= control target key start
LH: loop header
LB: loop body
LE: loop exit
PB: predicated region body
PF: predicated region fallthrough
CT: control target
= control target key end

     0   :  { %vm119_vm0 = vcmask 1043456   ;;  %vm70_vm1 = vcmask 64512   ;;  %vm214_vm2 = vcmask 261120   ;;  %s3379_s7 = smov 126   ;;  %vm1851_vm10 = vcmask 1042432   ;;  %s6853_s2 = inlined_call_operand.vmem [shape: f32[144,32], index: 2, kind: input, shape index: {}]   ;;  %s6854_s0 = inlined_call_operand.vmem [shape: f32[256,8], index: 0, kind: input, shape index: {}]   ;;  %s6855_s3 = inlined_call_operand.vmem [shape: f32[14,32], index: 3, kind: input, shape index: {}]   ;;  %s6856_s1 = inlined_call_operand.vmem [shape: f32[256,2], index: 1, kind: input, shape index: {}]   ;;  %s6857_s4 = inlined_call_operand.vmem [shape: f32[256,10], index: 4, kind: output, shape index: {}]  }
   0x1   :  { %v50_v0 = vld [vmem:[%s6853_s2] sm:$0xff]  ;;  %v19_v2 = vld [vmem:[%s6854_s0 + $0x8] sm:$0xff]  ;;  %v20_v6 = vld [vmem:[%s6854_s0 + $0x10] sm:$0xff]  ;;  %vm1556_vm11 = vcmask 15360   ;;  %vm1717_vm12 = vcmask 48144   ;;  %vm1802_vm13 = vcmask 48128  }
   0x2   :  { %v18_v1 = vld [vmem:[%s6854_s0] sm:$0xff]  ;;  %v51_v3 = vpack.c.bf16 %v50_v0, %v50_v0  ;;  %v21_v7 = vld [vmem:[%s6854_s0 + $0x18] sm:$0xff]  ;;  %v36_v9 = vld [vmem:[%s6854_s0 + $0x90] sm:$0xff] }
   0x3   :  { %v52_v5 = vpack.c.bf16 %v19_v2, %v18_v1  ;;  %v53_v8 = vpack.c.bf16 %v21_v7, %v20_v6  ;;  %v37_v10 = vld [vmem:[%s6854_s0 + $0x98] sm:$0xff]  ;;  %v22_v12 = vld [vmem:[%s6854_s0 + $0x20] sm:$0xff]  ;;  %v23_v13 = vld [vmem:[%s6854_s0 + $0x28] sm:$0xff] }
   0x4   :  { %v121_v4 = vsel %vm119_vm0, %v51_v3, 0  ;;  %v61_v11 = vpack.c.bf16 %v37_v10, %v36_v9  ;;  %v54_v14 = vpack.c.bf16 %v23_v13, %v22_v12  ;;  %v38_v15 = vld [vmem:[%s6854_s0 + $0xa0] sm:$0xff]  ;;  %v39_v16 = vld [vmem:[%s6854_s0 + $0xa8] sm:$0xff]  ;;  %v24_v18 = vld [vmem:[%s6854_s0 + $0x30] sm:$0xff] }
   0x5   :  { %130 = vmatpush.bf16.msra.mxu0 %v121_v4  ;;  %3253 = vmatpush.bf16.msra.mxu1 %v121_v4  ;;  %v62_v17 = vpack.c.bf16 %v39_v16, %v38_v15  ;;  %v25_v19 = vld [vmem:[%s6854_s0 + $0x38] sm:$0xff]  ;;  %v40_v21 = vld [vmem:[%s6854_s0 + $0xb0] sm:$0xff]  ;;  %v26_v24 = vld [vmem:[%s6854_s0 + $0x40] sm:$0xff] }
   0x6   :  { %v55_v20 = vpack.c.bf16 %v25_v19, %v24_v18  ;;  %v41_v22 = vld [vmem:[%s6854_s0 + $0xb8] sm:$0xff]  ;;  %v27_v25 = vld [vmem:[%s6854_s0 + $0x48] sm:$0xff]  ;;  %v42_v27 = vld [vmem:[%s6854_s0 + $0xc0] sm:$0xff] }
   0x7   :  { %v63_v23 = vpack.c.bf16 %v41_v22, %v40_v21  ;;  %v56_v26 = vpack.c.bf16 %v27_v25, %v26_v24  ;;  %v43_v28 = vld [vmem:[%s6854_s0 + $0xc8] sm:$0xff]  ;;  %v28_v30 = vld [vmem:[%s6854_s0 + $0x50] sm:$0xff]  ;;  %v29_v31 = vld [vmem:[%s6854_s0 + $0x58] sm:$0xff] }
   0x8   :  { %3157 = vmatmul.msk.bf16.vlgmr.msra.gmra.mxu0 %vm70_vm1, %v52_v5  ;;  %3166 = vmatmul.msk.bf16.vlgmr.msra.gmra.mxu1 %vm70_vm1, %v61_v11  ;;  %v64_v29 = vpack.c.bf16 %v43_v28, %v42_v27  ;;  %v57_v32 = vpack.c.bf16 %v29_v31, %v28_v30  ;;  %v44_v33 = vld [vmem:[%s6854_s0 + $0xd0] sm:$0xff]  ;;  %v45_v34 = vld [vmem:[%s6854_s0 + $0xd8] sm:$0xff]  ;;  %v30_v36 = vld [vmem:[%s6854_s0 + $0x60] sm:$0xff] }
   0x9   :  { %v65_v35 = vpack.c.bf16 %v45_v34, %v44_v33  ;;  %v31_v37 = vld [vmem:[%s6854_s0 + $0x68] sm:$0xff]  ;;  %v46_v39 = vld [vmem:[%s6854_s0 + $0xe0] sm:$0xff]  ;;  %v32_v42 = vld [vmem:[%s6854_s0 + $0x70] sm:$0xff] }
   0xa   :  { %v58_v38 = vpack.c.bf16 %v31_v37, %v30_v36  ;;  %v47_v40 = vld [vmem:[%s6854_s0 + $0xe8] sm:$0xff]  ;;  %v33_v43 = vld [vmem:[%s6854_s0 + $0x78] sm:$0xff]  ;;  %v48_v45 = vld [vmem:[%s6854_s0 + $0xf0] sm:$0xff] }
   0xb   :  { %v66_v41 = vpack.c.bf16 %v47_v40, %v46_v39  ;;  %v59_v44 = vpack.c.bf16 %v33_v43, %v32_v42  ;;  %v49_v46 = vld [vmem:[%s6854_s0 + $0xf8] sm:$0xff]  ;;  %v34_v48 = vld [vmem:[%s6854_s0 + $0x80] sm:$0xff]  ;;  %v35_v49 = vld [vmem:[%s6854_s0 + $0x88] sm:$0xff] }
   0xc   :  { %v67_v47 = vpack.c.bf16 %v49_v46, %v48_v45  ;;  %v60_v50 = vpack.c.bf16 %v35_v49, %v34_v48  ;;  %v3538_v7 = vld [vmem:[%s6855_s3] ss:$0 sm:$0xff] }
  0x18   :  { %3158 = vmatmul.msk.bf16.gmra.mxu0 %vm70_vm1, %v53_v8  ;;  %3167 = vmatmul.msk.bf16.gmra.mxu1 %vm70_vm1, %v62_v17 }
  0x28   :  { %3159 = vmatmul.msk.bf16.gmra.mxu0 %vm70_vm1, %v54_v14  ;;  %3168 = vmatmul.msk.bf16.gmra.mxu1 %vm70_vm1, %v63_v23 }
  0x38   :  { %3160 = vmatmul.msk.bf16.gmra.mxu0 %vm70_vm1, %v55_v20  ;;  %3169 = vmatmul.msk.bf16.gmra.mxu1 %vm70_vm1, %v64_v29 }
  0x48   :  { %3161 = vmatmul.msk.bf16.gmra.mxu0 %vm70_vm1, %v56_v26  ;;  %3170 = vmatmul.msk.bf16.gmra.mxu1 %vm70_vm1, %v65_v35 }
  0x58   :  { %3162 = vmatmul.msk.bf16.gmra.mxu0 %vm70_vm1, %v57_v32  ;;  %3171 = vmatmul.msk.bf16.gmra.mxu1 %vm70_vm1, %v66_v41 }
  0x68   :  { %3163 = vmatmul.msk.bf16.gmra.mxu0 %vm70_vm1, %v58_v38  ;;  %3172 = vmatmul.msk.bf16.gmra.mxu1 %vm70_vm1, %v67_v47 }
  0x78   :  { %3164 = vmatmul.msk.bf16.gmra.mxu0 %vm70_vm1, %v59_v44 }
  0x85   :  { %v132_v51 = vpop.f32.mrf.mxu0  ;;  %v3521_v55 = vpop.f32.mrf.mxu1 }
  0x86   :  { %v3546_v10 = vadd.f32 %v3538_v7, %v132_v51 }
  0x88   :  { %3165 = vmatmul.msk.bf16.gmra.mxu0 %vm70_vm1, %v60_v50  ;;  %v215_v15 = vsel %vm214_vm2, %v3546_v10, 0.0 }
  0x8d   :  { %v134_v52 = vpop.f32.mrf.mxu0  ;;  %v3523_v58 = vpop.f32.mrf.mxu1 }
  0x8e   :  { %v3543_v9 = vadd.f32 %v3538_v7, %v134_v52 }
  0x90   :  { %v216_v13 = vsel %vm214_vm2, %v3543_v9, 0.0 }
  0x91   :  { %v217_v18 = vadd.f32 %v216_v13, %v215_v15  ;;  %v3631_v15 = vadd.f32 %v3538_v7, %v3521_v55 }
  0x95   :  { %v137_v53 = vpop.f32.mrf.mxu0  ;;  %v3525_v60 = vpop.f32.mrf.mxu1 }
  0x96   :  { %v3549_v11 = vadd.f32 %v3538_v7, %v137_v53  ;;  %v3646_v55 = vadd.f32 %v3538_v7, %v3525_v60 }
  0x98   :  { %v218_v16 = vsel %vm214_vm2, %v3549_v11, 0.0 }
  0x99   :  { %v219_v21 = vadd.f32 %v218_v16, %v217_v18 }
  0x9d   :  { %v139_v54 = vpop.f32.mrf.mxu0  ;;  %v3527_v62 = vpop.f32.mrf.mxu1 }
  0x9e   :  { %v3554_v14 = vadd.f32 %v3538_v7, %v139_v54 }
  0xa0   :  { %v220_v19 = vsel %vm214_vm2, %v3554_v14, 0.0 }
  0xa1   :  { %v221_v25 = vadd.f32 %v220_v19, %v219_v21  ;;  %v3638_v19 = vadd.f32 %v3538_v7, %v3523_v58  ;;  %v3652_v58 = vadd.f32 %v3538_v7, %v3527_v62 }
  0xa3   :  { %v256_v60 = vsel %vm214_vm2, %v3652_v58, 0.0 }
  0xa5   :  { %v142_v56 = vpop.f32.mrf.mxu0  ;;  %v3529_v0 = vpop.f32.mrf.mxu1 }
  0xa6   :  { %v3561_v17 = vadd.f32 %v3538_v7, %v142_v56 }
  0xa8   :  { %v222_v23 = vsel %vm214_vm2, %v3561_v17, 0.0 }
  0xa9   :  { %v223_v29 = vadd.f32 %v222_v23, %v221_v25 }
  0xad   :  { %v144_v57 = vpop.f32.mrf.mxu0  ;;  %v3531_v3 = vpop.f32.mrf.mxu1 }
  0xae   :  { %v3566_v20 = vadd.f32 %v3538_v7, %v144_v57 }
  0xb0   :  { %v224_v27 = vsel %vm214_vm2, %v3566_v20, 0.0 }
  0xb1   :  { %v225_v32 = vadd.f32 %v224_v27, %v223_v29  ;;  %v252_v29 = vsel %vm214_vm2, %v3638_v19, 0.0 }
  0xb5   :  { %v147_v59 = vpop.f32.mrf.mxu0  ;;  %v3533_v5 = vpop.f32.mrf.mxu1 }
  0xb6   :  { %v3573_v24 = vadd.f32 %v3538_v7, %v147_v59 }
  0xb8   :  { %v226_v30 = vsel %vm214_vm2, %v3573_v24, 0.0 }
  0xb9   :  { %v227_v35 = vadd.f32 %v226_v30, %v225_v32  ;;  %v254_v32 = vsel %vm214_vm2, %v3646_v55, 0.0 }
  0xbd   :  { %v149_v61 = vpop.f32.mrf.mxu0  ;;  %v3540_v8 = vpop.f32.mrf.mxu1 }
  0xbe   :  { %v3578_v28 = vadd.f32 %v3538_v7, %v149_v61 }
  0xc0   :  { %v228_v33 = vsel %vm214_vm2, %v3578_v28, 0.0 }
  0xc1   :  { %v229_v38 = vadd.f32 %v228_v33, %v227_v35  ;;  %v3658_v33 = vadd.f32 %v3538_v7, %v3529_v0 }
  0xc3   :  { %v258_v62 = vsel %vm214_vm2, %v3658_v33, 0.0 }
  0xc5   :  { %v152_v63 = vpop.f32.mrf.mxu0  ;;  %v3568_v22 = vpop.f32.mrf.mxu1 }
  0xc6   :  { %v3583_v31 = vadd.f32 %v3538_v7, %v152_v63 }
  0xc8   :  { %v230_v36 = vsel %vm214_vm2, %v3583_v31, 0.0 }
  0xc9   :  { %v231_v43 = vadd.f32 %v230_v36, %v229_v38  ;;  %v3664_v36 = vadd.f32 %v3538_v7, %v3531_v3 }
  0xcb   :  { %v260_v0 = vsel %vm214_vm2, %v3664_v36, 0.0 }
  0xcd   :  { %v154_v1 = vpop.f32.mrf.mxu0  ;;  %v199_v40 = vpop.f32.mrf.mxu1 }
  0xce   :  { %v3588_v34 = vadd.f32 %v3538_v7, %v154_v1 }
  0xd0   :  { %v232_v41 = vsel %vm214_vm2, %v3588_v34, 0.0 }
  0xd1   :  { %v233_v46 = vadd.f32 %v232_v41, %v231_v43 }
  0xd5   :  { %v157_v2 = vpop.f32.mrf.mxu0  ;;  %v202_v59 = vpop.f32.mrf.mxu1 }
  0xd6   :  { %v3593_v37 = vadd.f32 %v3538_v7, %v157_v2 }
  0xd8   :  { %v234_v44 = vsel %vm214_vm2, %v3593_v37, 0.0 }
  0xd9   :  { %v235_v49 = vadd.f32 %v234_v44, %v233_v46  ;;  %v3676_v44 = vadd.f32 %v3538_v7, %v3540_v8 }
  0xdd   :  { %v159_v4 = vpop.f32.mrf.mxu0  ;;  %v204_v25 = vpop.f32.mrf.mxu1 }
  0xde   :  { %v3598_v42 = vadd.f32 %v3538_v7, %v159_v4 }
  0xe0   :  { %v236_v47 = vsel %vm214_vm2, %v3598_v42, 0.0 }
  0xe1   :  { %v237_v52 = vadd.f32 %v236_v47, %v235_v49  ;;  %v3682_v47 = vadd.f32 %v3538_v7, %v3568_v22  ;;  %v3697_v22 = vadd.f32 %v3538_v7, %v204_v25 }
  0xe3   :  { %v266_v8 = vsel %vm214_vm2, %v3682_v47, 0.0 }
  0xe5   :  { %v162_v6 = vpop.f32.mrf.mxu0  ;;  %v207_v43 = vpop.f32.mrf.mxu1 }
  0xe6   :  { %v3603_v45 = vadd.f32 %v3538_v7, %v162_v6 }
  0xe8   :  { %v238_v50 = vsel %vm214_vm2, %v3603_v45, 0.0 }
  0xe9   :  { %v239_v57 = vadd.f32 %v238_v50, %v237_v52  ;;  %v3687_v50 = vadd.f32 %v3538_v7, %v199_v40 }
  0xed   :  { %v164_v12 = vpop.f32.mrf.mxu0 }
  0xee   :  { %v3608_v48 = vadd.f32 %v3538_v7, %v164_v12 }
  0xf0   :  { %v240_v54 = vsel %vm214_vm2, %v3608_v48, 0.0 }
  0xf1   :  { %v241_v1 = vadd.f32 %v240_v54, %v239_v57  ;;  %v268_v57 = vsel %vm214_vm2, %v3687_v50, 0.0 }
  0xf5   :  { %v167_v26 = vpop.f32.mrf.mxu0 }
  0xf6   :  { %v3613_v51 = vadd.f32 %v3538_v7, %v167_v26  ;;  %v250_v26 = vsel %vm214_vm2, %v3631_v15, 0.0 }
  0xf8   :  { %v242_v61 = vsel %vm214_vm2, %v3613_v51, 0.0 }
  0xf9   :  { %v243_v4 = vadd.f32 %v242_v61, %v241_v1  ;;  %v209_v1 = vpop.f32.mrf.mxu1 }
  0xfd   :  { %v169_v39 = vpop.f32.mrf.mxu0 }
  0xfe   :  { %v3618_v56 = vadd.f32 %v3538_v7, %v169_v39  ;;  %v3670_v39 = vadd.f32 %v3538_v7, %v3533_v5  ;;  %v264_v5 = vsel %vm214_vm2, %v3676_v44, 0.0 }
 0x100   :  { %v244_v2 = vsel %vm214_vm2, %v3618_v56, 0.0  ;;  %v262_v3 = vsel %vm214_vm2, %v3670_v39, 0.0 }
 0x101   :  { %v245_v12 = vadd.f32 %v244_v2, %v243_v4  ;;  %v3378_v2 = vmov 256.0   ;;  %v3702_v4 = vadd.f32 %v3538_v7, %v207_v43 }
 0x102   :  { %3272 = vrcp.f32 %v3378_v2 }
 0x105   :  { %v172_v53 = vpop.f32.mrf.mxu0 }
 0x106   :  { %v3623_v63 = vadd.f32 %v3538_v7, %v172_v53  ;;  %v3692_v53 = vadd.f32 %v3538_v7, %v202_v59  ;;  %v272_v59 = vsel %vm214_vm2, %v3697_v22, 0.0 }
 0x108   :  { %v246_v6 = vsel %vm214_vm2, %v3623_v63, 0.0  ;;  %v270_v40 = vsel %vm214_vm2, %v3692_v53, 0.0 }
 0x109   :  { %v247_v18 = vadd.f32 %v246_v6, %v245_v12  ;;  %v3707_v12 = vadd.f32 %v3538_v7, %v209_v1 }
 0x10b   :  { %v276_v25 = vsel %vm214_vm2, %v3707_v12, 0.0 }
 0x10d   :  { %v174_v13 = vpop.f32.mrf.mxu0 }
 0x10e   :  { %v3634_v16 = vadd.f32 %v3538_v7, %v174_v13 }
 0x110   :  { %v248_v21 = vsel %vm214_vm2, %v3634_v16, 0.0 }
 0x111   :  { %v249_v23 = vadd.f32 %v248_v21, %v247_v18  ;;  %v274_v18 = vsel %vm214_vm2, %v3702_v4, 0.0  ;;  %v3273_v21 = vpop.eup %3272 }
 0x112   :  { %vm289_vm3 = vweird.f32 %v3273_v21 }
 0x113   :  { %v251_v27 = vadd.f32 %v250_v26, %v249_v23 }
 0x115   :  { %v253_v30 = vadd.f32 %v252_v29, %v251_v27  ;;  %v285_v27 = vmul.f32 256.0, %v3273_v21 }
 0x117   :  { %v255_v35 = vadd.f32 %v254_v32, %v253_v30  ;;  %v286_v32 = vsub.f32 1.0, %v285_v27 }
 0x119   :  { %v257_v38 = vadd.f32 %v256_v60, %v255_v35 }
 0x11b   :  { %v259_v41 = vadd.f32 %v258_v62, %v257_v38  ;;  %v287_v38 = vmul.f32 %v3273_v21, %v286_v32 }
 0x11d   :  { %v261_v46 = vadd.f32 %v260_v0, %v259_v41  ;;  %v288_v7 = vadd.f32 %v3273_v21, %v287_v38 }
 0x11f   :  { %v263_v49 = vadd.f32 %v262_v3, %v261_v46  ;;  %v3713_v43 = vsel %vm289_vm3, %v3273_v21, %v288_v7 }
 0x121   :  { %v265_v52 = vadd.f32 %v264_v5, %v263_v49 }
 0x123   :  { %v267_v54 = vadd.f32 %v266_v8, %v265_v52 }
 0x125   :  { %v269_v61 = vadd.f32 %v268_v57, %v267_v54 }
 0x127   :  { %v271_v6 = vadd.f32 %v270_v40, %v269_v61 }
 0x129   :  { %v273_v13 = vadd.f32 %v272_v59, %v271_v6 }
 0x12b   :  { %v275_v23 = vadd.f32 %v274_v18, %v273_v13 }
 0x12d   :  { %v277_v26 = vadd.f32 %v276_v25, %v275_v23 }
 0x12f   :  { %v278_v29 = vrot.slane %v277_v26, 4 }
 0x131   :  { %v279_v30 = vadd.f32 %v278_v29, %v277_v26 }
 0x133   :  { %v280_v35 = vrot.slane %v279_v30, 2 }
 0x135   :  { %v281_v60 = vadd.f32 %v280_v35, %v279_v30 }
 0x137   :  { %v282_v62 = vrot.slane %v281_v60, 1 }
 0x139   :  { %v283_v41 = vadd.f32 %v282_v62, %v281_v60 }
 0x13b   :  { %v3716_v0 = vmul.f32 %v3713_v43, %v283_v41 }
 0x13d   :  { %v3720_v46 = vsub.f32 %v3546_v10, %v3716_v0  ;;  %v3724_v3 = vsub.f32 %v3543_v9, %v3716_v0  ;;  %v3728_v49 = vsub.f32 %v3549_v11, %v3716_v0  ;;  %v3732_v5 = vsub.f32 %v3554_v14, %v3716_v0 }
 0x13e   :  { %v3740_v10 = vsub.f32 %v3561_v17, %v3716_v0  ;;  %v3746_v11 = vsub.f32 %v3566_v20, %v3716_v0  ;;  %v3754_v1 = vsub.f32 %v3573_v24, %v3716_v0  ;;  %v3761_v20 = vsub.f32 %v3578_v28, %v3716_v0 }
 0x13f   :  { %v324_v52 = vmul.f32 %v3720_v46, %v3720_v46  ;;  %v325_v8 = vmul.f32 %v3724_v3, %v3724_v3  ;;  %v326_v9 = vmul.f32 %v3728_v49, %v3728_v49  ;;  %v327_v14 = vmul.f32 %v3732_v5, %v3732_v5 }
 0x140   :  { %v328_v17 = vmul.f32 %v3740_v10, %v3740_v10  ;;  %v329_v6 = vmul.f32 %v3746_v11, %v3746_v11  ;;  %v3768_v24 = vsub.f32 %v3583_v31, %v3716_v0  ;;  %v330_v18 = vmul.f32 %v3754_v1, %v3754_v1 }
 0x141   :  { %v356_v54 = vsel %vm214_vm2, %v324_v52, 0.0  ;;  %v357_v57 = vsel %vm214_vm2, %v325_v8, 0.0  ;;  %v359_v2 = vsel %vm214_vm2, %v326_v9, 0.0  ;;  %v361_v59 = vsel %vm214_vm2, %v327_v14, 0.0 }
 0x142   :  { %v358_v61 = vadd.f32 %v357_v57, %v356_v54  ;;  %v363_v21 = vsel %vm214_vm2, %v328_v17, 0.0  ;;  %v3775_v28 = vsub.f32 %v3588_v34, %v3716_v0  ;;  %v331_v25 = vmul.f32 %v3761_v20, %v3761_v20 }
 0x143   :  { %v365_v26 = vsel %vm214_vm2, %v329_v6, 0.0  ;;  %v3782_v31 = vsub.f32 %v3593_v37, %v3716_v0  ;;  %v332_v29 = vmul.f32 %v3768_v24, %v3768_v24  ;;  %v367_v30 = vsel %vm214_vm2, %v330_v18, 0.0 }
 0x144   :  { %v360_v40 = vadd.f32 %v359_v2, %v358_v61  ;;  %v3789_v34 = vsub.f32 %v3598_v42, %v3716_v0  ;;  %v333_v35 = vmul.f32 %v3775_v28, %v3775_v28  ;;  %v369_v60 = vsel %vm214_vm2, %v331_v25, 0.0 }
 0x145   :  { %v3796_v37 = vsub.f32 %v3603_v45, %v3716_v0  ;;  %v334_v62 = vmul.f32 %v3782_v31, %v3782_v31  ;;  %v371_v7 = vsel %vm214_vm2, %v332_v29, 0.0  ;;  %v3803_v42 = vsub.f32 %v3608_v48, %v3716_v0 }
 0x146   :  { %v362_v13 = vadd.f32 %v361_v59, %v360_v40  ;;  %v335_v52 = vmul.f32 %v3789_v34, %v3789_v34  ;;  %v373_v8 = vsel %vm214_vm2, %v333_v35, 0.0  ;;  %v3810_v45 = vsub.f32 %v3613_v51, %v3716_v0 }
 0x147   :  { %v336_v14 = vmul.f32 %v3796_v37, %v3796_v37  ;;  %v375_v54 = vsel %vm214_vm2, %v334_v62, 0.0  ;;  %v3817_v48 = vsub.f32 %v3618_v56, %v3716_v0  ;;  %v337_v61 = vmul.f32 %v3803_v42, %v3803_v42 }
 0x148   :  { %v364_v23 = vadd.f32 %v363_v21, %v362_v13  ;;  %v377_v17 = vsel %vm214_vm2, %v335_v52, 0.0  ;;  %v3824_v51 = vsub.f32 %v3623_v63, %v3716_v0  ;;  %v338_v40 = vmul.f32 %v3810_v45, %v3810_v45 }
 0x149   :  { %v379_v6 = vsel %vm214_vm2, %v336_v14, 0.0  ;;  %v3831_v56 = vsub.f32 %v3634_v16, %v3716_v0  ;;  %v339_v13 = vmul.f32 %v3817_v48, %v3817_v48  ;;  %v381_v18 = vsel %vm214_vm2, %v337_v61, 0.0 }
 0x14a   :  { %v366_v27 = vadd.f32 %v365_v26, %v364_v23  ;;  %v3838_v63 = vsub.f32 %v3631_v15, %v3716_v0  ;;  %v340_v23 = vmul.f32 %v3824_v51, %v3824_v51  ;;  %v383_v25 = vsel %vm214_vm2, %v338_v40, 0.0 }
 0x14b   :  { %v3845_v16 = vsub.f32 %v3638_v19, %v3716_v0  ;;  %v385_v29 = vsel %vm214_vm2, %v339_v13, 0.0  ;;  %v3852_v15 = vsub.f32 %v3646_v55, %v3716_v0  ;;  %v3859_v19 = vsub.f32 %v3652_v58, %v3716_v0 }
 0x14c   :  { %v368_v32 = vadd.f32 %v367_v30, %v366_v27  ;;  %v341_v27 = vmul.f32 %v3831_v56, %v3831_v56  ;;  %v387_v35 = vsel %vm214_vm2, %v340_v23, 0.0  ;;  %v3866_v55 = vsub.f32 %v3658_v33, %v3716_v0 }
 0x14d   :  { %v3873_v58 = vsub.f32 %v3664_v36, %v3716_v0  ;;  %v3880_v33 = vsub.f32 %v3670_v39, %v3716_v0  ;;  %v3887_v36 = vsub.f32 %v3676_v44, %v3716_v0  ;;  %v3894_v39 = vsub.f32 %v3682_v47, %v3716_v0 }
 0x14e   :  { %v370_v38 = vadd.f32 %v369_v60, %v368_v32  ;;  %v342_v32 = vmul.f32 %v3838_v63, %v3838_v63  ;;  %v389_v62 = vsel %vm214_vm2, %v341_v27, 0.0  ;;  %v3901_v44 = vsub.f32 %v3687_v50, %v3716_v0 }
 0x14f   :  { %v3908_v47 = vsub.f32 %v3692_v53, %v3716_v0  ;;  %v3915_v50 = vsub.f32 %v3697_v22, %v3716_v0  ;;  %v3922_v53 = vsub.f32 %v3702_v4, %v3716_v0  ;;  %v323_v22 = vsub.f32 %v3707_v12, %v3716_v0 }
 0x150   :  { %v372_v41 = vadd.f32 %v371_v7, %v370_v38  ;;  %v343_v38 = vmul.f32 %v3845_v16, %v3845_v16  ;;  %v391_v52 = vsel %vm214_vm2, %v342_v32, 0.0 }
 0x152   :  { %v374_v9 = vadd.f32 %v373_v8, %v372_v41  ;;  %v344_v41 = vmul.f32 %v3852_v15, %v3852_v15  ;;  %v393_v14 = vsel %vm214_vm2, %v343_v38, 0.0 }
 0x154   :  { %v376_v57 = vadd.f32 %v375_v54, %v374_v9  ;;  %v345_v9 = vmul.f32 %v3859_v19, %v3859_v19  ;;  %v395_v61 = vsel %vm214_vm2, %v344_v41, 0.0 }
 0x156   :  { %v378_v2 = vadd.f32 %v377_v17, %v376_v57  ;;  %v346_v57 = vmul.f32 %v3866_v55, %v3866_v55  ;;  %v397_v40 = vsel %vm214_vm2, %v345_v9, 0.0 }
 0x158   :  { %v380_v59 = vadd.f32 %v379_v6, %v378_v2  ;;  %v347_v2 = vmul.f32 %v3873_v58, %v3873_v58  ;;  %v399_v13 = vsel %vm214_vm2, %v346_v57, 0.0 }
 0x15a   :  { %v382_v21 = vadd.f32 %v381_v18, %v380_v59  ;;  %v348_v59 = vmul.f32 %v3880_v33, %v3880_v33  ;;  %v401_v23 = vsel %vm214_vm2, %v347_v2, 0.0 }
 0x15c   :  { %v384_v26 = vadd.f32 %v383_v25, %v382_v21  ;;  %v349_v21 = vmul.f32 %v3887_v36, %v3887_v36  ;;  %v403_v27 = vsel %vm214_vm2, %v348_v59, 0.0 }
 0x15e   :  { %v386_v30 = vadd.f32 %v385_v29, %v384_v26  ;;  %v350_v26 = vmul.f32 %v3894_v39, %v3894_v39  ;;  %v405_v32 = vsel %vm214_vm2, %v349_v21, 0.0 }
 0x160   :  { %v388_v60 = vadd.f32 %v387_v35, %v386_v30  ;;  %v351_v30 = vmul.f32 %v3901_v44, %v3901_v44  ;;  %v407_v38 = vsel %vm214_vm2, %v350_v26, 0.0  ;;  %v570_v26 = vld [vmem:[%s6853_s2 + $0x20] sm:$0xff] }
 0x162   :  { %v390_v7 = vadd.f32 %v389_v62, %v388_v60  ;;  %v352_v60 = vmul.f32 %v3908_v47, %v3908_v47  ;;  %v409_v41 = vsel %vm214_vm2, %v351_v30, 0.0 }
 0x164   :  { %v392_v8 = vadd.f32 %v391_v52, %v390_v7  ;;  %v353_v7 = vmul.f32 %v3915_v50, %v3915_v50  ;;  %v411_v4 = vsel %vm214_vm2, %v352_v60, 0.0 }
 0x166   :  { %v394_v54 = vadd.f32 %v393_v14, %v392_v8  ;;  %v354_v8 = vmul.f32 %v3922_v53, %v3922_v53  ;;  %v355_v14 = vmul.f32 %v323_v22, %v323_v22 }
 0x168   :  { %v396_v17 = vadd.f32 %v395_v61, %v394_v54  ;;  %v413_v54 = vsel %vm214_vm2, %v353_v7, 0.0  ;;  %v415_v61 = vsel %vm214_vm2, %v354_v8, 0.0  ;;  %v417_v12 = vsel %vm214_vm2, %v355_v14, 0.0 }
 0x16a   :  { %v398_v6 = vadd.f32 %v397_v40, %v396_v17 }
 0x16c   :  { %v400_v18 = vadd.f32 %v399_v13, %v398_v6 }
 0x16e   :  { %v402_v25 = vadd.f32 %v401_v23, %v400_v18 }
 0x170   :  { %v404_v29 = vadd.f32 %v403_v27, %v402_v25  ;;  %v569_v25 = vld [vmem:[%s6853_s2 + $0x18] sm:$0xff] }
 0x171   :  { %v572_v27 = vpack.c.bf16 %v570_v26, %v569_v25 }
 0x172   :  { %v406_v35 = vadd.f32 %v405_v32, %v404_v29  ;;  %v567_v32 = vld [vmem:[%s6853_s2 + $0x8] sm:$0xff] }
 0x173   :  { %645 = vmatpush.bf16.msrb.mxu1 %v572_v27 }
 0x174   :  { %v408_v62 = vadd.f32 %v407_v38, %v406_v35  ;;  %v568_v35 = vld [vmem:[%s6853_s2 + $0x10] sm:$0xff] }
 0x175   :  { %v571_v38 = vpack.c.bf16 %v568_v35, %v567_v32 }
 0x176   :  { %v410_v52 = vadd.f32 %v409_v41, %v408_v62 }
 0x177   :  { %646 = vmatpush.bf16.msrb.mxu1 %v571_v38 }
 0x178   :  { %v412_v9 = vadd.f32 %v411_v4, %v410_v52  ;;  %v3954_v52 = vld [vmem:[%s6855_s3 + $0x1] ss:$0 sm:$0xff]  ;;  %v3961_v4 = vld [vmem:[%s6855_s3 + $0x2] ss:$0 sm:$0xff] }
 0x17a   :  { %v414_v57 = vadd.f32 %v413_v54, %v412_v9 }
 0x17c   :  { %v416_v17 = vadd.f32 %v415_v61, %v414_v57 }
 0x17e   :  { %v418_v0 = vadd.f32 %v417_v12, %v416_v17 }
 0x180   :  { %v419_v2 = vrot.slane %v418_v0, 4 }
 0x182   :  { %v420_v40 = vadd.f32 %v419_v2, %v418_v0 }
 0x184   :  { %v421_v6 = vrot.slane %v420_v40, 2 }
 0x186   :  { %v422_v59 = vadd.f32 %v421_v6, %v420_v40 }
 0x188   :  { %v423_v13 = vrot.slane %v422_v59, 1 }
 0x18a   :  { %v424_v18 = vadd.f32 %v423_v13, %v422_v59 }
 0x18c   :  { %v425_v21 = vmul.f32 %v424_v18, %v3713_v43 }
 0x18e   :  { %v426_v23 = vadd.f32 1e-05, %v425_v21 }
 0x190   :  { %3274 = vrsqrt.f32 %v426_v23  ;;  %vm433_vm5 = vweird.f32 %v426_v23 }
 0x196   :  { %v3275_v29 = vpop.eup %3274 }
 0x197   :  { %v428_v30 = vmul.f32 %v3275_v29, %v426_v23  ;;  %vm434_vm4 = vweird.f32 %v3275_v29 }
 0x198   :  { %vm435_vm6 = vmor %vm433_vm5, %vm434_vm4  ;;  %vm3120_vm5 = vcmask 80944  }
 0x199   :  { %v429_v60 = vmul.f32 %v3275_v29, %v428_v30 }
 0x19b   :  { %v430_v62 = vmul.f32 0.5, %v429_v60 }
 0x19d   :  { %v431_v7 = vsub.f32 1.5, %v430_v62 }
 0x19f   :  { %v432_v41 = vmul.f32 %v3275_v29, %v431_v7 }
 0x1a1   :  { %v3956_v8 = vsel %vm435_vm6, %v3275_v29, %v432_v41 }
 0x1a2   :  { %v468_v9 = vmul.f32 %v3956_v8, %v323_v22  ;;  %v437_v54 = vmul.f32 %v3956_v8, %v3720_v46  ;;  %v438_v57 = vmul.f32 %v3956_v8, %v3724_v3  ;;  %v3971_v61 = vmul.f32 %v3956_v8, %v3728_v49 }
 0x1a3   :  { %v445_v12 = vmul.f32 %v3956_v8, %v3768_v24  ;;  %v446_v22 = vmul.f32 %v3956_v8, %v3775_v28  ;;  %v447_v0 = vmul.f32 %v3956_v8, %v3782_v31  ;;  %v448_v46 = vmul.f32 %v3956_v8, %v3789_v34 }
 0x1a4   :  { %v501_v14 = vmul.f32 %v3954_v52, %v468_v9  ;;  %v449_v3 = vmul.f32 %v3956_v8, %v3796_v37  ;;  %v450_v49 = vmul.f32 %v3956_v8, %v3803_v42  ;;  %v451_v2 = vmul.f32 %v3956_v8, %v3810_v45 }
 0x1a5   :  { %v452_v24 = vmul.f32 %v3956_v8, %v3817_v48  ;;  %v453_v28 = vmul.f32 %v3956_v8, %v3824_v51  ;;  %v454_v31 = vmul.f32 %v3956_v8, %v3831_v56  ;;  %v455_v34 = vmul.f32 %v3956_v8, %v3838_v63 }
 0x1a6   :  { %v3974_v17 = vadd.f32 %v3961_v4, %v501_v14  ;;  %v456_v37 = vmul.f32 %v3956_v8, %v3845_v16  ;;  %v457_v42 = vmul.f32 %v3956_v8, %v3852_v15  ;;  %v458_v45 = vmul.f32 %v3956_v8, %v3859_v19 }
 0x1a7   :  { %v459_v48 = vmul.f32 %v3956_v8, %v3866_v55  ;;  %v460_v51 = vmul.f32 %v3956_v8, %v3873_v58  ;;  %v461_v56 = vmul.f32 %v3956_v8, %v3880_v33  ;;  %v462_v63 = vmul.f32 %v3956_v8, %v3887_v36 }
 0x1a8   :  { %v463_v16 = vmul.f32 %v3956_v8, %v3894_v39  ;;  %v464_v15 = vmul.f32 %v3956_v8, %v3901_v44  ;;  %v465_v19 = vmul.f32 %v3956_v8, %v3908_v47  ;;  %v466_v55 = vmul.f32 %v3956_v8, %v3915_v50 }
 0x1a9   :  { %v467_v58 = vmul.f32 %v3956_v8, %v3922_v53  ;;  %v470_v33 = vmul.f32 %v3954_v52, %v437_v54  ;;  %v471_v40 = vmul.f32 %v3954_v52, %v438_v57  ;;  %v478_v36 = vmul.f32 %v3954_v52, %v445_v12 }
 0x1aa   :  { %v479_v39 = vmul.f32 %v3954_v52, %v446_v22  ;;  %v480_v6 = vmul.f32 %v3954_v52, %v447_v0  ;;  %v481_v44 = vmul.f32 %v3954_v52, %v448_v46  ;;  %v482_v47 = vmul.f32 %v3954_v52, %v449_v3 }
 0x1ab   :  { %v483_v59 = vmul.f32 %v3954_v52, %v450_v49  ;;  %v484_v50 = vmul.f32 %v3954_v52, %v451_v2  ;;  %v485_v53 = vmul.f32 %v3954_v52, %v452_v24  ;;  %v486_v13 = vmul.f32 %v3954_v52, %v453_v28 }
 0x1ac   :  { %v487_v18 = vmul.f32 %v3954_v52, %v454_v31  ;;  %v488_v21 = vmul.f32 %v3954_v52, %v455_v34  ;;  %v489_v23 = vmul.f32 %v3954_v52, %v456_v37  ;;  %v490_v25 = vmul.f32 %v3954_v52, %v457_v42 }
 0x1ad   :  { %v491_v26 = vmul.f32 %v3954_v52, %v458_v45  ;;  %v492_v27 = vmul.f32 %v3954_v52, %v459_v48  ;;  %v493_v29 = vmul.f32 %v3954_v52, %v460_v51  ;;  %v494_v30 = vmul.f32 %v3954_v52, %v461_v56 }
 0x1ae   :  { %v495_v32 = vmul.f32 %v3954_v52, %v462_v63  ;;  %v496_v35 = vmul.f32 %v3954_v52, %v463_v16  ;;  %v497_v60 = vmul.f32 %v3954_v52, %v464_v15  ;;  %v498_v38 = vmul.f32 %v3954_v52, %v465_v19 }
 0x1af   :  { %v499_v62 = vmul.f32 %v3954_v52, %v466_v55  ;;  %v500_v7 = vmul.f32 %v3954_v52, %v467_v58  ;;  %v503_v41 = vadd.f32 %v3961_v4, %v470_v33  ;;  %v504_v9 = vadd.f32 %v3961_v4, %v471_v40 }
 0x1b0   :  { %v513_v14 = vadd.f32 %v3961_v4, %v480_v6  ;;  %v514_v54 = vadd.f32 %v3961_v4, %v481_v44  ;;  %v515_v57 = vadd.f32 %v3961_v4, %v482_v47  ;;  %v516_v12 = vadd.f32 %v3961_v4, %v483_v59 }
 0x1b1   :  { %v517_v22 = vadd.f32 %v3961_v4, %v484_v50  ;;  %v518_v0 = vadd.f32 %v3961_v4, %v485_v53  ;;  %v519_v46 = vadd.f32 %v3961_v4, %v486_v13  ;;  %v520_v3 = vadd.f32 %v3961_v4, %v487_v18 }
 0x1b2   :  { %v521_v49 = vadd.f32 %v3961_v4, %v488_v21  ;;  %v522_v2 = vadd.f32 %v3961_v4, %v489_v23  ;;  %v523_v24 = vadd.f32 %v3961_v4, %v490_v25  ;;  %v524_v28 = vadd.f32 %v3961_v4, %v491_v26 }
 0x1b3   :  { %v525_v31 = vadd.f32 %v3961_v4, %v492_v27  ;;  %v526_v34 = vadd.f32 %v3961_v4, %v493_v29  ;;  %v527_v37 = vadd.f32 %v3961_v4, %v494_v30  ;;  %v528_v42 = vadd.f32 %v3961_v4, %v495_v32 }
 0x1b4   :  { %v529_v45 = vadd.f32 %v3961_v4, %v496_v35  ;;  %v530_v48 = vadd.f32 %v3961_v4, %v497_v60  ;;  %v531_v51 = vadd.f32 %v3961_v4, %v498_v38  ;;  %v532_v56 = vadd.f32 %v3961_v4, %v499_v62 }
 0x1b5   :  { %v533_v63 = vadd.f32 %v3961_v4, %v500_v7  ;;  %v440_v16 = vmul.f32 %v3956_v8, %v3732_v5  ;;  %v535_v15 = vmax.f32 %v503_v41, 0.0  ;;  %v472_v19 = vmul.f32 %v3954_v52, %v3971_v61 }
 0x1b6   :  { %v536_v55 = vmax.f32 %v504_v9, 0.0  ;;  %v545_v33 = vmax.f32 %v513_v14, 0.0  ;;  %v547_v40 = vmax.f32 %v515_v57, 0.0  ;;  %v511_v6 = vadd.f32 %v3961_v4, %v478_v36 }
 0x1b7   :  { %v473_v58 = vmul.f32 %v3954_v52, %v440_v16  ;;  %v549_v44 = vmax.f32 %v517_v22, 0.0  ;;  %v551_v47 = vmax.f32 %v519_v46, 0.0  ;;  %v553_v59 = vmax.f32 %v521_v49, 0.0 }
 0x1b8   :  { %v573_v50 = vpack.c.bf16 %v536_v55, %v535_v15  ;;  %v555_v53 = vmax.f32 %v523_v24, 0.0  ;;  %v557_v13 = vmax.f32 %v525_v31, 0.0  ;;  %v559_v18 = vmax.f32 %v527_v37, 0.0 }
 0x1b9   :  { %v512_v5 = vadd.f32 %v3961_v4, %v479_v39  ;;  %v561_v21 = vmax.f32 %v529_v45, 0.0  ;;  %v543_v61 = vmax.f32 %v511_v6, 0.0  ;;  %v546_v23 = vmax.f32 %v514_v54, 0.0 }
 0x1ba   :  { %3173 = vmatmul.msk.bf16.vlgmr.msrb.gmra.mxu1 %vm214_vm2, %v573_v50  ;;  %v548_v25 = vmax.f32 %v516_v12, 0.0  ;;  %v563_v26 = vmax.f32 %v531_v51, 0.0  ;;  %v565_v27 = vmax.f32 %v533_v63, 0.0  ;;  %v550_v30 = vmax.f32 %v518_v0, 0.0 }
 0x1bb   :  { %v544_v29 = vmax.f32 %v512_v5, 0.0  ;;  %v578_v36 = vpack.c.bf16 %v546_v23, %v545_v33  ;;  %v552_v35 = vmax.f32 %v520_v3, 0.0  ;;  %v554_v60 = vmax.f32 %v522_v2, 0.0 }
 0x1bc   :  { %v579_v32 = vpack.c.bf16 %v548_v25, %v547_v40  ;;  %v580_v62 = vpack.c.bf16 %v550_v30, %v549_v44  ;;  %v556_v7 = vmax.f32 %v524_v28, 0.0  ;;  %v558_v41 = vmax.f32 %v526_v34, 0.0 }
 0x1bd   :  { %v577_v38 = vpack.c.bf16 %v544_v29, %v543_v61  ;;  %v581_v9 = vpack.c.bf16 %v552_v35, %v551_v47  ;;  %v582_v39 = vpack.c.bf16 %v554_v60, %v553_v59  ;;  %v560_v14 = vmax.f32 %v528_v42, 0.0  ;;  %v4121_v60 = vld [vmem:[%s6855_s3 + $0x3] ss:$0 sm:$0xff] }
 0x1be   :  { %v562_v57 = vmax.f32 %v530_v48, 0.0  ;;  %v583_v22 = vpack.c.bf16 %v556_v7, %v555_v53  ;;  %v584_v46 = vpack.c.bf16 %v558_v41, %v557_v13  ;;  %v564_v54 = vmax.f32 %v532_v56, 0.0 }
 0x1bf   :  { %v566_v12 = vmax.f32 %v3974_v17, 0.0  ;;  %v505_v49 = vadd.f32 %v3961_v4, %v472_v19  ;;  %v506_v0 = vadd.f32 %v3961_v4, %v473_v58  ;;  %v585_v24 = vpack.c.bf16 %v560_v14, %v559_v18 }
 0x1c0   :  { %v586_v3 = vpack.c.bf16 %v562_v57, %v561_v21  ;;  %v587_v2 = vpack.c.bf16 %v564_v54, %v563_v26  ;;  %v441_v34 = vmul.f32 %v3956_v8, %v3740_v10  ;;  %v442_v42 = vmul.f32 %v3956_v8, %v3746_v11 }
 0x1c1   :  { %v588_v31 = vpack.c.bf16 %v566_v12, %v565_v27  ;;  %v537_v37 = vmax.f32 %v505_v49, 0.0  ;;  %v538_v28 = vmax.f32 %v506_v0, 0.0  ;;  %v443_v15 = vmul.f32 %v3956_v8, %v3754_v1 }
 0x1c2   :  { %v474_v17 = vmul.f32 %v3954_v52, %v441_v34  ;;  %v475_v48 = vmul.f32 %v3954_v52, %v442_v42  ;;  %v444_v10 = vmul.f32 %v3956_v8, %v3761_v20 }
 0x1c3   :  { %v574_v45 = vpack.c.bf16 %v538_v28, %v537_v37  ;;  %v476_v19 = vmul.f32 %v3954_v52, %v443_v15 }
 0x1c4   :  { %v507_v51 = vadd.f32 %v3961_v4, %v474_v17  ;;  %v508_v56 = vadd.f32 %v3961_v4, %v475_v48  ;;  %v477_v55 = vmul.f32 %v3954_v52, %v444_v10 }
 0x1c5   :  { %v509_v58 = vadd.f32 %v3961_v4, %v476_v19 }
 0x1c6   :  { %v539_v63 = vmax.f32 %v507_v51, 0.0  ;;  %v540_v16 = vmax.f32 %v508_v56, 0.0  ;;  %v510_v33 = vadd.f32 %v3961_v4, %v477_v55 }
 0x1c7   :  { %v541_v40 = vmax.f32 %v509_v58, 0.0 }
 0x1c8   :  { %v575_v11 = vpack.c.bf16 %v540_v16, %v539_v63  ;;  %v542_v6 = vmax.f32 %v510_v33, 0.0 }
 0x1ca   :  { %3174 = vmatmul.msk.bf16.gmra.mxu1 %vm214_vm2, %v574_v45  ;;  %v576_v44 = vpack.c.bf16 %v542_v6, %v541_v40 }
 0x1da   :  { %3175 = vmatmul.msk.bf16.gmra.mxu1 %vm214_vm2, %v575_v11 }
 0x1ea   :  { %3176 = vmatmul.msk.bf16.gmra.mxu1 %vm214_vm2, %v576_v44 }
 0x1fa   :  { %3177 = vmatmul.msk.bf16.gmra.mxu1 %vm214_vm2, %v577_v38 }
 0x20a   :  { %3178 = vmatmul.msk.bf16.gmra.mxu1 %vm214_vm2, %v578_v36 }
 0x21a   :  { %3179 = vmatmul.msk.bf16.gmra.mxu1 %vm214_vm2, %v579_v32 }
 0x22a   :  { %3180 = vmatmul.msk.bf16.gmra.mxu1 %vm214_vm2, %v580_v62 }
 0x237   :  { %v648_v1 = vpop.f32.mrf.mxu1 }
 0x238   :  { %v4129_v7 = vadd.f32 %v4121_v60, %v648_v1 }
 0x23a   :  { %3181 = vmatmul.msk.bf16.gmra.mxu1 %vm214_vm2, %v581_v9  ;;  %v730_v14 = vsel %vm214_vm2, %v4129_v7, 0.0 }
 0x23f   :  { %v650_v20 = vpop.f32.mrf.mxu1 }
 0x240   :  { %v4126_v62 = vadd.f32 %v4121_v60, %v650_v20 }
 0x242   :  { %v731_v9 = vsel %vm214_vm2, %v4126_v62, 0.0 }
 0x247   :  { %v653_v52 = vpop.f32.mrf.mxu1 }
 0x248   :  { %v4132_v41 = vadd.f32 %v4121_v60, %v653_v52 }
 0x24a   :  { %3182 = vmatmul.msk.bf16.gmra.mxu1 %vm214_vm2, %v582_v39  ;;  %v733_v57 = vsel %vm214_vm2, %v4132_v41, 0.0 }
 0x24f   :  { %v655_v8 = vpop.f32.mrf.mxu1 }
 0x250   :  { %v4137_v39 = vadd.f32 %v4121_v60, %v655_v8 }
 0x252   :  { %v735_v12 = vsel %vm214_vm2, %v4137_v39, 0.0 }
 0x257   :  { %v658_v4 = vpop.f32.mrf.mxu1 }
 0x25a   :  { %3183 = vmatmul.msk.bf16.gmra.mxu1 %vm214_vm2, %v583_v22  ;;  %v4144_v22 = vadd.f32 %v4121_v60, %v658_v4 }
 0x25f   :  { %v660_v47 = vpop.f32.mrf.mxu1 }
 0x260   :  { %v4151_v49 = vadd.f32 %v4121_v60, %v660_v47 }
 0x267   :  { %v663_v59 = vpop.f32.mrf.mxu1 }
 0x26a   :  { %3184 = vmatmul.msk.bf16.gmra.mxu1 %vm214_vm2, %v584_v46  ;;  %v732_v46 = vadd.f32 %v731_v9, %v730_v14 }
 0x26c   :  { %v734_v0 = vadd.f32 %v733_v57, %v732_v46 }
 0x26f   :  { %v665_v50 = vpop.f32.mrf.mxu1 }
 0x270   :  { %v4161_v37 = vadd.f32 %v4121_v60, %v665_v50 }
 0x272   :  { %v743_v48 = vsel %vm214_vm2, %v4161_v37, 0.0 }
 0x277   :  { %v668_v53 = vpop.f32.mrf.mxu1 }
 0x278   :  { %v4166_v42 = vadd.f32 %v4121_v60, %v668_v53 }
 0x27a   :  { %3185 = vmatmul.msk.bf16.gmra.mxu1 %vm214_vm2, %v585_v24  ;;  %v737_v24 = vsel %vm214_vm2, %v4144_v22, 0.0  ;;  %v745_v63 = vsel %vm214_vm2, %v4166_v42, 0.0 }
 0x27f   :  { %v670_v13 = vpop.f32.mrf.mxu1 }
 0x280   :  { %v4171_v51 = vadd.f32 %v4121_v60, %v670_v13 }
 0x282   :  { %v747_v10 = vsel %vm214_vm2, %v4171_v51, 0.0 }
 0x287   :  { %v673_v18 = vpop.f32.mrf.mxu1 }
 0x288   :  { %v4176_v16 = vadd.f32 %v4121_v60, %v673_v18 }
 0x28a   :  { %3186 = vmatmul.msk.bf16.gmra.mxu1 %vm214_vm2, %v586_v3  ;;  %v4156_v3 = vadd.f32 %v4121_v60, %v663_v59  ;;  %v749_v55 = vsel %vm214_vm2, %v4176_v16, 0.0 }
 0x28c   :  { %v741_v34 = vsel %vm214_vm2, %v4156_v3, 0.0 }
 0x28f   :  { %v675_v5 = vpop.f32.mrf.mxu1 }
 0x290   :  { %v4181_v11 = vadd.f32 %v4121_v60, %v675_v5 }
 0x292   :  { %v751_v6 = vsel %vm214_vm2, %v4181_v11, 0.0 }
 0x297   :  { %v678_v21 = vpop.f32.mrf.mxu1 }
 0x298   :  { %v4186_v58 = vadd.f32 %v4121_v60, %v678_v21 }
 0x29a   :  { %3187 = vmatmul.msk.bf16.gmra.mxu1 %vm214_vm2, %v587_v2  ;;  %v736_v2 = vadd.f32 %v735_v12, %v734_v0  ;;  %v753_v20 = vsel %vm214_vm2, %v4186_v58, 0.0 }
 0x29c   :  { %v738_v28 = vadd.f32 %v737_v24, %v736_v2 }
 0x29f   :  { %v680_v61 = vpop.f32.mrf.mxu1 }
 0x2a0   :  { %v4191_v44 = vadd.f32 %v4121_v60, %v680_v61 }
 0x2a2   :  { %v755_v4 = vsel %vm214_vm2, %v4191_v44, 0.0 }
 0x2a7   :  { %v683_v23 = vpop.f32.mrf.mxu1 }
 0x2a8   :  { %v4196_v52 = vadd.f32 %v4121_v60, %v683_v23 }
 0x2aa   :  { %3188 = vmatmul.msk.bf16.gmra.mxu1 %vm214_vm2, %v588_v31  ;;  %v739_v31 = vsel %vm214_vm2, %v4151_v49, 0.0  ;;  %v757_v50 = vsel %vm214_vm2, %v4196_v52, 0.0 }
 0x2ab   :  { %v740_v45 = vadd.f32 %v739_v31, %v738_v28 }
 0x2ad   :  { %v742_v56 = vadd.f32 %v741_v34, %v740_v45 }
 0x2af   :  { %v685_v25 = vpop.f32.mrf.mxu1  ;;  %v744_v15 = vadd.f32 %v743_v48, %v742_v56 }
 0x2b0   :  { %v4201_v47 = vadd.f32 %v4121_v60, %v685_v25 }
 0x2b1   :  { %v746_v19 = vadd.f32 %v745_v63, %v744_v15 }
 0x2b2   :  { %v759_v5 = vsel %vm214_vm2, %v4201_v47, 0.0 }
 0x2b3   :  { %v748_v33 = vadd.f32 %v747_v10, %v746_v19 }
 0x2b5   :  { %v750_v1 = vadd.f32 %v749_v55, %v748_v33 }
 0x2b7   :  { %v688_v26 = vpop.f32.mrf.mxu1  ;;  %v752_v8 = vadd.f32 %v751_v6, %v750_v1 }
 0x2b8   :  { %v4206_v53 = vadd.f32 %v4121_v60, %v688_v26 }
 0x2b9   :  { %v754_v59 = vadd.f32 %v753_v20, %v752_v8 }
 0x2ba   :  { %v761_v23 = vsel %vm214_vm2, %v4206_v53, 0.0 }
 0x2bb   :  { %v756_v13 = vadd.f32 %v755_v4, %v754_v59 }
 0x2bd   :  { %v758_v61 = vadd.f32 %v757_v50, %v756_v13 }
 0x2bf   :  { %v690_v27 = vpop.f32.mrf.mxu1  ;;  %v760_v9 = vadd.f32 %v759_v5, %v758_v61 }
 0x2c0   :  { %v4211_v21 = vadd.f32 %v4121_v60, %v690_v27 }
 0x2c1   :  { %v762_v57 = vadd.f32 %v761_v23, %v760_v9 }
 0x2c2   :  { %v763_v26 = vsel %vm214_vm2, %v4211_v21, 0.0 }
 0x2c3   :  { %v764_v12 = vadd.f32 %v763_v26, %v762_v57 }
 0x2c7   :  { %v693_v29 = vpop.f32.mrf.mxu1 }
 0x2c8   :  { %v4216_v25 = vadd.f32 %v4121_v60, %v693_v29 }
 0x2ca   :  { %v765_v46 = vsel %vm214_vm2, %v4216_v25, 0.0 }
 0x2cb   :  { %v766_v2 = vadd.f32 %v765_v46, %v764_v12 }
 0x2cf   :  { %v695_v30 = vpop.f32.mrf.mxu1 }
 0x2d0   :  { %v4221_v14 = vadd.f32 %v4121_v60, %v695_v30 }
 0x2d2   :  { %v767_v29 = vsel %vm214_vm2, %v4221_v14, 0.0 }
 0x2d3   :  { %v768_v28 = vadd.f32 %v767_v29, %v766_v2 }
 0x2d7   :  { %v4112_v36 = vpop.f32.mrf.mxu1 }
 0x2d8   :  { %v4227_v27 = vadd.f32 %v4121_v60, %v4112_v36 }
 0x2da   :  { %v769_v30 = vsel %vm214_vm2, %v4227_v27, 0.0 }
 0x2db   :  { %v770_v45 = vadd.f32 %v769_v30, %v768_v28 }
 0x2df   :  { %v4114_v32 = vpop.f32.mrf.mxu1 }
 0x2e0   :  { %v4233_v24 = vadd.f32 %v4121_v60, %v4114_v32 }
 0x2e2   :  { %v771_v36 = vsel %vm214_vm2, %v4233_v24, 0.0 }
 0x2e3   :  { %v772_v56 = vadd.f32 %v771_v36, %v770_v45 }
 0x2e7   :  { %v4116_v35 = vpop.f32.mrf.mxu1 }
 0x2e8   :  { %v4239_v31 = vadd.f32 %v4121_v60, %v4116_v35 }
 0x2ea   :  { %v773_v32 = vsel %vm214_vm2, %v4239_v31, 0.0 }
 0x2eb   :  { %v774_v10 = vadd.f32 %v773_v32, %v772_v56 }
 0x2ef   :  { %v4123_v38 = vpop.f32.mrf.mxu1 }
 0x2f0   :  { %v4245_v34 = vadd.f32 %v4121_v60, %v4123_v38 }
 0x2f2   :  { %v775_v35 = vsel %vm214_vm2, %v4245_v34, 0.0 }
 0x2f3   :  { %v776_v55 = vadd.f32 %v775_v35, %v774_v10 }
 0x2f7   :  { %v4146_v54 = vpop.f32.mrf.mxu1 }
 0x2f8   :  { %v4251_v48 = vadd.f32 %v4121_v60, %v4146_v54 }
 0x2fa   :  { %v777_v38 = vsel %vm214_vm2, %v4251_v48, 0.0 }
 0x2fb   :  { %v778_v6 = vadd.f32 %v777_v38, %v776_v55 }
 0x2ff   :  { %v710_v17 = vpop.f32.mrf.mxu1 }
 0x300   :  { %v4256_v15 = vadd.f32 %v4121_v60, %v710_v17 }
 0x302   :  { %v779_v54 = vsel %vm214_vm2, %v4256_v15, 0.0 }
 0x303   :  { %v780_v20 = vadd.f32 %v779_v54, %v778_v6 }
 0x307   :  { %v713_v40 = vpop.f32.mrf.mxu1 }
 0x308   :  { %v4261_v19 = vadd.f32 %v4121_v60, %v713_v40 }
 0x30a   :  { %v781_v1 = vsel %vm214_vm2, %v4261_v19, 0.0 }
 0x30b   :  { %v782_v59 = vadd.f32 %v781_v1, %v780_v20 }
 0x30f   :  { %v715_v18 = vpop.f32.mrf.mxu1 }
 0x310   :  { %v4266_v33 = vadd.f32 %v4121_v60, %v715_v18 }
 0x312   :  { %v783_v40 = vsel %vm214_vm2, %v4266_v33, 0.0 }
 0x313   :  { %v784_v18 = vadd.f32 %v783_v40, %v782_v59 }
 0x317   :  { %v718_v0 = vpop.f32.mrf.mxu1 }
 0x318   :  { %v4271_v17 = vadd.f32 %v4121_v60, %v718_v0 }
 0x31a   :  { %v785_v50 = vsel %vm214_vm2, %v4271_v17, 0.0 }
 0x31b   :  { %v786_v61 = vadd.f32 %v785_v50, %v784_v18 }
 0x31f   :  { %v720_v63 = vpop.f32.mrf.mxu1 }
 0x320   :  { %v4276_v4 = vadd.f32 %v4121_v60, %v720_v63 }
 0x322   :  { %v787_v5 = vsel %vm214_vm2, %v4276_v4, 0.0 }
 0x323   :  { %v788_v9 = vadd.f32 %v787_v5, %v786_v61 }
 0x327   :  { %v723_v8 = vpop.f32.mrf.mxu1 }
 0x328   :  { %v4281_v13 = vadd.f32 %v4121_v60, %v723_v8 }
 0x32a   :  { %v789_v23 = vsel %vm214_vm2, %v4281_v13, 0.0 }
 0x32b   :  { %v790_v46 = vadd.f32 %v789_v23, %v788_v9 }
 0x32f   :  { %v725_v26 = vpop.f32.mrf.mxu1 }
 0x330   :  { %v4288_v57 = vadd.f32 %v4121_v60, %v725_v26 }
 0x332   :  { %v791_v12 = vsel %vm214_vm2, %v4288_v57, 0.0 }
 0x333   :  { %v792_v0 = vadd.f32 %v791_v12, %v790_v46 }
 0x335   :  { %v793_v29 = vrot.slane %v792_v0, 4 }
 0x337   :  { %v794_v2 = vadd.f32 %v793_v29, %v792_v0 }
 0x339   :  { %v795_v30 = vrot.slane %v794_v2, 2 }
 0x33b   :  { %v796_v28 = vadd.f32 %v795_v30, %v794_v2 }
 0x33d   :  { %v797_v36 = vrot.slane %v796_v28, 1 }
 0x33f   :  { %v798_v45 = vadd.f32 %v797_v36, %v796_v28 }
 0x341   :  { %v4293_v32 = vmul.f32 %v798_v45, %v3713_v43 }
 0x343   :  { %v4297_v56 = vsub.f32 %v4129_v7, %v4293_v32  ;;  %v4301_v60 = vsub.f32 %v4126_v62, %v4293_v32  ;;  %v4305_v63 = vsub.f32 %v4132_v41, %v4293_v32  ;;  %v4309_v35 = vsub.f32 %v4137_v39, %v4293_v32 }
 0x344   :  { %v4317_v7 = vsub.f32 %v4144_v22, %v4293_v32  ;;  %v4323_v41 = vsub.f32 %v4151_v49, %v4293_v32  ;;  %v4331_v1 = vsub.f32 %v4156_v3, %v4293_v32  ;;  %v4338_v49 = vsub.f32 %v4161_v37, %v4293_v32 }
 0x345   :  { %v832_v10 = vmul.f32 %v4297_v56, %v4297_v56  ;;  %v833_v38 = vmul.f32 %v4301_v60, %v4301_v60  ;;  %v834_v62 = vmul.f32 %v4305_v63, %v4305_v63  ;;  %v835_v39 = vmul.f32 %v4309_v35, %v4309_v35 }
 0x346   :  { %v836_v22 = vmul.f32 %v4317_v7, %v4317_v7  ;;  %v837_v40 = vmul.f32 %v4323_v41, %v4323_v41  ;;  %v4345_v3 = vsub.f32 %v4166_v42, %v4293_v32  ;;  %v838_v18 = vmul.f32 %v4331_v1, %v4331_v1 }
 0x347   :  { %v864_v55 = vsel %vm214_vm2, %v832_v10, 0.0  ;;  %v865_v54 = vsel %vm214_vm2, %v833_v38, 0.0  ;;  %v867_v20 = vsel %vm214_vm2, %v834_v62, 0.0  ;;  %v869_v59 = vsel %vm214_vm2, %v835_v39, 0.0 }
 0x348   :  { %v866_v6 = vadd.f32 %v865_v54, %v864_v55  ;;  %v871_v5 = vsel %vm214_vm2, %v836_v22, 0.0  ;;  %v4352_v37 = vsub.f32 %v4171_v51, %v4293_v32  ;;  %v839_v23 = vmul.f32 %v4338_v49, %v4338_v49 }
 0x349   :  { %v873_v9 = vsel %vm214_vm2, %v837_v40, 0.0  ;;  %v4359_v42 = vsub.f32 %v4176_v16, %v4293_v32  ;;  %v840_v46 = vmul.f32 %v4345_v3, %v4345_v3  ;;  %v875_v12 = vsel %vm214_vm2, %v838_v18, 0.0 }
 0x34a   :  { %v868_v8 = vadd.f32 %v867_v20, %v866_v6  ;;  %v4366_v51 = vsub.f32 %v4181_v11, %v4293_v32  ;;  %v841_v29 = vmul.f32 %v4352_v37, %v4352_v37  ;;  %v877_v2 = vsel %vm214_vm2, %v839_v23, 0.0 }
 0x34b   :  { %v4373_v16 = vsub.f32 %v4186_v58, %v4293_v32  ;;  %v842_v28 = vmul.f32 %v4359_v42, %v4359_v42  ;;  %v879_v36 = vsel %vm214_vm2, %v840_v46, 0.0  ;;  %v4380_v11 = vsub.f32 %v4191_v44, %v4293_v32 }
 0x34c   :  { %v870_v50 = vadd.f32 %v869_v59, %v868_v8  ;;  %v843_v10 = vmul.f32 %v4366_v51, %v4366_v51  ;;  %v881_v38 = vsel %vm214_vm2, %v841_v29, 0.0  ;;  %v4387_v58 = vsub.f32 %v4196_v52, %v4293_v32 }
 0x34d   :  { %v844_v39 = vmul.f32 %v4373_v16, %v4373_v16  ;;  %v883_v55 = vsel %vm214_vm2, %v842_v28, 0.0  ;;  %v4394_v44 = vsub.f32 %v4201_v47, %v4293_v32  ;;  %v845_v6 = vmul.f32 %v4380_v11, %v4380_v11 }
 0x34e   :  { %v872_v61 = vadd.f32 %v871_v5, %v870_v50  ;;  %v885_v22 = vsel %vm214_vm2, %v843_v10, 0.0  ;;  %v4401_v52 = vsub.f32 %v4206_v53, %v4293_v32  ;;  %v846_v8 = vmul.f32 %v4387_v58, %v4387_v58 }
 0x34f   :  { %v887_v40 = vsel %vm214_vm2, %v844_v39, 0.0  ;;  %v4408_v47 = vsub.f32 %v4211_v21, %v4293_v32  ;;  %v847_v50 = vmul.f32 %v4394_v44, %v4394_v44  ;;  %v889_v18 = vsel %vm214_vm2, %v845_v6, 0.0 }
 0x350   :  { %v874_v26 = vadd.f32 %v873_v9, %v872_v61  ;;  %v4415_v53 = vsub.f32 %v4216_v25, %v4293_v32  ;;  %v848_v61 = vmul.f32 %v4401_v52, %v4401_v52  ;;  %v891_v23 = vsel %vm214_vm2, %v846_v8, 0.0 }
 0x351   :  { %v4422_v21 = vsub.f32 %v4221_v14, %v4293_v32  ;;  %v893_v46 = vsel %vm214_vm2, %v847_v50, 0.0  ;;  %v4429_v25 = vsub.f32 %v4227_v27, %v4293_v32  ;;  %v4436_v14 = vsub.f32 %v4233_v24, %v4293_v32 }
 0x352   :  { %v876_v0 = vadd.f32 %v875_v12, %v874_v26  ;;  %v849_v26 = vmul.f32 %v4408_v47, %v4408_v47  ;;  %v895_v29 = vsel %vm214_vm2, %v848_v61, 0.0  ;;  %v4443_v27 = vsub.f32 %v4239_v31, %v4293_v32 }
 0x353   :  { %v4450_v24 = vsub.f32 %v4245_v34, %v4293_v32  ;;  %v4457_v31 = vsub.f32 %v4251_v48, %v4293_v32  ;;  %v4464_v34 = vsub.f32 %v4256_v15, %v4293_v32  ;;  %v4471_v48 = vsub.f32 %v4261_v19, %v4293_v32 }
 0x354   :  { %v878_v30 = vadd.f32 %v877_v2, %v876_v0  ;;  %v850_v0 = vmul.f32 %v4415_v53, %v4415_v53  ;;  %v897_v28 = vsel %vm214_vm2, %v849_v26, 0.0  ;;  %v4478_v15 = vsub.f32 %v4266_v33, %v4293_v32 }
 0x355   :  { %v4485_v19 = vsub.f32 %v4271_v17, %v4293_v32  ;;  %v4492_v33 = vsub.f32 %v4276_v4, %v4293_v32  ;;  %v4499_v17 = vsub.f32 %v4281_v13, %v4293_v32  ;;  %v831_v4 = vsub.f32 %v4288_v57, %v4293_v32 }
 0x356   :  { %v880_v45 = vadd.f32 %v879_v36, %v878_v30  ;;  %v851_v30 = vmul.f32 %v4422_v21, %v4422_v21  ;;  %v899_v10 = vsel %vm214_vm2, %v850_v0, 0.0 }
 0x358   :  { %v882_v62 = vadd.f32 %v881_v38, %v880_v45  ;;  %v852_v45 = vmul.f32 %v4429_v25, %v4429_v25  ;;  %v901_v39 = vsel %vm214_vm2, %v851_v30, 0.0 }
 0x35a   :  { %v884_v54 = vadd.f32 %v883_v55, %v882_v62  ;;  %v853_v62 = vmul.f32 %v4436_v14, %v4436_v14  ;;  %v903_v6 = vsel %vm214_vm2, %v852_v45, 0.0 }
 0x35c   :  { %v886_v20 = vadd.f32 %v885_v22, %v884_v54  ;;  %v854_v54 = vmul.f32 %v4443_v27, %v4443_v27  ;;  %v905_v8 = vsel %vm214_vm2, %v853_v62, 0.0 }
 0x35e   :  { %v888_v59 = vadd.f32 %v887_v40, %v886_v20  ;;  %v855_v20 = vmul.f32 %v4450_v24, %v4450_v24  ;;  %v907_v50 = vsel %vm214_vm2, %v854_v54, 0.0 }
 0x360   :  { %v890_v5 = vadd.f32 %v889_v18, %v888_v59  ;;  %v856_v59 = vmul.f32 %v4457_v31, %v4457_v31  ;;  %v909_v61 = vsel %vm214_vm2, %v855_v20, 0.0 }
 0x362   :  { %v892_v9 = vadd.f32 %v891_v23, %v890_v5  ;;  %v857_v5 = vmul.f32 %v4464_v34, %v4464_v34  ;;  %v911_v26 = vsel %vm214_vm2, %v856_v59, 0.0 }
 0x364   :  { %v894_v12 = vadd.f32 %v893_v46, %v892_v9  ;;  %v858_v9 = vmul.f32 %v4471_v48, %v4471_v48  ;;  %v913_v0 = vsel %vm214_vm2, %v857_v5, 0.0 }
 0x366   :  { %v896_v2 = vadd.f32 %v895_v29, %v894_v12  ;;  %v859_v12 = vmul.f32 %v4478_v15, %v4478_v15  ;;  %v915_v30 = vsel %vm214_vm2, %v858_v9, 0.0  ;;  %v1078_v9 = vld [vmem:[%s6853_s2 + $0x40] sm:$0xff] }
 0x368   :  { %v898_v36 = vadd.f32 %v897_v28, %v896_v2  ;;  %v860_v2 = vmul.f32 %v4485_v19, %v4485_v19  ;;  %v917_v45 = vsel %vm214_vm2, %v859_v12, 0.0  ;;  %v1076_v12 = vld [vmem:[%s6853_s2 + $0x30] sm:$0xff] }
 0x36a   :  { %v900_v38 = vadd.f32 %v899_v10, %v898_v36  ;;  %v861_v36 = vmul.f32 %v4492_v33, %v4492_v33  ;;  %v919_v13 = vsel %vm214_vm2, %v860_v2, 0.0 }
 0x36c   :  { %v902_v55 = vadd.f32 %v901_v39, %v900_v38  ;;  %v862_v38 = vmul.f32 %v4499_v17, %v4499_v17  ;;  %v863_v39 = vmul.f32 %v831_v4, %v831_v4 }
 0x36e   :  { %v904_v22 = vadd.f32 %v903_v6, %v902_v55  ;;  %v921_v55 = vsel %vm214_vm2, %v861_v36, 0.0  ;;  %v923_v6 = vsel %vm214_vm2, %v862_v38, 0.0  ;;  %v925_v57 = vsel %vm214_vm2, %v863_v39, 0.0 }
 0x370   :  { %v906_v40 = vadd.f32 %v905_v8, %v904_v22 }
 0x372   :  { %v908_v18 = vadd.f32 %v907_v50, %v906_v40 }
 0x374   :  { %v910_v23 = vadd.f32 %v909_v61, %v908_v18 }
 0x376   :  { %v912_v46 = vadd.f32 %v911_v26, %v910_v23  ;;  %v1077_v23 = vld [vmem:[%s6853_s2 + $0x38] sm:$0xff] }
 0x377   :  { %v1080_v26 = vpack.c.bf16 %v1078_v9, %v1077_v23 }
 0x378   :  { %v914_v29 = vadd.f32 %v913_v0, %v912_v46  ;;  %v1075_v46 = vld [vmem:[%s6853_s2 + $0x28] sm:$0xff] }
 0x379   :  { %1153 = vmatpush.bf16.msra.mxu2 %v1080_v26  ;;  %v1079_v0 = vpack.c.bf16 %v1076_v12, %v1075_v46 }
 0x37a   :  { %v916_v28 = vadd.f32 %v915_v30, %v914_v29 }
 0x37c   :  { %v918_v10 = vadd.f32 %v917_v45, %v916_v28 }
 0x37d   :  { %1154 = vmatpush.bf16.msra.mxu2 %v1079_v0 }
 0x37e   :  { %v920_v62 = vadd.f32 %v919_v13, %v918_v10  ;;  %v4531_v10 = vld [vmem:[%s6855_s3 + $0x4] ss:$0 sm:$0xff]  ;;  %v4538_v13 = vld [vmem:[%s6855_s3 + $0x5] ss:$0 sm:$0xff] }
 0x380   :  { %v922_v54 = vadd.f32 %v921_v55, %v920_v62 }
 0x382   :  { %v924_v22 = vadd.f32 %v923_v6, %v922_v54 }
 0x384   :  { %v926_v32 = vadd.f32 %v925_v57, %v924_v22 }
 0x386   :  { %v927_v20 = vrot.slane %v926_v32, 4 }
 0x388   :  { %v928_v8 = vadd.f32 %v927_v20, %v926_v32 }
 0x38a   :  { %v929_v40 = vrot.slane %v928_v8, 2 }
 0x38c   :  { %v930_v59 = vadd.f32 %v929_v40, %v928_v8 }
 0x38e   :  { %v931_v50 = vrot.slane %v930_v59, 1 }
 0x390   :  { %v932_v18 = vadd.f32 %v931_v50, %v930_v59  ;;  %v3348_v50 = vld [vmem:[%s6854_s0 + $0x78] sm:$0xff] }
 0x391   :  { %1651 = vrot.lane.b32.xlu1 %v3348_v50, %s3379_s7  ;;  %v3352_v50 = vld [vmem:[%s6854_s0 + $0x88] sm:$0xff] }
 0x392   :  { %v933_v5 = vmul.f32 %v932_v18, %v3713_v43 }
 0x394   :  { %v934_v61 = vadd.f32 1e-05, %v933_v5 }
 0x396   :  { %3276 = vrsqrt.f32 %v934_v61  ;;  %vm941_vm8 = vweird.f32 %v934_v61 }
 0x39c   :  { %v3277_v29 = vpop.eup %3276 }
 0x39d   :  { %v936_v2 = vmul.f32 %v3277_v29, %v934_v61  ;;  %vm942_vm7 = vweird.f32 %v3277_v29 }
 0x39e   :  { %vm943_vm9 = vmor %vm941_vm8, %vm942_vm7 }
 0x39f   :  { %v937_v30 = vmul.f32 %v3277_v29, %v936_v2 }
 0x3a1   :  { %v938_v28 = vmul.f32 0.5, %v937_v30 }
 0x3a3   :  { %v939_v36 = vsub.f32 1.5, %v938_v28 }
 0x3a5   :  { %v940_v45 = vmul.f32 %v3277_v29, %v939_v36 }
 0x3a7   :  { %v4533_v38 = vsel %vm943_vm9, %v3277_v29, %v940_v45 }
 0x3a8   :  { %v976_v62 = vmul.f32 %v4533_v38, %v831_v4  ;;  %v945_v55 = vmul.f32 %v4533_v38, %v4297_v56  ;;  %v946_v54 = vmul.f32 %v4533_v38, %v4301_v60  ;;  %v947_v6 = vmul.f32 %v4533_v38, %v4305_v63 }
 0x3a9   :  { %v4550_v22 = vmul.f32 %v4533_v38, %v4309_v35  ;;  %v953_v4 = vmul.f32 %v4533_v38, %v4345_v3  ;;  %v954_v32 = vmul.f32 %v4533_v38, %v4352_v37  ;;  %v955_v56 = vmul.f32 %v4533_v38, %v4359_v42 }
 0x3aa   :  { %v1009_v39 = vmul.f32 %v4531_v10, %v976_v62  ;;  %v956_v60 = vmul.f32 %v4533_v38, %v4366_v51  ;;  %v957_v63 = vmul.f32 %v4533_v38, %v4373_v16  ;;  %v958_v35 = vmul.f32 %v4533_v38, %v4380_v11 }
 0x3ab   :  { %v959_v20 = vmul.f32 %v4533_v38, %v4387_v58  ;;  %v960_v3 = vmul.f32 %v4533_v38, %v4394_v44  ;;  %v961_v37 = vmul.f32 %v4533_v38, %v4401_v52  ;;  %v962_v42 = vmul.f32 %v4533_v38, %v4408_v47 }
 0x3ac   :  { %v4553_v57 = vadd.f32 %v4538_v13, %v1009_v39  ;;  %v963_v51 = vmul.f32 %v4533_v38, %v4415_v53  ;;  %v964_v16 = vmul.f32 %v4533_v38, %v4422_v21  ;;  %v965_v11 = vmul.f32 %v4533_v38, %v4429_v25 }
 0x3ad   :  { %v966_v58 = vmul.f32 %v4533_v38, %v4436_v14  ;;  %v967_v44 = vmul.f32 %v4533_v38, %v4443_v27  ;;  %v968_v52 = vmul.f32 %v4533_v38, %v4450_v24  ;;  %v969_v47 = vmul.f32 %v4533_v38, %v4457_v31  ;;  %v3346_v31 = vld [vmem:[%s6854_s0 + $0x70] sm:$0xff] }
 0x3ae   :  { %v970_v53 = vmul.f32 %v4533_v38, %v4464_v34  ;;  %v971_v21 = vmul.f32 %v4533_v38, %v4471_v48  ;;  %v972_v25 = vmul.f32 %v4533_v38, %v4478_v15  ;;  %v973_v14 = vmul.f32 %v4533_v38, %v4485_v19  ;;  %1649 = vrot.lane.b32.xlu0 %v3346_v31, %s3379_s7 }
 0x3af   :  { %v974_v27 = vmul.f32 %v4533_v38, %v4492_v33  ;;  %v975_v24 = vmul.f32 %v4533_v38, %v4499_v17  ;;  %v978_v34 = vmul.f32 %v4531_v10, %v945_v55  ;;  %v979_v48 = vmul.f32 %v4531_v10, %v946_v54  ;;  %v3347_v33 = vld [vmem:[%s6854_s0] sm:$0xff] }
 0x3b0   :  { %v980_v15 = vmul.f32 %v4531_v10, %v947_v6  ;;  %v986_v19 = vmul.f32 %v4531_v10, %v953_v4  ;;  %1621 = vrot.lane.b32.xlu2 %v3347_v33, %s3379_s7  ;;  %v987_v17 = vmul.f32 %v4531_v10, %v954_v32  ;;  %v988_v8 = vmul.f32 %v4531_v10, %v955_v56 }
 0x3b1   :  { %v989_v40 = vmul.f32 %v4531_v10, %v956_v60  ;;  %v990_v59 = vmul.f32 %v4531_v10, %v957_v63  ;;  %v991_v18 = vmul.f32 %v4531_v10, %v958_v35  ;;  %v4623_v5 = vmul.f32 %v4531_v10, %v959_v20  ;;  %v3349_v63 = vld [vmem:[%s6854_s0 + $0x10] sm:$0xff] }
 0x3b2   :  { %v4626_v61 = vmul.f32 %v4531_v10, %v960_v3  ;;  %v4629_v23 = vmul.f32 %v4531_v10, %v961_v37  ;;  %v4632_v9 = vmul.f32 %v4531_v10, %v962_v42  ;;  %v4635_v26 = vmul.f32 %v4531_v10, %v963_v51  ;;  %v3350_v42 = vld [vmem:[%s6854_s0 + $0x8] sm:$0xff]  ;;  %v3351_v51 = vld [vmem:[%s6854_s0 + $0x18] sm:$0xff] }
 0x3b3   :  { %v4638_v46 = vmul.f32 %v4531_v10, %v964_v16  ;;  %v4641_v12 = vmul.f32 %v4531_v10, %v965_v11  ;;  %v4644_v0 = vmul.f32 %v4531_v10, %v966_v58  ;;  %v4647_v29 = vmul.f32 %v4531_v10, %v967_v44  ;;  %1627 = vrot.lane.b32.xlu1 %v3351_v51, %s3379_s7 }
 0x3b4   :  { %v4650_v2 = vmul.f32 %v4531_v10, %v968_v52  ;;  %v1002_v30 = vmul.f32 %v4531_v10, %v969_v47  ;;  %v1003_v28 = vmul.f32 %v4531_v10, %v970_v53  ;;  %v1004_v36 = vmul.f32 %v4531_v10, %v971_v21 }
 0x3b5   :  { %v1005_v45 = vmul.f32 %v4531_v10, %v972_v25  ;;  %v1006_v62 = vmul.f32 %v4531_v10, %v973_v14  ;;  %v1007_v39 = vmul.f32 %v4531_v10, %v974_v27  ;;  %v1008_v55 = vmul.f32 %v4531_v10, %v975_v24 }
 0x3b6   :  { %v4660_v54 = vadd.f32 %v4538_v13, %v1002_v30  ;;  %v1011_v6 = vadd.f32 %v4538_v13, %v978_v34  ;;  %v4664_v4 = vadd.f32 %v4538_v13, %v1003_v28  ;;  %v4667_v32 = vadd.f32 %v4538_v13, %v1004_v36  ;;  %1625 = vrot.lane.b32.xlu0 %v3349_v63, %s3379_s7 }
 0x3b7   :  { %v4670_v56 = vadd.f32 %v4538_v13, %v1005_v45  ;;  %v4673_v60 = vadd.f32 %v4538_v13, %v1006_v62  ;;  %v981_v35 = vmul.f32 %v4531_v10, %v4550_v22  ;;  %v4682_v20 = vadd.f32 %v4538_v13, %v1007_v39  ;;  %v3353_v45 = vld [vmem:[%s6854_s0 + $0x80] sm:$0xff] }
 0x3b8   :  { %v4685_v3 = vadd.f32 %v4538_v13, %v1008_v55  ;;  %v1012_v37 = vadd.f32 %v4538_v13, %v979_v48  ;;  %1623 = vrot.lane.b32.xlu2 %v3350_v42, %s3379_s7  ;;  %v1043_v22 = vmax.f32 %v1011_v6, 0.0  ;;  %v4697_v11 = vadd.f32 %v4538_v13, %v980_v15 }
 0x3b9   :  { %v1074_v58 = vmax.f32 %v4553_v57, 0.0  ;;  %v4701_v52 = vadd.f32 %v4538_v13, %v981_v35  ;;  %v1019_v47 = vadd.f32 %v4538_v13, %v986_v19  ;;  %v1067_v53 = vmax.f32 %v4660_v54, 0.0 }
 0x3ba   :  { %v1044_v16 = vmax.f32 %v1012_v37, 0.0  ;;  %v1068_v21 = vmax.f32 %v4664_v4, 0.0  ;;  %v1069_v25 = vmax.f32 %v4667_v32, 0.0  ;;  %v1070_v14 = vmax.f32 %v4670_v56, 0.0 }
 0x3bb   :  { %v1071_v27 = vmax.f32 %v4673_v60, 0.0  ;;  %v1072_v24 = vmax.f32 %v4682_v20, 0.0  ;;  %v1020_v31 = vadd.f32 %v4538_v13, %v987_v17  ;;  %v1051_v34 = vmax.f32 %v1019_v47, 0.0 }
 0x3bc   :  { %v1081_v44 = vpack.c.bf16 %v1044_v16, %v1043_v22  ;;  %v1073_v48 = vmax.f32 %v4685_v3, 0.0  ;;  %v1045_v15 = vmax.f32 %v4697_v11, 0.0  ;;  %v1021_v19 = vadd.f32 %v4538_v13, %v988_v8 }
 0x3bd   :  { %v1022_v33 = vadd.f32 %v4538_v13, %v989_v40  ;;  %v1046_v30 = vmax.f32 %v4701_v52, 0.0  ;;  %v1052_v28 = vmax.f32 %v1020_v31, 0.0  ;;  %v1023_v17 = vadd.f32 %v4538_v13, %v990_v59  ;;  %v3354_v59 = vld [vmem:[%s6854_s0 + $0x90] sm:$0xff] }
 0x3be   :  { %3189 = vmatmul.msk.bf16.vlgmr.msra.gmra.mxu2 %vm214_vm2, %v1081_v44  ;;  %1655 = vrot.lane.b32.xlu0 %v3352_v50, %s3379_s7  ;;  %v1024_v36 = vadd.f32 %v4538_v13, %v991_v18  ;;  %v1053_v8 = vmax.f32 %v1021_v19, 0.0  ;;  %v1025_v62 = vadd.f32 %v4538_v13, %v4623_v5  ;;  %v1026_v39 = vadd.f32 %v4538_v13, %v4626_v61 }
 0x3bf   :  { %v1054_v40 = vmax.f32 %v1022_v33, 0.0  ;;  %1657 = vrot.lane.b32.xlu1 %v3354_v59, %s3379_s7  ;;  %v1085_v18 = vpack.c.bf16 %v1052_v28, %v1051_v34  ;;  %v1055_v55 = vmax.f32 %v1023_v17, 0.0  ;;  %v1027_v6 = vadd.f32 %v4538_v13, %v4629_v23 }
 0x3c0   :  { %1653 = vrot.lane.b32.xlu2 %v3353_v45, %s3379_s7  ;;  %v1056_v54 = vmax.f32 %v1024_v36, 0.0  ;;  %v1057_v32 = vmax.f32 %v1025_v62, 0.0  ;;  %v1058_v56 = vmax.f32 %v1026_v39, 0.0  ;;  %v1028_v5 = vadd.f32 %v4538_v13, %v4632_v9 }
 0x3c1   :  { %v1086_v4 = vpack.c.bf16 %v1054_v40, %v1053_v8  ;;  %v1059_v61 = vmax.f32 %v1027_v6, 0.0  ;;  %v1029_v63 = vadd.f32 %v4538_v13, %v4635_v26  ;;  %v1030_v35 = vadd.f32 %v4538_v13, %v4638_v46 }
 0x3c2   :  { %v1087_v60 = vpack.c.bf16 %v1056_v54, %v1055_v55  ;;  %v1088_v20 = vpack.c.bf16 %v1058_v56, %v1057_v32  ;;  %v1060_v3 = vmax.f32 %v1028_v5, 0.0  ;;  %v1031_v37 = vadd.f32 %v4538_v13, %v4641_v12  ;;  %v3355_v12 = vld [vmem:[%s6854_s0 + $0x20] sm:$0xff] }
 0x3c3   :  { %v1032_v23 = vadd.f32 %v4538_v13, %v4644_v0  ;;  %v1061_v42 = vmax.f32 %v1029_v63, 0.0  ;;  %v1062_v51 = vmax.f32 %v1030_v35, 0.0  ;;  %v1033_v9 = vadd.f32 %v4538_v13, %v4647_v29 }
 0x3c4   :  { %v1034_v22 = vadd.f32 %v4538_v13, %v4650_v2  ;;  %v1089_v26 = vpack.c.bf16 %v1060_v3, %v1059_v61  ;;  %v1063_v16 = vmax.f32 %v1031_v37, 0.0  ;;  %v4751_v46 = vpack.c.bf16 %v1068_v21, %v1067_v53 }
 0x3c5   :  { %v1064_v11 = vmax.f32 %v1032_v23, 0.0  ;;  %v1090_v44 = vpack.c.bf16 %v1062_v51, %v1061_v42  ;;  %v1065_v0 = vmax.f32 %v1033_v9, 0.0  ;;  %v4757_v47 = vpack.c.bf16 %v1070_v14, %v1069_v25 }
 0x3c6   :  { %v1066_v52 = vmax.f32 %v1034_v22, 0.0  ;;  %v4761_v31 = vpack.c.bf16 %v1072_v24, %v1071_v27  ;;  %v4765_v2 = vpack.c.bf16 %v1074_v58, %v1073_v48  ;;  %v949_v21 = vmul.f32 %v4533_v38, %v4317_v7 }
 0x3c7   :  { %v4759_v29 = vpack.c.bf16 %v1064_v11, %v1063_v16  ;;  %v950_v34 = vmul.f32 %v4533_v38, %v4323_v41  ;;  %v1082_v19 = vpack.c.bf16 %v1046_v30, %v1045_v15  ;;  %v951_v48 = vmul.f32 %v4533_v38, %v4331_v1  ;;  %v1782_v1 = vld [vmem:[%s6853_s2 + $0x48] sm:$0x3f] }
 0x3c8   :  { %1629 = vrot.lane.b32.xlu2 %v3355_v12, %s3379_s7  ;;  %v4767_v53 = vpack.c.bf16 %v1066_v52, %v1065_v0  ;;  %v982_v25 = vmul.f32 %v4531_v10, %v949_v21  ;;  %v952_v7 = vmul.f32 %v4533_v38, %v4338_v49  ;;  %v1783_v49 = vpack.c.bf16 %v1782_v1, %v1782_v1  ;;  %v4799_v38 = vld [vmem:[%s6855_s3 + $0x6] ss:$0 sm:$0xff] }
 0x3c9   :  { %v983_v14 = vmul.f32 %v4531_v10, %v950_v34  ;;  %v984_v15 = vmul.f32 %v4531_v10, %v951_v48 }
 0x3ca   :  { %v1015_v27 = vadd.f32 %v4538_v13, %v982_v25  ;;  %v985_v33 = vmul.f32 %v4531_v10, %v952_v7  ;;  %v1853_v10 = vsel %vm1851_vm10, %v1783_v49, 0 }
 0x3cb   :  { %v1016_v57 = vadd.f32 %v4538_v13, %v983_v14  ;;  %v1017_v50 = vadd.f32 %v4538_v13, %v984_v15  ;;  %1862 = vmatpush.bf16.msrb.mxu2 %v1853_v10  ;;  %3254 = vmatpush.bf16.msra.mxu3 %v1853_v10 }
 0x3cc   :  { %v1047_v58 = vmax.f32 %v1015_v27, 0.0  ;;  %v1018_v30 = vadd.f32 %v4538_v13, %v985_v33 }
 0x3cd   :  { %v1048_v24 = vmax.f32 %v1016_v57, 0.0  ;;  %v1049_v28 = vmax.f32 %v1017_v50, 0.0 }
 0x3ce   :  { %3190 = vmatmul.msk.bf16.gmra.mxu2 %vm214_vm2, %v1082_v19  ;;  %v1050_v17 = vmax.f32 %v1018_v30, 0.0  ;;  %v3357_v19 = vld [vmem:[%s6854_s0 + $0xa0] sm:$0xff] }
 0x3cf   :  { %v1083_v41 = vpack.c.bf16 %v1048_v24, %v1047_v58 }
 0x3d0   :  { %v1084_v36 = vpack.c.bf16 %v1050_v17, %v1049_v28  ;;  %v1238_v28 = vld [vmem:[%s6856_s1 + $0x10] sm:$0xff] }
 0x3de   :  { %3191 = vmatmul.msk.bf16.gmra.mxu2 %vm214_vm2, %v1083_v41 }
 0x3ee   :  { %3192 = vmatmul.msk.bf16.gmra.mxu2 %vm214_vm2, %v1084_v36 }
 0x3fe   :  { %3193 = vmatmul.msk.bf16.gmra.mxu2 %vm214_vm2, %v1085_v18 }
 0x40a   :  { %v1622_v27 = vpop.permute.xlu2 %1621 }
 0x40e   :  { %3194 = vmatmul.msk.bf16.gmra.mxu2 %vm214_vm2, %v1086_v4 }
 0x41e   :  { %3195 = vmatmul.msk.bf16.gmra.mxu2 %vm214_vm2, %v1087_v60 }
 0x420   :  { %v4865_v24 = vpop.permute.xlu0 %1649 }
 0x428   :  { %v1626_v41 = vpop.permute.xlu0 %1625 }
 0x42e   :  { %3196 = vmatmul.msk.bf16.gmra.mxu2 %vm214_vm2, %v1088_v20  ;;  %v3356_v20 = vld [vmem:[%s6854_s0 + $0x28] sm:$0xff] }
 0x430   :  { %v4879_v30 = vpop.permute.xlu0 %1655 }
 0x43e   :  { %3197 = vmatmul.msk.bf16.gmra.mxu2 %vm214_vm2, %v1089_v26 }
 0x441   :  { %v1156_v13 = vpop.f32.mrf.mxu2 }
 0x442   :  { %v4802_v45 = vadd.f32 %v4799_v38, %v1156_v13 }
 0x444   :  { %v1268_v8 = vmul.f32 0.5, %v4802_v45 }
 0x446   :  { %v1300_v40 = vmul.f32 1.442695, %v1268_v8 }
 0x448   :  { %3278 = vpow2.f32 %v1300_v40  ;;  %v1236_v40 = vld [vmem:[%s6856_s1] sm:$0xff] }
 0x449   :  { %v1158_v62 = vpop.f32.mrf.mxu2 }
 0x44a   :  { %v4806_v39 = vadd.f32 %v4799_v38, %v1158_v62 }
 0x44c   :  { %v1269_v59 = vmul.f32 0.5, %v4806_v39 }
 0x44e   :  { %v3279_v18 = vpop.eup %3278  ;;  %v1302_v55 = vmul.f32 1.442695, %v1269_v59  ;;  %3198 = vmatmul.msk.bf16.gmra.mxu2 %vm214_vm2, %v1090_v44 }
 0x44f   :  { %1396 = vrot.lane.b32.xlu0 %v3279_v18, %s3379_s7 }
 0x450   :  { %3280 = vpow2.f32 %v1302_v55 }
 0x451   :  { %v1161_v54 = vpop.f32.mrf.mxu2 }
 0x452   :  { %v4812_v6 = vadd.f32 %v4799_v38, %v1161_v54 }
 0x454   :  { %v1270_v4 = vmul.f32 0.5, %v4812_v6 }
 0x456   :  { %v3281_v32 = vpop.eup %3280  ;;  %v1304_v56 = vmul.f32 1.442695, %v1270_v4  ;;  %v4901_v4 = vpop.permute.xlu1 %1651 }
 0x457   :  { %1398 = vrot.lane.b32.xlu0 %v3281_v32, %s3379_s7 }
 0x458   :  { %3282 = vpow2.f32 %v1304_v56 }
 0x459   :  { %v1163_v5 = vpop.f32.mrf.mxu2 }
 0x45a   :  { %v4817_v60 = vadd.f32 %v4799_v38, %v1163_v5 }
 0x45c   :  { %v1271_v61 = vmul.f32 0.5, %v4817_v60 }
 0x45e   :  { %v3283_v63 = vpop.eup %3282  ;;  %v1306_v35 = vmul.f32 1.442695, %v1271_v61  ;;  %3199 = vmatmul.msk.bf16.gmra.mxu2 %vm214_vm2, %v4759_v29 }
 0x45f   :  { %1400 = vrot.lane.b32.xlu2 %v3283_v63, %s3379_s7  ;;  %1631 = vrot.lane.b32.xlu0 %v3356_v20, %s3379_s7 }
 0x460   :  { %3284 = vpow2.f32 %v1306_v35  ;;  %v1237_v35 = vld [vmem:[%s6856_s1 + $0x8] sm:$0xff] }
 0x461   :  { %v1166_v3 = vpop.f32.mrf.mxu2 }
 0x462   :  { %v4828_v37 = vadd.f32 %v4799_v38, %v1166_v3 }
 0x464   :  { %v1272_v23 = vmul.f32 0.5, %v4828_v37 }
 0x466   :  { %v3285_v42 = vpop.eup %3284  ;;  %v1308_v51 = vmul.f32 1.442695, %v1272_v23 }
 0x467   :  { %1402 = vrot.lane.b32.xlu0 %v3285_v42, %s3379_s7 }
 0x468   :  { %3286 = vpow2.f32 %v1308_v51 }
 0x469   :  { %v1168_v9 = vpop.f32.mrf.mxu2 }
 0x46a   :  { %v4833_v22 = vadd.f32 %v4799_v38, %v1168_v9 }
 0x46c   :  { %v1273_v26 = vmul.f32 0.5, %v4833_v22 }
 0x46e   :  { %v3287_v16 = vpop.eup %3286  ;;  %v1310_v11 = vmul.f32 1.442695, %v1273_v26  ;;  %3200 = vmatmul.msk.bf16.gmra.mxu2 %vm214_vm2, %v4767_v53 }
 0x46f   :  { %1404 = vrot.lane.b32.xlu1 %v3287_v16, %s3379_s7  ;;  %v1628_v16 = vpop.permute.xlu1 %1627 }
 0x470   :  { %3288 = vpow2.f32 %v1310_v11 }
 0x471   :  { %v1171_v44 = vpop.f32.mrf.mxu2 }
 0x472   :  { %v4840_v12 = vadd.f32 %v4799_v38, %v1171_v44 }
 0x474   :  { %v1274_v0 = vmul.f32 0.5, %v4840_v12 }
 0x476   :  { %v3289_v52 = vpop.eup %3288  ;;  %v1312_v29 = vmul.f32 1.442695, %v1274_v0  ;;  %v1241_v0 = vld [vmem:[%s6856_s1 + $0x28] sm:$0xff] }
 0x477   :  { %1406 = vrot.lane.b32.xlu2 %v3289_v52, %s3379_s7 }
 0x478   :  { %3290 = vpow2.f32 %v1312_v29 }
 0x479   :  { %v1173_v21 = vpop.f32.mrf.mxu2 }
 0x47a   :  { %v4899_v54 = vadd.f32 %v4799_v38, %v1173_v21 }
 0x47c   :  { %v1275_v63 = vmul.f32 0.5, %v4899_v54 }
 0x47e   :  { %v3291_v34 = vpop.eup %3290  ;;  %3201 = vmatmul.msk.bf16.gmra.mxu2 %vm214_vm2, %v4751_v46  ;;  %v1624_v46 = vpop.permute.xlu2 %1623  ;;  %v1314_v51 = vmul.f32 1.442695, %v1275_v63 }
 0x47f   :  { %1408 = vrot.lane.b32.xlu0 %v3291_v34, %s3379_s7 }
 0x481   :  { %v4847_v53 = vpop.f32.mrf.mxu2 }
 0x486   :  { %v4867_v48 = vpop.permute.xlu2 %1653 }
 0x487   :  { %1661 = vrot.lane.b32.xlu0 %v3357_v19, %s3379_s7 }
 0x489   :  { %v4853_v25 = vpop.f32.mrf.mxu2 }
 0x48e   :  { %3202 = vmatmul.msk.bf16.gmra.mxu2 %vm214_vm2, %v4757_v47  ;;  %v4873_v47 = vpop.permute.xlu2 %1629 }
 0x491   :  { %v4857_v14 = vpop.f32.mrf.mxu2 }
 0x499   :  { %v4859_v57 = vpop.f32.mrf.mxu2 }
 0x49e   :  { %3203 = vmatmul.msk.bf16.gmra.mxu2 %vm214_vm2, %v4761_v31 }
 0x4a1   :  { %v4863_v58 = vpop.f32.mrf.mxu2 }
 0x4a9   :  { %v4869_v7 = vpop.f32.mrf.mxu2 }
 0x4ae   :  { %3204 = vmatmul.msk.bf16.gmra.mxu2 %vm214_vm2, %v4765_v2 }
 0x4b1   :  { %v1191_v15 = vpop.f32.mrf.mxu2 }
 0x4b2   :  { %v4876_v33 = vadd.f32 %v4799_v38, %v1191_v15 }
 0x4b4   :  { %v1282_v31 = vmul.f32 0.5, %v4876_v33 }
 0x4b6   :  { %v1328_v50 = vmul.f32 1.442695, %v1282_v31 }
 0x4b8   :  { %3292 = vpow2.f32 %v1328_v50 }
 0x4b9   :  { %v1193_v17 = vpop.f32.mrf.mxu2  ;;  %v1401_v36 = vpop.permute.xlu2 %1400 }
 0x4ba   :  { %v4885_v2 = vadd.f32 %v4799_v38, %v1193_v17  ;;  %v1494_v1 = vmul.f32 %v1401_v36, %v1238_v28  ;;  %v4936_v28 = vpop.permute.xlu1 %1657  ;;  %v1239_v17 = vld [vmem:[%s6856_s1 + $0x18] sm:$0xff] }
 0x4bc   :  { %v1283_v49 = vmul.f32 0.5, %v4885_v2  ;;  %v1526_v10 = vadd.f32 %v1494_v1, %v4812_v6 }
 0x4be   :  { %v3293_v13 = vpop.eup %3292  ;;  %v1330_v8 = vmul.f32 1.442695, %v1283_v49  ;;  %1559 = vst.msk [vmem:[#allocation2 + $0x10] sm:$0xff] %vm1556_vm11, %v1526_v10 }
 0x4bf   :  { %1720 = vst.msk [vmem:[#allocation2 + $0x10] sm:$0xff] %vm1717_vm12, %v1626_v41  ;;  %1424 = vrot.lane.b32.xlu1 %v3293_v13, %s3379_s7  ;;  %v4947_v13 = vadd.f32 %v4799_v38, %v4847_v53  ;;  %v3359_v53 = vld [vmem:[%s6854_s0 + $0x98] sm:$0xff] }
 0x4c0   :  { %3294 = vpow2.f32 %v1330_v8 }
 0x4c1   :  { %v1196_v62 = vpop.f32.mrf.mxu2  ;;  %v1397_v59 = vpop.permute.xlu0 %1396 }
 0x4c2   :  { %v4896_v18 = vadd.f32 %v4799_v38, %v1196_v62  ;;  %v1492_v55 = vmul.f32 %v1397_v59, %v1236_v40 }
 0x4c4   :  { %v1284_v32 = vmul.f32 0.5, %v4896_v18  ;;  %v1524_v56 = vadd.f32 %v1492_v55, %v4802_v45 }
 0x4c6   :  { %v3295_v5 = vpop.eup %3294  ;;  %v1332_v61 = vmul.f32 1.442695, %v1284_v32  ;;  %1557 = vst.msk [vmem:[#allocation2] sm:$0xff] %vm1556_vm11, %v1524_v56  ;;  %v3358_v32 = vld [vmem:[%s6854_s0 + $0x30] sm:$0xff]  ;;  %v1240_v56 = vld [vmem:[%s6856_s1 + $0x20] sm:$0xff] }
 0x4c7   :  { %1718 = vst.msk [vmem:[#allocation2] sm:$0xff] %vm1717_vm12, %v1622_v27  ;;  %1426 = vrot.lane.b32.xlu1 %v3295_v5, %s3379_s7  ;;  %v1276_v5 = vmul.f32 0.5, %v4947_v13 }
 0x4c8   :  { %3296 = vpow2.f32 %v1332_v61 }
 0x4c9   :  { %v1198_v20 = vpop.f32.mrf.mxu2  ;;  %v1399_v3 = vpop.permute.xlu0 %1398  ;;  %3298 = vpow2.f32 %v1314_v51 }
 0x4ca   :  { %v4913_v23 = vadd.f32 %v4799_v38, %v1198_v20  ;;  %v1493_v42 = vmul.f32 %v1399_v3, %v1237_v35 }
 0x4cc   :  { %v1285_v9 = vmul.f32 0.5, %v4913_v23  ;;  %v1525_v26 = vadd.f32 %v1493_v42, %v4806_v39 }
 0x4ce   :  { %v3297_v11 = vpop.eup %3296  ;;  %v1334_v44 = vmul.f32 1.442695, %v1285_v9  ;;  %1558 = vst.msk [vmem:[#allocation2 + $0x8] sm:$0xff] %vm1556_vm11, %v1525_v26  ;;  %v1750_v61 = vld [vmem:[#allocation2] sm:$0xff]  ;;  %v1316_v9 = vmul.f32 1.442695, %v1276_v5 }
 0x4cf   :  { %1719 = vst.msk [vmem:[#allocation2 + $0x8] sm:$0xff] %vm1717_vm12, %v1624_v46  ;;  %1428 = vrot.lane.b32.xlu1 %v3297_v11, %s3379_s7  ;;  %v3299_v15 = vpop.eup %3298  ;;  %v4930_v46 = vadd.f32 %v4799_v38, %v4853_v25 }
 0x4d0   :  { %3300 = vpow2.f32 %v1334_v44 }
 0x4d1   :  { %v1201_v52 = vpop.f32.mrf.mxu2  ;;  %v1407_v29 = vpop.permute.xlu2 %1406  ;;  %v1277_v25 = vmul.f32 0.5, %v4930_v46 }
 0x4d2   :  { %v4924_v21 = vadd.f32 %v4799_v38, %v1201_v52  ;;  %v1497_v34 = vmul.f32 %v1407_v29, %v1241_v0  ;;  %v1632_v19 = vpop.permute.xlu0 %1631  ;;  %v3360_v0 = vld [vmem:[%s6854_s0 + $0x38] sm:$0xff] }
 0x4d3   :  { %v1318_v40 = vmul.f32 1.442695, %v1277_v25 }
 0x4d4   :  { %v1286_v27 = vmul.f32 0.5, %v4924_v21  ;;  %v1529_v41 = vadd.f32 %v1497_v34, %v4833_v22 }
 0x4d6   :  { %v3301_v31 = vpop.eup %3300  ;;  %v1336_v50 = vmul.f32 1.442695, %v1286_v27  ;;  %1562 = vst.msk [vmem:[#allocation2 + $0x28] sm:$0xff] %vm1556_vm11, %v1529_v41  ;;  %v1751_v63 = vld [vmem:[#allocation2 + $0x8] sm:$0xff] }
 0x4d7   :  { %1723 = vst.msk [vmem:[#allocation2 + $0x28] sm:$0xff] %vm1717_vm12, %v1632_v19  ;;  %1410 = vrot.lane.b32.xlu1 %v3299_v15, %s3379_s7  ;;  %1430 = vrot.lane.b32.xlu2 %v3301_v31, %s3379_s7  ;;  %v1784_v3 = vpack.c.bf16 %v1751_v63, %v1750_v61  ;;  %v4986_v19 = vadd.f32 %v4799_v38, %v4857_v14  ;;  %v3361_v15 = vld [vmem:[%s6854_s0 + $0xa8] sm:$0xff]  ;;  %v1242_v31 = vld [vmem:[%s6856_s1 + $0x30] sm:$0xff] }
 0x4d8   :  { %3302 = vpow2.f32 %v1336_v50  ;;  %v1752_v50 = vld [vmem:[#allocation2 + $0x10] sm:$0xff]  ;;  %v5016_v63 = vadd.f32 %v4799_v38, %v4859_v57  ;;  %v3364_v57 = vld [vmem:[%s6854_s0 + $0x40] sm:$0xff] }
 0x4d9   :  { %v1203_v36 = vpop.f32.mrf.mxu2  ;;  %3205 = vmatmul.msk.bf16.vlgmr.msrb.gmra.mxu2 %vm1802_vm13, %v1784_v3  ;;  %v1278_v14 = vmul.f32 0.5, %v4986_v19 }
 0x4da   :  { %v4943_v1 = vadd.f32 %v4799_v38, %v1203_v36  ;;  %v1403_v49 = vpop.permute.xlu0 %1402 }
 0x4db   :  { %v1495_v10 = vmul.f32 %v1403_v49, %v1239_v17 }
 0x4dc   :  { %v1287_v8 = vmul.f32 0.5, %v4943_v1 }
 0x4dd   :  { %v1527_v62 = vadd.f32 %v1495_v10, %v4817_v60 }
 0x4de   :  { %v3303_v59 = vpop.eup %3302  ;;  %v1338_v55 = vmul.f32 1.442695, %v1287_v8 }
 0x4df   :  { %1560 = vst.msk [vmem:[#allocation2 + $0x18] sm:$0xff] %vm1556_vm11, %v1527_v62  ;;  %1633 = vrot.lane.b32.xlu1 %v3358_v32, %s3379_s7  ;;  %1659 = vrot.lane.b32.xlu2 %v3359_v53, %s3379_s7  ;;  %v3362_v53 = vld [vmem:[%s6854_s0 + $0x48] sm:$0xff] }
 0x4e0   :  { %3304 = vpow2.f32 %v1338_v55  ;;  %1721 = vst.msk [vmem:[#allocation2 + $0x18] sm:$0xff] %vm1717_vm12, %v1628_v16  ;;  %1432 = vrot.lane.b32.xlu0 %v3303_v59, %s3379_s7 }
 0x4e1   :  { %3306 = vpow2.f32 %v1318_v40  ;;  %v1206_v35 = vpop.f32.mrf.mxu2  ;;  %v1405_v20 = vpop.permute.xlu1 %1404  ;;  %v1320_v40 = vmul.f32 1.442695, %v1278_v14  ;;  %v5045_v14 = vadd.f32 %v4799_v38, %v4869_v7 }
 0x4e2   :  { %v1496_v42 = vmul.f32 %v1405_v20, %v1240_v56  ;;  %v4967_v51 = vadd.f32 %v4799_v38, %v1206_v35  ;;  %3308 = vpow2.f32 %v1316_v9  ;;  %v1279_v9 = vmul.f32 0.5, %v5016_v63 }
 0x4e3   :  { %v1281_v7 = vmul.f32 0.5, %v5045_v14 }
 0x4e4   :  { %v1528_v26 = vadd.f32 %v1496_v42, %v4828_v37  ;;  %v1288_v44 = vmul.f32 0.5, %v4967_v51  ;;  %v3363_v42 = vld [vmem:[%s6854_s0 + $0xb0] sm:$0xff] }
 0x4e6   :  { %v3305_v11 = vpop.eup %3304  ;;  %1561 = vst.msk [vmem:[#allocation2 + $0x20] sm:$0xff] %vm1556_vm11, %v1528_v26  ;;  %v1340_v34 = vmul.f32 1.442695, %v1288_v44 }
 0x4e7   :  { %v3307_v16 = vpop.eup %3306  ;;  %1722 = vst.msk [vmem:[#allocation2 + $0x20] sm:$0xff] %vm1717_vm12, %v4873_v47  ;;  %1434 = vrot.lane.b32.xlu1 %v3305_v11, %s3379_s7  ;;  %1635 = vrot.lane.b32.xlu2 %v3360_v0, %s3379_s7  ;;  %v1753_v17 = vld [vmem:[#allocation2 + $0x18] sm:$0xff]  ;;  %v1755_v11 = vld [vmem:[#allocation2 + $0x28] sm:$0xff]  ;;  %v1322_v0 = vmul.f32 1.442695, %v1279_v9 }
 0x4e8   :  { %1414 = vrot.lane.b32.xlu0 %v3307_v16, %s3379_s7  ;;  %v3309_v27 = vpop.eup %3308  ;;  %3310 = vpow2.f32 %v1340_v34  ;;  %v1785_v49 = vpack.c.bf16 %v1753_v17, %v1752_v50  ;;  %v5050_v17 = vadd.f32 %v4799_v38, %v4863_v58 }
 0x4e9   :  { %v1208_v52 = vpop.f32.mrf.mxu2 }
 0x4ea   :  { %v4982_v29 = vadd.f32 %v4799_v38, %v1208_v52  ;;  %3206 = vmatmul.msk.bf16.gmra.mxu2 %vm1802_vm13, %v1785_v49  ;;  %v1280_v58 = vmul.f32 0.5, %v5050_v17 }
 0x4ec   :  { %v1289_v47 = vmul.f32 0.5, %v4982_v29 }
 0x4ee   :  { %v1342_v41 = vmul.f32 1.442695, %v1289_v47  ;;  %v3311_v59 = vpop.eup %3310  ;;  %v1754_v26 = vld [vmem:[#allocation2 + $0x20] sm:$0xff] }
 0x4ef   :  { %1663 = vrot.lane.b32.xlu1 %v3361_v15, %s3379_s7  ;;  %1412 = vrot.lane.b32.xlu2 %v3309_v27, %s3379_s7  ;;  %v1786_v44 = vpack.c.bf16 %v1755_v11, %v1754_v26  ;;  %v3365_v27 = vld [vmem:[%s6854_s0 + $0xb8] sm:$0xff] }
 0x4f0   :  { %3312 = vpow2.f32 %v1342_v41 }
 0x4f1   :  { %v1211_v25 = vpop.f32.mrf.mxu2  ;;  %v1409_v36 = vpop.permute.xlu0 %1408  ;;  %3314 = vpow2.f32 %v1320_v40  ;;  %v3367_v40 = vld [vmem:[%s6854_s0 + $0x58] sm:$0xff] }
 0x4f2   :  { %v1498_v10 = vmul.f32 %v1409_v36, %v1242_v31  ;;  %v4999_v8 = vadd.f32 %v4799_v38, %v1211_v25 }
 0x4f4   :  { %v1530_v62 = vadd.f32 %v1498_v10, %v4840_v12  ;;  %v1290_v32 = vmul.f32 0.5, %v4999_v8  ;;  %v3366_v10 = vld [vmem:[%s6854_s0 + $0xc0] sm:$0xff] }
 0x4f6   :  { %v3313_v55 = vpop.eup %3312  ;;  %1563 = vst.msk [vmem:[#allocation2 + $0x30] sm:$0xff] %vm1556_vm11, %v1530_v62  ;;  %v1344_v61 = vmul.f32 1.442695, %v1290_v32  ;;  %v1324_v32 = vmul.f32 1.442695, %v1280_v58  ;;  %v3373_v58 = vld [vmem:[%s6854_s0 + $0xd0] sm:$0xff] }
 0x4f7   :  { %1639 = vrot.lane.b32.xlu1 %v3362_v53, %s3379_s7  ;;  %1436 = vrot.lane.b32.xlu2 %v3311_v59, %s3379_s7  ;;  %v3315_v20 = vpop.eup %3314 }
 0x4f8   :  { %1438 = vrot.lane.b32.xlu0 %v3313_v55, %s3379_s7  ;;  %3316 = vpow2.f32 %v1344_v61  ;;  %v1326_v55 = vmul.f32 1.442695, %v1281_v7  ;;  %v3372_v7 = vld [vmem:[%s6854_s0 + $0x68] sm:$0xff] }
 0x4f9   :  { %v1213_v56 = vpop.f32.mrf.mxu2 }
 0x4fa   :  { %v5012_v5 = vadd.f32 %v4799_v38, %v1213_v56  ;;  %3207 = vmatmul.msk.bf16.gmra.mxu2 %vm1802_vm13, %v1786_v44 }
 0x4fc   :  { %v1291_v35 = vmul.f32 0.5, %v5012_v5 }
 0x4fe   :  { %v1346_v3 = vmul.f32 1.442695, %v1291_v35  ;;  %v3317_v52 = vpop.eup %3316  ;;  %v3368_v35 = vld [vmem:[%s6854_s0 + $0x50] sm:$0xff] }
 0x4ff   :  { %1416 = vrot.lane.b32.xlu1 %v3315_v20, %s3379_s7  ;;  %1665 = vrot.lane.b32.xlu2 %v3363_v42, %s3379_s7 }
 0x500   :  { %3318 = vpow2.f32 %v1346_v3  ;;  %1637 = vrot.lane.b32.xlu0 %v3364_v57, %s3379_s7 }
 0x501   :  { %v1216_v16 = vpop.f32.mrf.mxu2  ;;  %3320 = vpow2.f32 %v1322_v0 }
 0x502   :  { %v5031_v34 = vadd.f32 %v4799_v38, %v1216_v16  ;;  %v3369_v16 = vld [vmem:[%s6854_s0 + $0xc8] sm:$0xff] }
 0x504   :  { %v1292_v41 = vmul.f32 0.5, %v5031_v34 }
 0x506   :  { %v3319_v47 = vpop.eup %3318  ;;  %v1348_v25 = vmul.f32 1.442695, %v1292_v41  ;;  %v3370_v41 = vld [vmem:[%s6854_s0 + $0x60] sm:$0xff] }
 0x507   :  { %1440 = vrot.lane.b32.xlu1 %v3317_v52, %s3379_s7  ;;  %1442 = vrot.lane.b32.xlu2 %v3319_v47, %s3379_s7  ;;  %v3321_v36 = vpop.eup %3320 }
 0x508   :  { %1667 = vrot.lane.b32.xlu0 %v3365_v27, %s3379_s7 }
 0x509   :  { %v1218_v15 = vpop.f32.mrf.mxu2 }
 0x50a   :  { %v5041_v31 = vadd.f32 %v4799_v38, %v1218_v15 }
 0x50c   :  { %v1293_v50 = vmul.f32 0.5, %v5041_v31 }
 0x50e   :  { %v1350_v49 = vmul.f32 1.442695, %v1293_v50 }
 0x50f   :  { %1669 = vrot.lane.b32.xlu1 %v3366_v10, %s3379_s7  ;;  %1418 = vrot.lane.b32.xlu2 %v3321_v36, %s3379_s7  ;;  %v3371_v10 = vld [vmem:[%s6854_s0 + $0xd8] sm:$0xff] }
 0x510   :  { %3322 = vpow2.f32 %v1350_v49  ;;  %1643 = vrot.lane.b32.xlu0 %v3367_v40, %s3379_s7  ;;  %v1250_v40 = vld [vmem:[%s6856_s1 + $0x70] sm:$0xff] }
 0x511   :  { %3324 = vpow2.f32 %v1348_v25  ;;  %v1221_v62 = vpop.f32.mrf.mxu2 }
 0x512   :  { %v5064_v59 = vadd.f32 %v4799_v38, %v1221_v62  ;;  %3326 = vpow2.f32 %v1326_v55  ;;  %v1253_v62 = vld [vmem:[%s6856_s1 + $0x88] sm:$0xff] }
 0x513   :  { %3328 = vpow2.f32 %v1324_v32 }
 0x514   :  { %v1294_v61 = vmul.f32 0.5, %v5064_v59 }
 0x516   :  { %v3323_v53 = vpop.eup %3322  ;;  %v1352_v42 = vmul.f32 1.442695, %v1294_v61 }
 0x517   :  { %v3325_v56 = vpop.eup %3324  ;;  %1446 = vrot.lane.b32.xlu1 %v3323_v53, %s3379_s7  ;;  %1641 = vrot.lane.b32.xlu2 %v3368_v35, %s3379_s7 }
 0x518   :  { %1444 = vrot.lane.b32.xlu0 %v3325_v56, %s3379_s7  ;;  %v3327_v57 = vpop.eup %3326  ;;  %3330 = vpow2.f32 %v1352_v42 }
 0x519   :  { %v1223_v20 = vpop.f32.mrf.mxu2  ;;  %v3329_v11 = vpop.eup %3328 }
 0x51a   :  { %v5074_v3 = vadd.f32 %v4799_v38, %v1223_v20 }
 0x51c   :  { %v1295_v9 = vmul.f32 0.5, %v5074_v3 }
 0x51e   :  { %v1354_v26 = vmul.f32 1.442695, %v1295_v9  ;;  %v3331_v52 = vpop.eup %3330 }
 0x51f   :  { %1422 = vrot.lane.b32.xlu1 %v3327_v57, %s3379_s7  ;;  %1671 = vrot.lane.b32.xlu2 %v3369_v16, %s3379_s7  ;;  %v1251_v16 = vld [vmem:[%s6856_s1 + $0x78] sm:$0xff] }
 0x520   :  { %3332 = vpow2.f32 %v1354_v26  ;;  %1420 = vrot.lane.b32.xlu0 %v3329_v11, %s3379_s7 }
 0x521   :  { %v1226_v44 = vpop.f32.mrf.mxu2 }
 0x522   :  { %v5084_v0 = vadd.f32 %v4799_v38, %v1226_v44  ;;  %v3374_v44 = vld [vmem:[%s6854_s0 + $0xe0] sm:$0xff] }
 0x524   :  { %v1296_v27 = vmul.f32 0.5, %v5084_v0 }
 0x526   :  { %v3333_v47 = vpop.eup %3332  ;;  %v1356_v25 = vmul.f32 1.442695, %v1296_v27 }
 0x527   :  { %1645 = vrot.lane.b32.xlu1 %v3370_v41, %s3379_s7  ;;  %1448 = vrot.lane.b32.xlu2 %v3331_v52, %s3379_s7 }
 0x528   :  { %1450 = vrot.lane.b32.xlu0 %v3333_v47, %s3379_s7  ;;  %3334 = vpow2.f32 %v1356_v25 }
 0x529   :  { %v1228_v15 = vpop.f32.mrf.mxu2 }
 0x52a   :  { %v5094_v50 = vadd.f32 %v4799_v38, %v1228_v15 }
 0x52c   :  { %v1297_v36 = vmul.f32 0.5, %v5094_v50 }
 0x52e   :  { %v1358_v49 = vmul.f32 1.442695, %v1297_v36  ;;  %v3335_v9 = vpop.eup %3334 }
 0x52f   :  { %1675 = vrot.lane.b32.xlu1 %v3371_v10, %s3379_s7  ;;  %1647 = vrot.lane.b32.xlu2 %v3372_v7, %s3379_s7 }
 0x530   :  { %3336 = vpow2.f32 %v1358_v49  ;;  %1673 = vrot.lane.b32.xlu0 %v3373_v58, %s3379_s7 }
 0x531   :  { %v1231_v55 = vpop.f32.mrf.mxu2  ;;  %v1425_v32 = vpop.permute.xlu1 %1424 }
 0x532   :  { %v5116_v53 = vadd.f32 %v4799_v38, %v1231_v55  ;;  %v1506_v56 = vmul.f32 %v1425_v32, %v1250_v40  ;;  %v1431_v61 = vpop.permute.xlu2 %1430  ;;  %v3376_v32 = vld [vmem:[%s6854_s0 + $0xf0] sm:$0xff] }
 0x533   :  { %v1509_v35 = vmul.f32 %v1431_v61, %v1253_v62  ;;  %v1243_v61 = vld [vmem:[%s6856_s1 + $0x38] sm:$0xff] }
 0x534   :  { %v1298_v20 = vmul.f32 0.5, %v5116_v53  ;;  %v1538_v42 = vadd.f32 %v1506_v56, %v4876_v33 }
 0x535   :  { %v1541_v57 = vadd.f32 %v1509_v35, %v4913_v23  ;;  %v3377_v35 = vld [vmem:[%s6854_s0 + $0xf8] sm:$0xff] }
 0x536   :  { %v3337_v26 = vpop.eup %3336  ;;  %v1360_v11 = vmul.f32 1.442695, %v1298_v20  ;;  %1571 = vst.msk [vmem:[#allocation2 + $0x70] sm:$0xff] %vm1556_vm11, %v1538_v42  ;;  %v1662_v20 = vpop.permute.xlu0 %1661 }
 0x537   :  { %1732 = vst.msk [vmem:[#allocation2 + $0x70] sm:$0xff] %vm1717_vm12, %v4865_v24  ;;  %1452 = vrot.lane.b32.xlu2 %v3335_v9, %s3379_s7  ;;  %1677 = vrot.lane.b32.xlu1 %v3374_v44, %s3379_s7  ;;  %v1256_v44 = vld [vmem:[%s6856_s1 + $0xa0] sm:$0xff] }
 0x538   :  { %3338 = vpow2.f32 %v1360_v11  ;;  %1574 = vst.msk [vmem:[#allocation2 + $0x88] sm:$0xff] %vm1556_vm11, %v1541_v57  ;;  %1454 = vrot.lane.b32.xlu0 %v3337_v26, %s3379_s7 }
 0x539   :  { %1735 = vst.msk [vmem:[#allocation2 + $0x88] sm:$0xff] %vm1717_vm12, %v4879_v30  ;;  %v1233_v24 = vpop.f32.mrf.mxu2  ;;  %v1427_v52 = vpop.permute.xlu1 %1426  ;;  %v3375_v30 = vld [vmem:[%s6854_s0 + $0xe8] sm:$0xff]  ;;  %s3380_s0 = smov 6  }
 0x53a   :  { %v5137_v47 = vadd.f32 %v4799_v38, %v1233_v24  ;;  %v1507_v27 = vmul.f32 %v1427_v52, %v1251_v16  ;;  %v5139_v41 = vpop.permute.xlu2 %1659  ;;  %v1252_v38 = vld [vmem:[%s6856_s1 + $0x80] sm:$0xff]  ;;  %v1254_v24 = vld [vmem:[%s6856_s1 + $0x90] sm:$0xff] }
 0x53c   :  { %v1299_v15 = vmul.f32 0.5, %v5137_v47  ;;  %v1539_v25 = vadd.f32 %v1507_v27, %v4885_v2 }
 0x53e   :  { %v3339_v36 = vpop.eup %3338  ;;  %v1362_v49 = vmul.f32 1.442695, %v1299_v15  ;;  %1572 = vst.msk [vmem:[#allocation2 + $0x78] sm:$0xff] %vm1556_vm11, %v1539_v25 }
 0x53f   :  { %1733 = vst.msk [vmem:[#allocation2 + $0x78] sm:$0xff] %vm1717_vm12, %v4901_v4  ;;  %1679 = vrot.lane.b32.xlu2 %v3375_v30, %s3379_s7  ;;  %v1764_v4 = vld [vmem:[#allocation2 + $0x70] sm:$0xff]  ;;  %v1255_v30 = vld [vmem:[%s6856_s1 + $0x98] sm:$0xff] }
 0x540   :  { %3340 = vpow2.f32 %v1362_v49  ;;  %1456 = vrot.lane.b32.xlu0 %v3339_v36, %s3379_s7  ;;  %v1767_v49 = vld [vmem:[#allocation2 + $0x88] sm:$0xff] }
 0x541   :  { %v1429_v10 = vpop.permute.xlu1 %1428 }
 0x542   :  { %v1508_v7 = vmul.f32 %v1429_v10, %v1252_v38  ;;  %v1636_v40 = vpop.permute.xlu2 %1635 }
 0x544   :  { %v1540_v58 = vadd.f32 %v1508_v7, %v4896_v18  ;;  %v1245_v7 = vld [vmem:[%s6856_s1 + $0x48] sm:$0xff] }
 0x546   :  { %v3341_v62 = vpop.eup %3340  ;;  %1573 = vst.msk [vmem:[#allocation2 + $0x80] sm:$0xff] %vm1556_vm11, %v1540_v58  ;;  %v1765_v55 = vld [vmem:[#allocation2 + $0x78] sm:$0xff] }
 0x547   :  { %1734 = vst.msk [vmem:[#allocation2 + $0x80] sm:$0xff] %vm1717_vm12, %v4867_v48  ;;  %1458 = vrot.lane.b32.xlu1 %v3341_v62, %s3379_s7  ;;  %1681 = vrot.lane.b32.xlu2 %v3376_v32, %s3379_s7  ;;  %v1791_v56 = vpack.c.bf16 %v1765_v55, %v1764_v4  ;;  %v1244_v48 = vld [vmem:[%s6856_s1 + $0x40] sm:$0xff] }
 0x548   :  { %1683 = vrot.lane.b32.xlu0 %v3377_v35, %s3379_s7 }
 0x549   :  { %3212 = vmatmul.msk.bf16.vlgmr.msra.gmra.mxu3 %vm1802_vm13, %v1791_v56  ;;  %v1411_v42 = vpop.permute.xlu1 %1410 }
 0x54a   :  { %v1499_v9 = vmul.f32 %v1411_v42, %v1243_v61  ;;  %v1413_v57 = vpop.permute.xlu2 %1412 }
 0x54b   :  { %v1500_v26 = vmul.f32 %v1413_v57, %v1244_v48 }
 0x54c   :  { %v1531_v11 = vadd.f32 %v1499_v9, %v4899_v54 }
 0x54d   :  { %v1532_v16 = vadd.f32 %v1500_v26, %v4947_v13 }
 0x54e   :  { %1564 = vst.msk [vmem:[#allocation2 + $0x38] sm:$0xff] %vm1556_vm11, %v1531_v11  ;;  %v1766_v25 = vld [vmem:[#allocation2 + $0x80] sm:$0xff] }
 0x54f   :  { %1725 = vst.msk [vmem:[#allocation2 + $0x38] sm:$0xff] %vm1717_vm12, %v1636_v40  ;;  %3026 = vrot.lane.b32.xlu2 %v4806_v39, %s3380_s0  ;;  %3024 = vrot.lane.b32.xlu1 %v4802_v45, %s3380_s0  ;;  %v1792_v38 = vpack.c.bf16 %v1767_v49, %v1766_v25 }
 0x550   :  { %1565 = vst.msk [vmem:[#allocation2 + $0x40] sm:$0xff] %vm1556_vm11, %v1532_v16  ;;  %3028 = vrot.lane.b32.xlu0 %v4812_v6, %s3380_s0 }
 0x551   :  { %v1634_v52 = vpop.permute.xlu1 %1633 }
 0x552   :  { %1724 = vst.msk [vmem:[#allocation2 + $0x30] sm:$0xff] %vm1717_vm12, %v1634_v52  ;;  %v1437_v39 = vpop.permute.xlu2 %1436  ;;  %v1433_v27 = vpop.permute.xlu0 %1432 }
 0x553   :  { %v1512_v15 = vmul.f32 %v1437_v39, %v1256_v44  ;;  %v1510_v45 = vmul.f32 %v1433_v27, %v1254_v24  ;;  %v1246_v44 = vld [vmem:[%s6856_s1 + $0x50] sm:$0xff] }
 0x555   :  { %v1544_v36 = vadd.f32 %v1512_v15, %v4967_v51  ;;  %v1542_v6 = vadd.f32 %v1510_v45, %v4924_v21 }
 0x556   :  { %v1757_v10 = vld [vmem:[#allocation2 + $0x38] sm:$0xff] }
 0x557   :  { %1577 = vst.msk [vmem:[#allocation2 + $0xa0] sm:$0xff] %vm1556_vm11, %v1544_v36  ;;  %3032 = vrot.lane.b32.xlu2 %v4828_v37, %s3380_s0  ;;  %3030 = vrot.lane.b32.xlu1 %v4817_v60, %s3380_s0 }
 0x558   :  { %1738 = vst.msk [vmem:[#allocation2 + $0xa0] sm:$0xff] %vm1717_vm12, %v1662_v20  ;;  %3034 = vrot.lane.b32.xlu0 %v4833_v22, %s3380_s0 }
 0x559   :  { %1575 = vst.msk [vmem:[#allocation2 + $0x90] sm:$0xff] %vm1556_vm11, %v1542_v6  ;;  %v1435_v37 = vpop.permute.xlu1 %1434  ;;  %3213 = vmatmul.msk.bf16.gmra.mxu3 %vm1802_vm13, %v1792_v38  ;;  %v1756_v60 = vld [vmem:[#allocation2 + $0x30] sm:$0xff] }
 0x55a   :  { %1736 = vst.msk [vmem:[#allocation2 + $0x90] sm:$0xff] %vm1717_vm12, %v4936_v28  ;;  %v1511_v40 = vmul.f32 %v1435_v37, %v1255_v30  ;;  %v5212_v58 = vpop.permute.xlu2 %1665  ;;  %v1415_v62 = vpop.permute.xlu0 %1414  ;;  %v1787_v4 = vpack.c.bf16 %v1757_v10, %v1756_v60  ;;  %v1259_v28 = vld [vmem:[%s6856_s1 + $0xb8] sm:$0xff] }
 0x55b   :  { %v1501_v55 = vmul.f32 %v1415_v62, %v1245_v7  ;;  %v1260_v62 = vld [vmem:[%s6856_s1 + $0xc0] sm:$0xff] }
 0x55c   :  { %v1543_v22 = vadd.f32 %v1511_v40, %v4943_v1  ;;  %3208 = vmatmul.msk.bf16.gmra.mxu2 %vm1802_vm13, %v1787_v4 }
 0x55d   :  { %v1533_v32 = vadd.f32 %v1501_v55, %v4930_v46 }
 0x55e   :  { %1576 = vst.msk [vmem:[#allocation2 + $0x98] sm:$0xff] %vm1556_vm11, %v1543_v22 }
 0x55f   :  { %1737 = vst.msk [vmem:[#allocation2 + $0x98] sm:$0xff] %vm1717_vm12, %v5139_v41  ;;  %3038 = vrot.lane.b32.xlu2 %v4899_v54, %s3380_s0  ;;  %3036 = vrot.lane.b32.xlu1 %v4840_v12, %s3380_s0  ;;  %v1247_v54 = vld [vmem:[%s6856_s1 + $0x58] sm:$0xff]  ;;  %v1770_v15 = vld [vmem:[#allocation2 + $0xa0] sm:$0xff] }
 0x560   :  { %1566 = vst.msk [vmem:[#allocation2 + $0x48] sm:$0xff] %vm1556_vm11, %v1533_v32  ;;  %3040 = vrot.lane.b32.xlu0 %v4947_v13, %s3380_s0  ;;  %v1257_v13 = vld [vmem:[%s6856_s1 + $0xa8] sm:$0xff] }
 0x561   :  { %v1664_v56 = vpop.permute.xlu1 %1663  ;;  %v1768_v48 = vld [vmem:[#allocation2 + $0x90] sm:$0xff] }
 0x562   :  { %v1443_v61 = vpop.permute.xlu2 %1442 }
 0x563   :  { %v1515_v35 = vmul.f32 %v1443_v61, %v1259_v28 }
 0x565   :  { %v1547_v41 = vadd.f32 %v1515_v35, %v5012_v5 }
 0x566   :  { %v1769_v20 = vld [vmem:[#allocation2 + $0x98] sm:$0xff] }
 0x567   :  { %1580 = vst.msk [vmem:[#allocation2 + $0xb8] sm:$0xff] %vm1556_vm11, %v1547_v41  ;;  %3044 = vrot.lane.b32.xlu2 %v4986_v19, %s3380_s0  ;;  %3042 = vrot.lane.b32.xlu1 %v4930_v46, %s3380_s0  ;;  %v1793_v12 = vpack.c.bf16 %v1769_v20, %v1768_v48  ;;  %v1264_v41 = vld [vmem:[%s6856_s1 + $0xe0] sm:$0xff] }
 0x568   :  { %3046 = vrot.lane.b32.xlu0 %v5016_v63, %s3380_s0 }
 0x569   :  { %v1640_v42 = vpop.permute.xlu1 %1639  ;;  %3214 = vmatmul.msk.bf16.gmra.mxu3 %vm1802_vm13, %v1793_v12 }
 0x56a   :  { %1727 = vst.msk [vmem:[#allocation2 + $0x48] sm:$0xff] %vm1717_vm12, %v1640_v42  ;;  %v1419_v9 = vpop.permute.xlu2 %1418  ;;  %v1439_v57 = vpop.permute.xlu0 %1438 }
 0x56b   :  { %v1503_v46 = vmul.f32 %v1419_v9, %v1247_v54  ;;  %v1513_v26 = vmul.f32 %v1439_v57, %v1257_v13 }
 0x56d   :  { %v1535_v11 = vadd.f32 %v1503_v46, %v5016_v63  ;;  %v1545_v16 = vadd.f32 %v1513_v26, %v4982_v29 }
 0x56f   :  { %1568 = vst.msk [vmem:[#allocation2 + $0x58] sm:$0xff] %vm1556_vm11, %v1535_v11  ;;  %3050 = vrot.lane.b32.xlu2 %v5045_v14, %s3380_s0  ;;  %3048 = vrot.lane.b32.xlu1 %v5050_v17, %s3380_s0 }
 0x570   :  { %1578 = vst.msk [vmem:[#allocation2 + $0xa8] sm:$0xff] %vm1556_vm11, %v1545_v16  ;;  %3052 = vrot.lane.b32.xlu0 %v4876_v33, %s3380_s0  ;;  %v1258_v33 = vld [vmem:[%s6856_s1 + $0xb0] sm:$0xff] }
 0x571   :  { %1739 = vst.msk [vmem:[#allocation2 + $0xa8] sm:$0xff] %vm1717_vm12, %v1664_v56  ;;  %v1417_v63 = vpop.permute.xlu1 %1416  ;;  %v1759_v38 = vld [vmem:[#allocation2 + $0x48] sm:$0xff] }
 0x572   :  { %v1502_v24 = vmul.f32 %v1417_v63, %v1246_v44  ;;  %v1642_v52 = vpop.permute.xlu2 %1641  ;;  %v1638_v39 = vpop.permute.xlu0 %1637 }
 0x573   :  { %1726 = vst.msk [vmem:[#allocation2 + $0x40] sm:$0xff] %vm1717_vm12, %v1638_v39 }
 0x574   :  { %v1534_v27 = vadd.f32 %v1502_v24, %v4986_v19 }
 0x576   :  { %1567 = vst.msk [vmem:[#allocation2 + $0x50] sm:$0xff] %vm1556_vm11, %v1534_v27 }
 0x577   :  { %1728 = vst.msk [vmem:[#allocation2 + $0x50] sm:$0xff] %vm1717_vm12, %v1642_v52  ;;  %3056 = vrot.lane.b32.xlu2 %v4896_v18, %s3380_s0  ;;  %3054 = vrot.lane.b32.xlu1 %v4885_v2, %s3380_s0 }
 0x578   :  { %3058 = vrot.lane.b32.xlu0 %v4913_v23, %s3380_s0  ;;  %v1771_v45 = vld [vmem:[#allocation2 + $0xa8] sm:$0xff]  ;;  %v1262_v23 = vld [vmem:[%s6856_s1 + $0xd0] sm:$0xff] }
 0x579   :  { %v1441_v19 = vpop.permute.xlu1 %1440  ;;  %v1794_v25 = vpack.c.bf16 %v1771_v45, %v1770_v15 }
 0x57a   :  { %v1514_v36 = vmul.f32 %v1441_v19, %v1258_v33  ;;  %v1672_v6 = vpop.permute.xlu2 %1671  ;;  %v1668_v49 = vpop.permute.xlu0 %1667  ;;  %v1758_v30 = vld [vmem:[#allocation2 + $0x40] sm:$0xff] }
 0x57b   :  { %3215 = vmatmul.msk.bf16.gmra.mxu3 %vm1802_vm13, %v1794_v25  ;;  %1741 = vst.msk [vmem:[#allocation2 + $0xb8] sm:$0xff] %vm1717_vm12, %v1668_v49  ;;  %v1788_v2 = vpack.c.bf16 %v1759_v38, %v1758_v30  ;;  %v1266_v49 = vld [vmem:[%s6856_s1 + $0xf0] sm:$0xff] }
 0x57c   :  { %v1546_v18 = vadd.f32 %v1514_v36, %v4999_v8 }
 0x57d   :  { %3209 = vmatmul.msk.bf16.gmra.mxu2 %vm1802_vm13, %v1788_v2  ;;  %v1864_v2 = vpop.f32.mrf.mxu2 }
 0x57e   :  { %1579 = vst.msk [vmem:[#allocation2 + $0xb0] sm:$0xff] %vm1556_vm11, %v1546_v18  ;;  %v1760_v4 = vld [vmem:[#allocation2 + $0x50] sm:$0xff] }
 0x57f   :  { %1740 = vst.msk [vmem:[#allocation2 + $0xb0] sm:$0xff] %vm1717_vm12, %v5212_v58  ;;  %3062 = vrot.lane.b32.xlu2 %v4943_v1, %s3380_s0  ;;  %3060 = vrot.lane.b32.xlu1 %v4924_v21, %s3380_s0  ;;  %v1261_v21 = vld [vmem:[%s6856_s1 + $0xc8] sm:$0xff] }
 0x580   :  { %3064 = vrot.lane.b32.xlu0 %v4967_v51, %s3380_s0 }
 0x581   :  { %v1670_v10 = vpop.permute.xlu1 %1669 }
 0x582   :  { %v1449_v7 = vpop.permute.xlu2 %1448  ;;  %v1644_v37 = vpop.permute.xlu0 %1643  ;;  %v1773_v1 = vld [vmem:[#allocation2 + $0xb8] sm:$0xff] }
 0x583   :  { %v1518_v60 = vmul.f32 %v1449_v7, %v1262_v23  ;;  %1729 = vst.msk [vmem:[#allocation2 + $0x58] sm:$0xff] %vm1717_vm12, %v1644_v37 }
 0x585   :  { %v1550_v40 = vadd.f32 %v1518_v60, %v5064_v59 }
 0x586   :  { %v1772_v58 = vld [vmem:[#allocation2 + $0xb0] sm:$0xff] }
 0x587   :  { %1583 = vst.msk [vmem:[#allocation2 + $0xd0] sm:$0xff] %vm1556_vm11, %v1550_v40  ;;  %3068 = vrot.lane.b32.xlu2 %v4999_v8, %s3380_s0  ;;  %3066 = vrot.lane.b32.xlu1 %v4982_v29, %s3380_s0  ;;  %v1795_v51 = vpack.c.bf16 %v1773_v1, %v1772_v58  ;;  %v1866_v1 = vpop.f32.mrf.mxu2 }
 0x588   :  { %3070 = vrot.lane.b32.xlu0 %v5012_v5, %s3380_s0  ;;  %v1249_v5 = vld [vmem:[%s6856_s1 + $0x68] sm:$0xff] }
 0x589   :  { %v1447_v55 = vpop.permute.xlu1 %1446 }
 0x58a   :  { %v1517_v22 = vmul.f32 %v1447_v55, %v1261_v21  ;;  %v1648_v32 = vpop.permute.xlu2 %1647  ;;  %v1445_v8 = vpop.permute.xlu0 %1444  ;;  %v1761_v28 = vld [vmem:[#allocation2 + $0x58] sm:$0xff] }
 0x58b   :  { %3216 = vmatmul.msk.bf16.gmra.mxu3 %vm1802_vm13, %v1795_v51  ;;  %v1516_v29 = vmul.f32 %v1445_v8, %v1260_v62  ;;  %v1789_v56 = vpack.c.bf16 %v1761_v28, %v1760_v4 }
 0x58c   :  { %v1549_v61 = vadd.f32 %v1517_v22, %v5041_v31 }
 0x58d   :  { %v1548_v35 = vadd.f32 %v1516_v29, %v5031_v34  ;;  %3210 = vmatmul.msk.bf16.gmra.mxu2 %vm1802_vm13, %v1789_v56 }
 0x58e   :  { %1582 = vst.msk [vmem:[#allocation2 + $0xc8] sm:$0xff] %vm1556_vm11, %v1549_v61 }
 0x58f   :  { %1743 = vst.msk [vmem:[#allocation2 + $0xc8] sm:$0xff] %vm1717_vm12, %v1672_v6  ;;  %3074 = vrot.lane.b32.xlu2 %v5041_v31, %s3380_s0  ;;  %3072 = vrot.lane.b32.xlu1 %v5031_v34, %s3380_s0  ;;  %v1248_v31 = vld [vmem:[%s6856_s1 + $0x60] sm:$0xff]  ;;  %v1869_v62 = vpop.f32.mrf.mxu2 }
 0x590   :  { %1581 = vst.msk [vmem:[#allocation2 + $0xc0] sm:$0xff] %vm1556_vm11, %v1548_v35  ;;  %3076 = vrot.lane.b32.xlu0 %v5064_v59, %s3380_s0 }
 0x591   :  { %1742 = vst.msk [vmem:[#allocation2 + $0xc0] sm:$0xff] %vm1717_vm12, %v1670_v10  ;;  %v1423_v34 = vpop.permute.xlu1 %1422 }
 0x592   :  { %v1505_v48 = vmul.f32 %v1423_v34, %v1249_v5  ;;  %v1453_v20 = vpop.permute.xlu2 %1452  ;;  %v1421_v12 = vpop.permute.xlu0 %1420 }
 0x593   :  { %v1520_v54 = vmul.f32 %v1453_v20, %v1264_v41  ;;  %v1504_v13 = vmul.f32 %v1421_v12, %v1248_v31 }
 0x594   :  { %v1537_v42 = vadd.f32 %v1505_v48, %v5045_v14  ;;  %v5393_v48 = vld [vmem:[%s6855_s3 + $0x7] ss:$0 sm:$0xff] }
 0x595   :  { %v1552_v59 = vadd.f32 %v1520_v54, %v5084_v0  ;;  %v1536_v9 = vadd.f32 %v1504_v13, %v5050_v17  ;;  %v1263_v17 = vld [vmem:[%s6856_s1 + $0xd8] sm:$0xff]  ;;  %v5396_v12 = vadd.f32 %v5393_v48, %v1864_v2  ;;  %v5399_v54 = vadd.f32 %v5393_v48, %v1866_v1 }
 0x596   :  { %1570 = vst.msk [vmem:[#allocation2 + $0x68] sm:$0xff] %vm1556_vm11, %v1537_v42  ;;  %v1775_v57 = vld [vmem:[#allocation2 + $0xc8] sm:$0xff] }
 0x597   :  { %1731 = vst.msk [vmem:[#allocation2 + $0x68] sm:$0xff] %vm1717_vm12, %v1648_v32  ;;  %3080 = vrot.lane.b32.xlu2 %v5084_v0, %s3380_s0  ;;  %3078 = vrot.lane.b32.xlu1 %v5074_v3, %s3380_s0  ;;  %v1871_v22 = vpop.f32.mrf.mxu2  ;;  %v1946_v42 = vsel %vm214_vm2, %v5396_v12, 0.0 }
 0x598   :  { %1585 = vst.msk [vmem:[#allocation2 + $0xe0] sm:$0xff] %vm1556_vm11, %v1552_v59  ;;  %3082 = vrot.lane.b32.xlu0 %v5094_v50, %s3380_s0  ;;  %v1774_v14 = vld [vmem:[#allocation2 + $0xc0] sm:$0xff]  ;;  %v1947_v59 = vsel %vm214_vm2, %v5399_v54, 0.0 }
 0x599   :  { %1569 = vst.msk [vmem:[#allocation2 + $0x60] sm:$0xff] %vm1556_vm11, %v1536_v9  ;;  %v1646_v46 = vpop.permute.xlu1 %1645  ;;  %v1796_v26 = vpack.c.bf16 %v1775_v57, %v1774_v14  ;;  %v5408_v9 = vadd.f32 %v5393_v48, %v1869_v62  ;;  %v1948_v57 = vadd.f32 %v1947_v59, %v1946_v42 }
 0x59a   :  { %1730 = vst.msk [vmem:[#allocation2 + $0x60] sm:$0xff] %vm1717_vm12, %v1646_v46  ;;  %v1451_v0 = vpop.permute.xlu0 %1450  ;;  %v1680_v36 = vpop.permute.xlu2 %1679 }
 0x59b   :  { %3217 = vmatmul.msk.bf16.gmra.mxu3 %vm1802_vm13, %v1796_v26  ;;  %v1519_v11 = vmul.f32 %v1451_v0, %v1263_v17  ;;  %v1949_v14 = vsel %vm214_vm2, %v5408_v9, 0.0  ;;  %v5413_v17 = vadd.f32 %v5393_v48, %v1871_v22 }
 0x59c   :  { %v1950_v0 = vadd.f32 %v1949_v14, %v1948_v57 }
 0x59d   :  { %v1551_v16 = vadd.f32 %v1519_v11, %v5074_v3  ;;  %v1265_v3 = vld [vmem:[%s6856_s1 + $0xe8] sm:$0xff]  ;;  %v1951_v11 = vsel %vm214_vm2, %v5413_v17, 0.0 }
 0x59e   :  { %v1763_v44 = vld [vmem:[#allocation2 + $0x68] sm:$0xff] }
 0x59f   :  { %1584 = vst.msk [vmem:[#allocation2 + $0xd8] sm:$0xff] %vm1556_vm11, %v1551_v16  ;;  %3086 = vrot.lane.b32.xlu2 %v5137_v47, %s3380_s0  ;;  %3084 = vrot.lane.b32.xlu1 %v5116_v53, %s3380_s0 }
 0x5a1   :  { %v1676_v63 = vpop.permute.xlu1 %1675  ;;  %v1762_v24 = vld [vmem:[#allocation2 + $0x60] sm:$0xff] }
 0x5a2   :  { %1745 = vst.msk [vmem:[#allocation2 + $0xd8] sm:$0xff] %vm1717_vm12, %v1676_v63  ;;  %v1674_v52 = vpop.permute.xlu0 %1673  ;;  %v1790_v39 = vpack.c.bf16 %v1763_v44, %v1762_v24  ;;  %v1682_v10 = vpop.permute.xlu2 %1681  ;;  %v1952_v44 = vadd.f32 %v1951_v11, %v1950_v0 }
 0x5a3   :  { %1744 = vst.msk [vmem:[#allocation2 + $0xd0] sm:$0xff] %vm1717_vm12, %v1674_v52 }
 0x5a4   :  { %3211 = vmatmul.msk.bf16.gmra.mxu2 %vm1802_vm13, %v1790_v39 }
 0x5a9   :  { %v1777_v27 = vld [vmem:[#allocation2 + $0xd8] sm:$0xff]  ;;  %v1678_v33 = vpop.permute.xlu1 %1677 }
 0x5aa   :  { %v1455_v15 = vpop.permute.xlu0 %1454  ;;  %v1776_v45 = vld [vmem:[#allocation2 + $0xd0] sm:$0xff]  ;;  %1746 = vst.msk [vmem:[#allocation2 + $0xe0] sm:$0xff] %vm1717_vm12, %v1678_v33 }
 0x5ab   :  { %v1521_v19 = vmul.f32 %v1455_v15, %v1265_v3  ;;  %v1797_v25 = vpack.c.bf16 %v1777_v27, %v1776_v45 }
 0x5ad   :  { %v1553_v6 = vadd.f32 %v1521_v19, %v5094_v50  ;;  %3218 = vmatmul.msk.bf16.gmra.mxu3 %vm1802_vm13, %v1797_v25  ;;  %v1267_v50 = vld [vmem:[%s6856_s1 + $0xf8] sm:$0xff] }
 0x5af   :  { %1586 = vst.msk [vmem:[#allocation2 + $0xe8] sm:$0xff] %vm1556_vm11, %v1553_v6 }
 0x5b0   :  { %1747 = vst.msk [vmem:[#allocation2 + $0xe8] sm:$0xff] %vm1717_vm12, %v1680_v36 }
 0x5b1   :  { %v1778_v23 = vld [vmem:[#allocation2 + $0xe0] sm:$0xff] }
 0x5b2   :  { %v1457_v30 = vpop.permute.xlu0 %1456 }
 0x5b3   :  { %v1522_v38 = vmul.f32 %v1457_v30, %v1266_v49 }
 0x5b5   :  { %v1554_v18 = vadd.f32 %v1522_v38, %v5116_v53 }
 0x5b7   :  { %1587 = vst.msk [vmem:[#allocation2 + $0xf0] sm:$0xff] %vm1556_vm11, %v1554_v18  ;;  %v1779_v7 = vld [vmem:[#allocation2 + $0xe8] sm:$0xff] }
 0x5b8   :  { %1748 = vst.msk [vmem:[#allocation2 + $0xf0] sm:$0xff] %vm1717_vm12, %v1682_v10  ;;  %v1798_v60 = vpack.c.bf16 %v1779_v7, %v1778_v23 }
 0x5b9   :  { %v1459_v37 = vpop.permute.xlu1 %1458 }
 0x5ba   :  { %v1523_v40 = vmul.f32 %v1459_v37, %v1267_v50  ;;  %v1684_v53 = vpop.permute.xlu0 %1683 }
 0x5bc   :  { %v1555_v58 = vadd.f32 %v1523_v40, %v5137_v47  ;;  %v1874_v47 = vpop.f32.mrf.mxu2 }
 0x5bd   :  { %3219 = vmatmul.msk.bf16.gmra.mxu3 %vm1802_vm13, %v1798_v60  ;;  %v5420_v16 = vadd.f32 %v5393_v48, %v1874_v47 }
 0x5be   :  { %1588 = vst.msk [vmem:[#allocation2 + $0xf8] sm:$0xff] %vm1556_vm11, %v1555_v58 }
 0x5bf   :  { %1749 = vst.msk [vmem:[#allocation2 + $0xf8] sm:$0xff] %vm1717_vm12, %v1684_v53  ;;  %v1780_v21 = vld [vmem:[#allocation2 + $0xf0] sm:$0xff]  ;;  %v1953_v63 = vsel %vm214_vm2, %v5420_v16, 0.0 }
 0x5c0   :  { %v1954_v3 = vadd.f32 %v1953_v63, %v1952_v44 }
 0x5c4   :  { %v1876_v29 = vpop.f32.mrf.mxu2 }
 0x5c5   :  { %v5425_v24 = vadd.f32 %v5393_v48, %v1876_v29 }
 0x5c6   :  { %v1781_v51 = vld [vmem:[#allocation2 + $0xf8] sm:$0xff] }
 0x5c7   :  { %v1799_v4 = vpack.c.bf16 %v1781_v51, %v1780_v21  ;;  %v1955_v33 = vsel %vm214_vm2, %v5425_v24, 0.0 }
 0x5c8   :  { %v1956_v25 = vadd.f32 %v1955_v33, %v1954_v3 }
 0x5cc   :  { %v1899_v55 = vpop.f32.mrf.mxu3 }
 0x5cd   :  { %3220 = vmatmul.msk.bf16.gmra.mxu3 %vm1802_vm13, %v1799_v4  ;;  %v5467_v62 = vadd.f32 %v5393_v48, %v1899_v55  ;;  %v2294_v55 = vld [vmem:[%s6853_s2 + $0x68] sm:$0xff] }
 0x5d4   :  { %v5376_v32 = vpop.f32.mrf.mxu3 }
 0x5d5   :  { %v5474_v29 = vadd.f32 %v5393_v48, %v5376_v32 }
 0x5d7   :  { %v1975_v57 = vsel %vm214_vm2, %v5474_v29, 0.0 }
 0x5dc   :  { %v5378_v8 = vpop.f32.mrf.mxu3 }
 0x5dd   :  { %v5488_v42 = vadd.f32 %v5393_v48, %v5378_v8 }
 0x5df   :  { %v1879_v61 = vpop.f32.mrf.mxu2  ;;  %v1977_v0 = vsel %vm214_vm2, %v5488_v42, 0.0 }
 0x5e0   :  { %v5428_v52 = vadd.f32 %v5393_v48, %v1879_v61 }
 0x5e2   :  { %v1957_v45 = vsel %vm214_vm2, %v5428_v52, 0.0 }
 0x5e3   :  { %v1958_v49 = vadd.f32 %v1957_v45, %v1956_v25 }
 0x5e4   :  { %v5380_v28 = vpop.f32.mrf.mxu3 }
 0x5e5   :  { %v5494_v14 = vadd.f32 %v5393_v48, %v5380_v28 }
 0x5e7   :  { %v1881_v5 = vpop.f32.mrf.mxu2  ;;  %v1979_v63 = vsel %vm214_vm2, %v5494_v14, 0.0 }
 0x5e8   :  { %v5435_v15 = vadd.f32 %v5393_v48, %v1881_v5 }
 0x5ea   :  { %v1959_v36 = vsel %vm214_vm2, %v5435_v15, 0.0 }
 0x5eb   :  { %v1960_v2 = vadd.f32 %v1959_v36, %v1958_v49 }
 0x5ec   :  { %v5382_v56 = vpop.f32.mrf.mxu3 }
 0x5ed   :  { %v5500_v11 = vadd.f32 %v5393_v48, %v5382_v56 }
 0x5f4   :  { %v5384_v35 = vpop.f32.mrf.mxu3 }
 0x5f5   :  { %v5506_v3 = vadd.f32 %v5393_v48, %v5384_v35 }
 0x5f7   :  { %v1983_v56 = vsel %vm214_vm2, %v5506_v3, 0.0 }
 0x5fe   :  { %v5386_v41 = vpop.f32.mrf.mxu3 }
 0x5ff   :  { %v5512_v33 = vadd.f32 %v5393_v48, %v5386_v41 }
 0x600   :  { %v1884_v31 = vpop.f32.mrf.mxu2 }
 0x601   :  { %v5440_v19 = vadd.f32 %v5393_v48, %v1884_v31  ;;  %v2293_v31 = vld [vmem:[%s6853_s2 + $0x60] sm:$0xff]  ;;  %v1985_v35 = vsel %vm214_vm2, %v5512_v33, 0.0 }
 0x602   :  { %v2296_v32 = vpack.c.bf16 %v2294_v55, %v2293_v31 }
 0x603   :  { %v1961_v30 = vsel %vm214_vm2, %v5440_v19, 0.0 }
 0x604   :  { %v1962_v7 = vadd.f32 %v1961_v30, %v1960_v2  ;;  %2369 = vmatpush.bf16.msrb.mxu0 %v2296_v32 }
 0x606   :  { %v5388_v34 = vpop.f32.mrf.mxu3 }
 0x607   :  { %v5518_v25 = vadd.f32 %v5393_v48, %v5388_v34 }
 0x608   :  { %v1886_v20 = vpop.f32.mrf.mxu2 }
 0x609   :  { %v5445_v6 = vadd.f32 %v5393_v48, %v1886_v20  ;;  %v1973_v20 = vsel %vm214_vm2, %v5467_v62, 0.0  ;;  %v1987_v41 = vsel %vm214_vm2, %v5518_v25, 0.0 }
 0x60b   :  { %v1963_v23 = vsel %vm214_vm2, %v5445_v6, 0.0 }
 0x60c   :  { %v1964_v40 = vadd.f32 %v1963_v23, %v1962_v7 }
 0x60e   :  { %v5401_v13 = vpop.f32.mrf.mxu3 }
 0x60f   :  { %v5524_v49 = vadd.f32 %v5393_v48, %v5401_v13 }
 0x610   :  { %v1889_v46 = vpop.f32.mrf.mxu2 }
 0x611   :  { %v5450_v38 = vadd.f32 %v5393_v48, %v1889_v46  ;;  %v1989_v34 = vsel %vm214_vm2, %v5524_v49, 0.0 }
 0x613   :  { %v1965_v37 = vsel %vm214_vm2, %v5450_v38, 0.0 }
 0x614   :  { %v1966_v53 = vadd.f32 %v1965_v37, %v1964_v40 }
 0x616   :  { %v5415_v26 = vpop.f32.mrf.mxu3 }
 0x618   :  { %v1891_v27 = vpop.f32.mrf.mxu2 }
 0x619   :  { %v5455_v10 = vadd.f32 %v5393_v48, %v1891_v27  ;;  %v1981_v27 = vsel %vm214_vm2, %v5500_v11, 0.0 }
 0x61b   :  { %v1967_v58 = vsel %vm214_vm2, %v5455_v10, 0.0 }
 0x61c   :  { %v1968_v21 = vadd.f32 %v1967_v58, %v1966_v53 }
 0x61e   :  { %v5430_v39 = vpop.f32.mrf.mxu3 }
 0x61f   :  { %v5536_v7 = vadd.f32 %v5393_v48, %v5430_v39 }
 0x626   :  { %v1926_v50 = vpop.f32.mrf.mxu3 }
 0x627   :  { %v1894_v18 = vpop.f32.mrf.mxu2  ;;  %v5541_v40 = vadd.f32 %v5393_v48, %v1926_v50 }
 0x628   :  { %v5460_v60 = vadd.f32 %v5393_v48, %v1894_v18  ;;  %v5530_v18 = vadd.f32 %v5393_v48, %v5415_v26  ;;  %v1993_v26 = vsel %vm214_vm2, %v5536_v7, 0.0 }
 0x629   :  { %v1995_v39 = vsel %vm214_vm2, %v5541_v40, 0.0 }
 0x62a   :  { %v1969_v1 = vsel %vm214_vm2, %v5460_v60, 0.0  ;;  %v1991_v13 = vsel %vm214_vm2, %v5530_v18, 0.0 }
 0x62b   :  { %v1970_v47 = vadd.f32 %v1969_v1, %v1968_v21 }
 0x62f   :  { %v1896_v51 = vpop.f32.mrf.mxu2 }
 0x630   :  { %v5470_v4 = vadd.f32 %v5393_v48, %v1896_v51  ;;  %v1929_v22 = vpop.f32.mrf.mxu3 }
 0x631   :  { %v5546_v53 = vadd.f32 %v5393_v48, %v1929_v22 }
 0x632   :  { %v1971_v61 = vsel %vm214_vm2, %v5470_v4, 0.0 }
 0x633   :  { %v1972_v5 = vadd.f32 %v1971_v61, %v1970_v47  ;;  %v1997_v50 = vsel %vm214_vm2, %v5546_v53, 0.0 }
 0x635   :  { %v1974_v59 = vadd.f32 %v1973_v20, %v1972_v5 }
 0x637   :  { %v1976_v46 = vadd.f32 %v1975_v57, %v1974_v59 }
 0x638   :  { %v1931_v8 = vpop.f32.mrf.mxu3 }
 0x639   :  { %v1978_v44 = vadd.f32 %v1977_v0, %v1976_v46  ;;  %v5551_v51 = vadd.f32 %v5393_v48, %v1931_v8 }
 0x63b   :  { %v1980_v28 = vadd.f32 %v1979_v63, %v1978_v44  ;;  %v1999_v22 = vsel %vm214_vm2, %v5551_v51, 0.0 }
 0x63d   :  { %v1982_v45 = vadd.f32 %v1981_v27, %v1980_v28 }
 0x63f   :  { %v1984_v36 = vadd.f32 %v1983_v56, %v1982_v45 }
 0x640   :  { %v1934_v30 = vpop.f32.mrf.mxu3 }
 0x641   :  { %v1986_v2 = vadd.f32 %v1985_v35, %v1984_v36  ;;  %v5556_v5 = vadd.f32 %v5393_v48, %v1934_v30 }
 0x643   :  { %v1988_v23 = vadd.f32 %v1987_v41, %v1986_v2  ;;  %v2001_v20 = vsel %vm214_vm2, %v5556_v5, 0.0 }
 0x645   :  { %v1990_v37 = vadd.f32 %v1989_v34, %v1988_v23 }
 0x647   :  { %v1992_v58 = vadd.f32 %v1991_v13, %v1990_v37 }
 0x648   :  { %v1936_v1 = vpop.f32.mrf.mxu3 }
 0x649   :  { %v1994_v21 = vadd.f32 %v1993_v26, %v1992_v58  ;;  %v5563_v32 = vadd.f32 %v5393_v48, %v1936_v1 }
 0x64b   :  { %v1996_v47 = vadd.f32 %v1995_v39, %v1994_v21  ;;  %v2003_v57 = vsel %vm214_vm2, %v5563_v32, 0.0 }
 0x64d   :  { %v1998_v61 = vadd.f32 %v1997_v50, %v1996_v47 }
 0x64f   :  { %v2000_v31 = vadd.f32 %v1999_v22, %v1998_v61 }
 0x650   :  { %v1939_v55 = vpop.f32.mrf.mxu3 }
 0x651   :  { %v2002_v59 = vadd.f32 %v2001_v20, %v2000_v31  ;;  %v5568_v46 = vadd.f32 %v5393_v48, %v1939_v55 }
 0x653   :  { %v2004_v0 = vadd.f32 %v2003_v57, %v2002_v59  ;;  %v2005_v44 = vsel %vm214_vm2, %v5568_v46, 0.0 }
 0x655   :  { %v2006_v28 = vadd.f32 %v2005_v44, %v2004_v0 }
 0x658   :  { %v1941_v8 = vpop.f32.mrf.mxu3 }
 0x659   :  { %v5573_v63 = vadd.f32 %v5393_v48, %v1941_v8 }
 0x65b   :  { %v2007_v27 = vsel %vm214_vm2, %v5573_v63, 0.0 }
 0x65c   :  { %v2008_v45 = vadd.f32 %v2007_v27, %v2006_v28 }
 0x65e   :  { %v2009_v56 = vrot.slane %v2008_v45, 4 }
 0x660   :  { %v2010_v36 = vadd.f32 %v2009_v56, %v2008_v45 }
 0x662   :  { %v2011_v35 = vrot.slane %v2010_v36, 2 }
 0x664   :  { %v2012_v30 = vadd.f32 %v2011_v35, %v2010_v36 }
 0x666   :  { %v2013_v2 = vrot.slane %v2012_v30, 1 }
 0x668   :  { %v2014_v41 = vadd.f32 %v2013_v2, %v2012_v30 }
 0x66a   :  { %v5578_v23 = vmul.f32 %v2014_v41, %v3713_v43 }
 0x66c   :  { %v5582_v34 = vsub.f32 %v5396_v12, %v5578_v23  ;;  %v5586_v48 = vsub.f32 %v5399_v54, %v5578_v23  ;;  %v5590_v37 = vsub.f32 %v5408_v9, %v5578_v23  ;;  %v5594_v13 = vsub.f32 %v5413_v17, %v5578_v23 }
 0x66d   :  { %v5602_v12 = vsub.f32 %v5420_v16, %v5578_v23  ;;  %v5608_v9 = vsub.f32 %v5425_v24, %v5578_v23  ;;  %v5616_v47 = vsub.f32 %v5428_v52, %v5578_v23  ;;  %v5623_v24 = vsub.f32 %v5435_v15, %v5578_v23 }
 0x66e   :  { %v2048_v58 = vmul.f32 %v5582_v34, %v5582_v34  ;;  %v2049_v26 = vmul.f32 %v5586_v48, %v5586_v48  ;;  %v2050_v54 = vmul.f32 %v5590_v37, %v5590_v37  ;;  %v2051_v17 = vmul.f32 %v5594_v13, %v5594_v13 }
 0x66f   :  { %v2052_v16 = vmul.f32 %v5602_v12, %v5602_v12  ;;  %v2053_v22 = vmul.f32 %v5608_v9, %v5608_v9  ;;  %v5630_v52 = vsub.f32 %v5440_v19, %v5578_v23  ;;  %v2054_v20 = vmul.f32 %v5616_v47, %v5616_v47 }
 0x670   :  { %v2080_v1 = vsel %vm214_vm2, %v2048_v58, 0.0  ;;  %v2081_v21 = vsel %vm214_vm2, %v2049_v26, 0.0  ;;  %v2083_v50 = vsel %vm214_vm2, %v2050_v54, 0.0  ;;  %v2085_v31 = vsel %vm214_vm2, %v2051_v17, 0.0 }
 0x671   :  { %v2082_v39 = vadd.f32 %v2081_v21, %v2080_v1  ;;  %v2087_v59 = vsel %vm214_vm2, %v2052_v16, 0.0  ;;  %v5637_v15 = vsub.f32 %v5445_v6, %v5578_v23  ;;  %v2055_v0 = vmul.f32 %v5623_v24, %v5623_v24 }
 0x672   :  { %v2089_v8 = vsel %vm214_vm2, %v2053_v22, 0.0  ;;  %v5644_v19 = vsub.f32 %v5450_v38, %v5578_v23  ;;  %v2056_v28 = vmul.f32 %v5630_v52, %v5630_v52  ;;  %v2091_v27 = vsel %vm214_vm2, %v2054_v20, 0.0 }
 0x673   :  { %v2084_v61 = vadd.f32 %v2083_v50, %v2082_v39  ;;  %v5651_v6 = vsub.f32 %v5455_v10, %v5578_v23  ;;  %v2057_v56 = vmul.f32 %v5637_v15, %v5637_v15  ;;  %v2093_v36 = vsel %vm214_vm2, %v2055_v0, 0.0 }
 0x674   :  { %v5658_v38 = vsub.f32 %v5460_v60, %v5578_v23  ;;  %v2058_v30 = vmul.f32 %v5644_v19, %v5644_v19  ;;  %v2095_v2 = vsel %vm214_vm2, %v2056_v28, 0.0  ;;  %v5665_v10 = vsub.f32 %v5470_v4, %v5578_v23 }
 0x675   :  { %v2086_v55 = vadd.f32 %v2085_v31, %v2084_v61  ;;  %v2059_v58 = vmul.f32 %v5651_v6, %v5651_v6  ;;  %v2097_v26 = vsel %vm214_vm2, %v2057_v56, 0.0  ;;  %v5672_v60 = vsub.f32 %v5467_v62, %v5578_v23 }
 0x676   :  { %v2060_v17 = vmul.f32 %v5658_v38, %v5658_v38  ;;  %v2099_v1 = vsel %vm214_vm2, %v2058_v30, 0.0  ;;  %v5679_v4 = vsub.f32 %v5474_v29, %v5578_v23  ;;  %v2061_v39 = vmul.f32 %v5665_v10, %v5665_v10 }
 0x677   :  { %v2088_v57 = vadd.f32 %v2087_v59, %v2086_v55  ;;  %v2101_v16 = vsel %vm214_vm2, %v2059_v58, 0.0  ;;  %v5686_v62 = vsub.f32 %v5488_v42, %v5578_v23  ;;  %v2062_v61 = vmul.f32 %v5672_v60, %v5672_v60 }
 0x678   :  { %v2103_v22 = vsel %vm214_vm2, %v2060_v17, 0.0  ;;  %v5693_v29 = vsub.f32 %v5494_v14, %v5578_v23  ;;  %v2063_v55 = vmul.f32 %v5679_v4, %v5679_v4  ;;  %v2105_v20 = vsel %vm214_vm2, %v2061_v39, 0.0 }
 0x679   :  { %v2090_v44 = vadd.f32 %v2089_v8, %v2088_v57  ;;  %v5700_v42 = vsub.f32 %v5500_v11, %v5578_v23  ;;  %v2064_v57 = vmul.f32 %v5686_v62, %v5686_v62  ;;  %v2107_v0 = vsel %vm214_vm2, %v2062_v61, 0.0 }
 0x67a   :  { %v5707_v14 = vsub.f32 %v5506_v3, %v5578_v23  ;;  %v2109_v28 = vsel %vm214_vm2, %v2063_v55, 0.0  ;;  %v5714_v11 = vsub.f32 %v5512_v33, %v5578_v23  ;;  %v5721_v3 = vsub.f32 %v5518_v25, %v5578_v23 }
 0x67b   :  { %v2092_v45 = vadd.f32 %v2091_v27, %v2090_v44  ;;  %v2065_v44 = vmul.f32 %v5693_v29, %v5693_v29  ;;  %v2111_v56 = vsel %vm214_vm2, %v2064_v57, 0.0  ;;  %v5728_v33 = vsub.f32 %v5524_v49, %v5578_v23 }
 0x67c   :  { %v5735_v25 = vsub.f32 %v5530_v18, %v5578_v23  ;;  %v5742_v49 = vsub.f32 %v5536_v7, %v5578_v23  ;;  %v5749_v18 = vsub.f32 %v5541_v40, %v5578_v23  ;;  %v5756_v7 = vsub.f32 %v5546_v53, %v5578_v23 }
 0x67d   :  { %v2094_v35 = vadd.f32 %v2093_v36, %v2092_v45  ;;  %v2066_v45 = vmul.f32 %v5700_v42, %v5700_v42  ;;  %v2113_v30 = vsel %vm214_vm2, %v2065_v44, 0.0  ;;  %v5763_v40 = vsub.f32 %v5551_v51, %v5578_v23 }
 0x67e   :  { %v5770_v53 = vsub.f32 %v5556_v5, %v5578_v23  ;;  %v5777_v51 = vsub.f32 %v5563_v32, %v5578_v23  ;;  %v5784_v5 = vsub.f32 %v5568_v46, %v5578_v23  ;;  %v2047_v32 = vsub.f32 %v5573_v63, %v5578_v23 }
 0x67f   :  { %v2096_v41 = vadd.f32 %v2095_v2, %v2094_v35  ;;  %v2067_v35 = vmul.f32 %v5707_v14, %v5707_v14  ;;  %v2115_v58 = vsel %vm214_vm2, %v2066_v45, 0.0 }
 0x681   :  { %v2098_v54 = vadd.f32 %v2097_v26, %v2096_v41  ;;  %v2068_v41 = vmul.f32 %v5714_v11, %v5714_v11  ;;  %v2117_v17 = vsel %vm214_vm2, %v2067_v35, 0.0 }
 0x683   :  { %v2100_v21 = vadd.f32 %v2099_v1, %v2098_v54  ;;  %v2069_v54 = vmul.f32 %v5721_v3, %v5721_v3  ;;  %v2119_v39 = vsel %vm214_vm2, %v2068_v41, 0.0 }
 0x685   :  { %v2102_v50 = vadd.f32 %v2101_v16, %v2100_v21  ;;  %v2070_v21 = vmul.f32 %v5728_v33, %v5728_v33  ;;  %v2121_v61 = vsel %vm214_vm2, %v2069_v54, 0.0 }
 0x687   :  { %v2104_v31 = vadd.f32 %v2103_v22, %v2102_v50  ;;  %v2071_v50 = vmul.f32 %v5735_v25, %v5735_v25  ;;  %v2123_v55 = vsel %vm214_vm2, %v2070_v21, 0.0 }
 0x689   :  { %v2106_v59 = vadd.f32 %v2105_v20, %v2104_v31  ;;  %v2072_v31 = vmul.f32 %v5742_v49, %v5742_v49  ;;  %v2125_v57 = vsel %vm214_vm2, %v2071_v50, 0.0 }
 0x68b   :  { %v2108_v8 = vadd.f32 %v2107_v0, %v2106_v59  ;;  %v2073_v59 = vmul.f32 %v5749_v18, %v5749_v18  ;;  %v2127_v44 = vsel %vm214_vm2, %v2072_v31, 0.0 }
 0x68d   :  { %v2110_v27 = vadd.f32 %v2109_v28, %v2108_v8  ;;  %v2074_v8 = vmul.f32 %v5756_v7, %v5756_v7  ;;  %v2129_v45 = vsel %vm214_vm2, %v2073_v59, 0.0 }
 0x68f   :  { %v2112_v36 = vadd.f32 %v2111_v56, %v2110_v27  ;;  %v2075_v27 = vmul.f32 %v5763_v40, %v5763_v40  ;;  %v2131_v35 = vsel %vm214_vm2, %v2074_v8, 0.0 }
 0x691   :  { %v2114_v2 = vadd.f32 %v2113_v30, %v2112_v36  ;;  %v2076_v36 = vmul.f32 %v5770_v53, %v5770_v53  ;;  %v2133_v41 = vsel %vm214_vm2, %v2075_v27, 0.0  ;;  %v2291_v27 = vld [vmem:[%s6853_s2 + $0x50] sm:$0xff] }
 0x693   :  { %v2116_v26 = vadd.f32 %v2115_v58, %v2114_v2  ;;  %v2077_v2 = vmul.f32 %v5777_v51, %v5777_v51  ;;  %v2135_v46 = vsel %vm214_vm2, %v2076_v36, 0.0 }
 0x695   :  { %v2118_v1 = vadd.f32 %v2117_v17, %v2116_v26  ;;  %v2078_v26 = vmul.f32 %v5784_v5, %v5784_v5  ;;  %v2079_v17 = vmul.f32 %v2047_v32, %v2047_v32 }
 0x697   :  { %v2120_v16 = vadd.f32 %v2119_v39, %v2118_v1  ;;  %v2137_v1 = vsel %vm214_vm2, %v2077_v2, 0.0  ;;  %v2139_v39 = vsel %vm214_vm2, %v2078_v26, 0.0  ;;  %v2141_v63 = vsel %vm214_vm2, %v2079_v17, 0.0 }
 0x699   :  { %v2122_v22 = vadd.f32 %v2121_v61, %v2120_v16 }
 0x69b   :  { %v2124_v20 = vadd.f32 %v2123_v55, %v2122_v22 }
 0x69d   :  { %v2126_v0 = vadd.f32 %v2125_v57, %v2124_v20 }
 0x69f   :  { %v2128_v28 = vadd.f32 %v2127_v44, %v2126_v0 }
 0x6a1   :  { %v2130_v56 = vadd.f32 %v2129_v45, %v2128_v28  ;;  %v2292_v45 = vld [vmem:[%s6853_s2 + $0x58] sm:$0xff] }
 0x6a3   :  { %v2132_v30 = vadd.f32 %v2131_v35, %v2130_v56  ;;  %v2295_v56 = vpack.c.bf16 %v2292_v45, %v2291_v27 }
 0x6a5   :  { %v2134_v58 = vadd.f32 %v2133_v41, %v2132_v30  ;;  %2370 = vmatpush.bf16.msrb.mxu0 %v2295_v56  ;;  %v5810_v30 = vld [vmem:[%s6855_s3 + $0x8] ss:$0 sm:$0xff]  ;;  %v5817_v41 = vld [vmem:[%s6855_s3 + $0x9] ss:$0 sm:$0xff] }
 0x6a7   :  { %v2136_v54 = vadd.f32 %v2135_v46, %v2134_v58 }
 0x6a9   :  { %v2138_v21 = vadd.f32 %v2137_v1, %v2136_v54 }
 0x6ab   :  { %v2140_v16 = vadd.f32 %v2139_v39, %v2138_v21 }
 0x6ad   :  { %v2142_v23 = vadd.f32 %v2141_v63, %v2140_v16 }
 0x6af   :  { %v2143_v50 = vrot.slane %v2142_v23, 4 }
 0x6b1   :  { %v2144_v61 = vadd.f32 %v2143_v50, %v2142_v23 }
 0x6b3   :  { %v2145_v22 = vrot.slane %v2144_v61, 2 }
 0x6b5   :  { %v2146_v31 = vadd.f32 %v2145_v22, %v2144_v61 }
 0x6b7   :  { %v2147_v55 = vrot.slane %v2146_v31, 1 }
 0x6b9   :  { %v2148_v20 = vadd.f32 %v2147_v55, %v2146_v31 }
 0x6bb   :  { %v2149_v59 = vmul.f32 %v2148_v20, %v3713_v43 }
 0x6bd   :  { %v2150_v57 = vadd.f32 1e-05, %v2149_v59 }
 0x6bf   :  { %3342 = vrsqrt.f32 %v2150_v57  ;;  %vm2157_vm15 = vweird.f32 %v2150_v57 }
 0x6c5   :  { %v3343_v0 = vpop.eup %3342 }
 0x6c6   :  { %v2152_v8 = vmul.f32 %v3343_v0, %v2150_v57  ;;  %vm2158_vm14 = vweird.f32 %v3343_v0 }
 0x6c7   :  { %vm2159_vm0 = vmor %vm2157_vm15, %vm2158_vm14 }
 0x6c8   :  { %v2153_v44 = vmul.f32 %v3343_v0, %v2152_v8 }
 0x6ca   :  { %v2154_v28 = vmul.f32 0.5, %v2153_v44 }
 0x6cc   :  { %v2155_v36 = vsub.f32 1.5, %v2154_v28 }
 0x6ce   :  { %v2156_v35 = vmul.f32 %v3343_v0, %v2155_v36 }
 0x6d0   :  { %v5812_v2 = vsel %vm2159_vm0, %v3343_v0, %v2156_v35 }
 0x6d1   :  { %v2192_v58 = vmul.f32 %v5812_v2, %v2047_v32  ;;  %v2161_v46 = vmul.f32 %v5812_v2, %v5582_v34  ;;  %v2162_v54 = vmul.f32 %v5812_v2, %v5586_v48  ;;  %v2169_v1 = vmul.f32 %v5812_v2, %v5630_v52 }
 0x6d2   :  { %v2170_v21 = vmul.f32 %v5812_v2, %v5637_v15  ;;  %v2171_v32 = vmul.f32 %v5812_v2, %v5644_v19  ;;  %v2172_v39 = vmul.f32 %v5812_v2, %v5651_v6  ;;  %v2173_v34 = vmul.f32 %v5812_v2, %v5658_v38 }
 0x6d3   :  { %v2225_v26 = vmul.f32 %v5810_v30, %v2192_v58  ;;  %v2174_v48 = vmul.f32 %v5812_v2, %v5665_v10  ;;  %v2175_v16 = vmul.f32 %v5812_v2, %v5672_v60  ;;  %v2176_v52 = vmul.f32 %v5812_v2, %v5679_v4 }
 0x6d4   :  { %v2177_v15 = vmul.f32 %v5812_v2, %v5686_v62  ;;  %v2178_v19 = vmul.f32 %v5812_v2, %v5693_v29  ;;  %v2179_v6 = vmul.f32 %v5812_v2, %v5700_v42  ;;  %v2180_v38 = vmul.f32 %v5812_v2, %v5707_v14 }
 0x6d5   :  { %v5826_v17 = vadd.f32 %v5817_v41, %v2225_v26  ;;  %v2181_v10 = vmul.f32 %v5812_v2, %v5714_v11  ;;  %v2182_v60 = vmul.f32 %v5812_v2, %v5721_v3  ;;  %v2183_v4 = vmul.f32 %v5812_v2, %v5728_v33 }
 0x6d6   :  { %v2184_v62 = vmul.f32 %v5812_v2, %v5735_v25  ;;  %v2185_v29 = vmul.f32 %v5812_v2, %v5742_v49  ;;  %v2186_v42 = vmul.f32 %v5812_v2, %v5749_v18  ;;  %v2187_v14 = vmul.f32 %v5812_v2, %v5756_v7 }
 0x6d7   :  { %v2188_v11 = vmul.f32 %v5812_v2, %v5763_v40  ;;  %v2189_v3 = vmul.f32 %v5812_v2, %v5770_v53  ;;  %v2190_v33 = vmul.f32 %v5812_v2, %v5777_v51  ;;  %v2191_v25 = vmul.f32 %v5812_v2, %v5784_v5 }
 0x6d8   :  { %v2194_v49 = vmul.f32 %v5810_v30, %v2161_v46  ;;  %v2195_v63 = vmul.f32 %v5810_v30, %v2162_v54  ;;  %v2202_v18 = vmul.f32 %v5810_v30, %v2169_v1  ;;  %v2203_v7 = vmul.f32 %v5810_v30, %v2170_v21 }
 0x6d9   :  { %v2204_v23 = vmul.f32 %v5810_v30, %v2171_v32  ;;  %v2205_v40 = vmul.f32 %v5810_v30, %v2172_v39  ;;  %v2206_v53 = vmul.f32 %v5810_v30, %v2173_v34  ;;  %v2207_v50 = vmul.f32 %v5810_v30, %v2174_v48 }
 0x6da   :  { %v2208_v51 = vmul.f32 %v5810_v30, %v2175_v16  ;;  %v2209_v5 = vmul.f32 %v5810_v30, %v2176_v52  ;;  %v2210_v61 = vmul.f32 %v5810_v30, %v2177_v15  ;;  %v2211_v22 = vmul.f32 %v5810_v30, %v2178_v19 }
 0x6db   :  { %v2212_v31 = vmul.f32 %v5810_v30, %v2179_v6  ;;  %v2213_v55 = vmul.f32 %v5810_v30, %v2180_v38  ;;  %v2214_v20 = vmul.f32 %v5810_v30, %v2181_v10  ;;  %v2215_v59 = vmul.f32 %v5810_v30, %v2182_v60 }
 0x6dc   :  { %v2216_v57 = vmul.f32 %v5810_v30, %v2183_v4  ;;  %v2217_v0 = vmul.f32 %v5810_v30, %v2184_v62  ;;  %v2218_v8 = vmul.f32 %v5810_v30, %v2185_v29  ;;  %v2219_v44 = vmul.f32 %v5810_v30, %v2186_v42 }
 0x6dd   :  { %v2220_v28 = vmul.f32 %v5810_v30, %v2187_v14  ;;  %v2221_v27 = vmul.f32 %v5810_v30, %v2188_v11  ;;  %v2222_v45 = vmul.f32 %v5810_v30, %v2189_v3  ;;  %v2223_v56 = vmul.f32 %v5810_v30, %v2190_v33 }
 0x6de   :  { %v2224_v36 = vmul.f32 %v5810_v30, %v2191_v25  ;;  %v2227_v35 = vadd.f32 %v5817_v41, %v2194_v49  ;;  %v2228_v58 = vadd.f32 %v5817_v41, %v2195_v63  ;;  %v2235_v26 = vadd.f32 %v5817_v41, %v2202_v18 }
 0x6df   :  { %v2236_v46 = vadd.f32 %v5817_v41, %v2203_v7  ;;  %v2237_v54 = vadd.f32 %v5817_v41, %v2204_v23  ;;  %v2238_v1 = vadd.f32 %v5817_v41, %v2205_v40  ;;  %v2239_v21 = vadd.f32 %v5817_v41, %v2206_v53 }
 0x6e0   :  { %v2240_v32 = vadd.f32 %v5817_v41, %v2207_v50  ;;  %v2241_v39 = vadd.f32 %v5817_v41, %v2208_v51  ;;  %v2242_v34 = vadd.f32 %v5817_v41, %v2209_v5  ;;  %v2243_v48 = vadd.f32 %v5817_v41, %v2210_v61 }
 0x6e1   :  { %v2244_v16 = vadd.f32 %v5817_v41, %v2211_v22  ;;  %v2245_v52 = vadd.f32 %v5817_v41, %v2212_v31  ;;  %v2246_v15 = vadd.f32 %v5817_v41, %v2213_v55  ;;  %v2247_v19 = vadd.f32 %v5817_v41, %v2214_v20 }
 0x6e2   :  { %v2248_v6 = vadd.f32 %v5817_v41, %v2215_v59  ;;  %v2249_v38 = vadd.f32 %v5817_v41, %v2216_v57  ;;  %v2250_v10 = vadd.f32 %v5817_v41, %v2217_v0  ;;  %v2251_v60 = vadd.f32 %v5817_v41, %v2218_v8 }
 0x6e3   :  { %v2252_v4 = vadd.f32 %v5817_v41, %v2219_v44  ;;  %v2253_v62 = vadd.f32 %v5817_v41, %v2220_v28  ;;  %v2254_v29 = vadd.f32 %v5817_v41, %v2221_v27  ;;  %v2255_v42 = vadd.f32 %v5817_v41, %v2222_v45 }
 0x6e4   :  { %v2256_v14 = vadd.f32 %v5817_v41, %v2223_v56  ;;  %v2257_v11 = vadd.f32 %v5817_v41, %v2224_v36  ;;  %v2259_v3 = vmax.f32 %v2227_v35, 0.0  ;;  %v2260_v33 = vmax.f32 %v2228_v58, 0.0 }
 0x6e5   :  { %v2163_v25 = vmul.f32 %v5812_v2, %v5590_v37  ;;  %v2267_v49 = vmax.f32 %v2235_v26, 0.0  ;;  %v2268_v63 = vmax.f32 %v2236_v46, 0.0  ;;  %v2269_v18 = vmax.f32 %v2237_v54, 0.0 }
 0x6e6   :  { %v2270_v7 = vmax.f32 %v2238_v1, 0.0  ;;  %v2271_v23 = vmax.f32 %v2239_v21, 0.0  ;;  %v2272_v40 = vmax.f32 %v2240_v32, 0.0  ;;  %v2164_v53 = vmul.f32 %v5812_v2, %v5594_v13 }
 0x6e7   :  { %v2297_v50 = vpack.c.bf16 %v2260_v33, %v2259_v3  ;;  %v2196_v51 = vmul.f32 %v5810_v30, %v2163_v25  ;;  %v2273_v5 = vmax.f32 %v2241_v39, 0.0  ;;  %v2275_v61 = vmax.f32 %v2243_v48, 0.0 }
 0x6e8   :  { %v2277_v22 = vmax.f32 %v2245_v52, 0.0  ;;  %v2279_v31 = vmax.f32 %v2247_v19, 0.0  ;;  %v2301_v55 = vpack.c.bf16 %v2268_v63, %v2267_v49  ;;  %v2302_v37 = vpack.c.bf16 %v2270_v7, %v2269_v18 }
 0x6e9   :  { %3221 = vmatmul.msk.bf16.vlgmr.msrb.gmra.mxu0 %vm214_vm2, %v2297_v50  ;;  %v2303_v20 = vpack.c.bf16 %v2272_v40, %v2271_v23  ;;  %v2197_v59 = vmul.f32 %v5810_v30, %v2164_v53  ;;  %v2281_v57 = vmax.f32 %v2249_v38, 0.0  ;;  %v2283_v0 = vmax.f32 %v2251_v60, 0.0 }
 0x6ea   :  { %v2285_v8 = vmax.f32 %v2253_v62, 0.0  ;;  %v2274_v44 = vmax.f32 %v2242_v34, 0.0  ;;  %v2276_v28 = vmax.f32 %v2244_v16, 0.0  ;;  %v2278_v13 = vmax.f32 %v2246_v15, 0.0 }
 0x6eb   :  { %v2280_v27 = vmax.f32 %v2248_v6, 0.0  ;;  %v2287_v45 = vmax.f32 %v2255_v42, 0.0  ;;  %v2289_v56 = vmax.f32 %v2257_v11, 0.0  ;;  %v2282_v36 = vmax.f32 %v2250_v10, 0.0 }
 0x6ec   :  { %v2284_v35 = vmax.f32 %v2252_v4, 0.0  ;;  %v2304_v58 = vpack.c.bf16 %v2274_v44, %v2273_v5  ;;  %v2305_v26 = vpack.c.bf16 %v2276_v28, %v2275_v61  ;;  %v2306_v46 = vpack.c.bf16 %v2278_v13, %v2277_v22 }
 0x6ed   :  { %v2307_v54 = vpack.c.bf16 %v2280_v27, %v2279_v31  ;;  %v2308_v1 = vpack.c.bf16 %v2282_v36, %v2281_v57  ;;  %v2286_v32 = vmax.f32 %v2254_v29, 0.0  ;;  %v2288_v39 = vmax.f32 %v2256_v14, 0.0  ;;  %v5978_v27 = vld [vmem:[%s6855_s3 + $0xa] ss:$0 sm:$0xff] }
 0x6ee   :  { %v2309_v21 = vpack.c.bf16 %v2284_v35, %v2283_v0  ;;  %v2229_v48 = vadd.f32 %v5817_v41, %v2196_v51  ;;  %v2230_v52 = vadd.f32 %v5817_v41, %v2197_v59  ;;  %v2290_v34 = vmax.f32 %v5826_v17, 0.0 }
 0x6ef   :  { %v2310_v16 = vpack.c.bf16 %v2286_v32, %v2285_v8  ;;  %v2311_v15 = vpack.c.bf16 %v2288_v39, %v2287_v45  ;;  %v2165_v10 = vmul.f32 %v5812_v2, %v5602_v12  ;;  %v2166_v60 = vmul.f32 %v5812_v2, %v5608_v9 }
 0x6f0   :  { %v2312_v19 = vpack.c.bf16 %v2290_v34, %v2289_v56  ;;  %v2261_v6 = vmax.f32 %v2229_v48, 0.0  ;;  %v2262_v38 = vmax.f32 %v2230_v52, 0.0  ;;  %v2167_v3 = vmul.f32 %v5812_v2, %v5616_v47 }
 0x6f1   :  { %v2198_v62 = vmul.f32 %v5810_v30, %v2165_v10  ;;  %v2199_v29 = vmul.f32 %v5810_v30, %v2166_v60  ;;  %v2168_v12 = vmul.f32 %v5812_v2, %v5623_v24 }
 0x6f2   :  { %v2298_v4 = vpack.c.bf16 %v2262_v38, %v2261_v6  ;;  %v2200_v33 = vmul.f32 %v5810_v30, %v2167_v3 }
 0x6f3   :  { %v2231_v17 = vadd.f32 %v5817_v41, %v2198_v62  ;;  %v2232_v42 = vadd.f32 %v5817_v41, %v2199_v29  ;;  %v2201_v25 = vmul.f32 %v5810_v30, %v2168_v12  ;;  %v2801_v12 = vld [vmem:[%s6853_s2 + $0x80] sm:$0xff] }
 0x6f4   :  { %v2233_v49 = vadd.f32 %v5817_v41, %v2200_v33 }
 0x6f5   :  { %v2263_v14 = vmax.f32 %v2231_v17, 0.0  ;;  %v2264_v11 = vmax.f32 %v2232_v42, 0.0  ;;  %v2234_v63 = vadd.f32 %v5817_v41, %v2201_v25 }
 0x6f6   :  { %v2265_v18 = vmax.f32 %v2233_v49, 0.0 }
 0x6f7   :  { %v2299_v9 = vpack.c.bf16 %v2264_v11, %v2263_v14  ;;  %v2266_v7 = vmax.f32 %v2234_v63, 0.0 }
 0x6f9   :  { %3222 = vmatmul.msk.bf16.gmra.mxu0 %vm214_vm2, %v2298_v4  ;;  %v2300_v23 = vpack.c.bf16 %v2266_v7, %v2265_v18 }
 0x709   :  { %3223 = vmatmul.msk.bf16.gmra.mxu0 %vm214_vm2, %v2299_v9  ;;  %v2802_v9 = vld [vmem:[%s6853_s2 + $0x88] sm:$0xff] }
 0x70a   :  { %v2804_v49 = vpack.c.bf16 %v2802_v9, %v2801_v12 }
 0x70c   :  { %2877 = vmatpush.bf16.msrb.mxu3 %v2804_v49 }
 0x719   :  { %3224 = vmatmul.msk.bf16.gmra.mxu0 %vm214_vm2, %v2300_v23 }
 0x729   :  { %3225 = vmatmul.msk.bf16.gmra.mxu0 %vm214_vm2, %v2301_v55 }
 0x739   :  { %3226 = vmatmul.msk.bf16.gmra.mxu0 %vm214_vm2, %v2302_v37 }
 0x749   :  { %3227 = vmatmul.msk.bf16.gmra.mxu0 %vm214_vm2, %v2303_v20 }
 0x759   :  { %3228 = vmatmul.msk.bf16.gmra.mxu0 %vm214_vm2, %v2304_v58 }
 0x766   :  { %v2372_v47 = vpop.f32.mrf.mxu0 }
 0x767   :  { %v5986_v36 = vadd.f32 %v5978_v27, %v2372_v47 }
 0x769   :  { %3229 = vmatmul.msk.bf16.gmra.mxu0 %vm214_vm2, %v2305_v26 }
 0x76e   :  { %v2374_v24 = vpop.f32.mrf.mxu0 }
 0x76f   :  { %v5983_v56 = vadd.f32 %v5978_v27, %v2374_v24 }
 0x771   :  { %v2455_v58 = vsel %vm214_vm2, %v5983_v56, 0.0 }
 0x776   :  { %v2377_v30 = vpop.f32.mrf.mxu0 }
 0x777   :  { %v5989_v35 = vadd.f32 %v5978_v27, %v2377_v30 }
 0x779   :  { %3230 = vmatmul.msk.bf16.gmra.mxu0 %vm214_vm2, %v2306_v46  ;;  %v2454_v46 = vsel %vm214_vm2, %v5986_v36, 0.0 }
 0x77e   :  { %v2379_v2 = vpop.f32.mrf.mxu0 }
 0x77f   :  { %v5994_v26 = vadd.f32 %v5978_v27, %v2379_v2 }
 0x781   :  { %v2459_v39 = vsel %vm214_vm2, %v5994_v26, 0.0 }
 0x786   :  { %v2382_v41 = vpop.f32.mrf.mxu0 }
 0x789   :  { %3231 = vmatmul.msk.bf16.gmra.mxu0 %vm214_vm2, %v2307_v54  ;;  %v2457_v54 = vsel %vm214_vm2, %v5989_v35, 0.0 }
 0x78e   :  { %v2384_v40 = vpop.f32.mrf.mxu0 }
 0x78f   :  { %v6008_v48 = vadd.f32 %v5978_v27, %v2384_v40 }
 0x796   :  { %v2387_v53 = vpop.f32.mrf.mxu0 }
 0x799   :  { %3232 = vmatmul.msk.bf16.gmra.mxu0 %vm214_vm2, %v2308_v1  ;;  %v6001_v1 = vadd.f32 %v5978_v27, %v2382_v41 }
 0x79b   :  { %v2461_v34 = vsel %vm214_vm2, %v6001_v1, 0.0 }
 0x79e   :  { %v2389_v50 = vpop.f32.mrf.mxu0 }
 0x79f   :  { %v6018_v6 = vadd.f32 %v5978_v27, %v2389_v50 }
 0x7a1   :  { %v2467_v29 = vsel %vm214_vm2, %v6018_v6, 0.0 }
 0x7a6   :  { %v2392_v51 = vpop.f32.mrf.mxu0 }
 0x7a7   :  { %v6023_v60 = vadd.f32 %v5978_v27, %v2392_v51 }
 0x7a9   :  { %3233 = vmatmul.msk.bf16.gmra.mxu0 %vm214_vm2, %v2309_v21  ;;  %v2456_v21 = vadd.f32 %v2455_v58, %v2454_v46  ;;  %v2469_v14 = vsel %vm214_vm2, %v6023_v60, 0.0 }
 0x7ab   :  { %v2458_v52 = vadd.f32 %v2457_v54, %v2456_v21 }
 0x7ae   :  { %v2394_v5 = vpop.f32.mrf.mxu0 }
 0x7af   :  { %v6028_v17 = vadd.f32 %v5978_v27, %v2394_v5 }
 0x7b1   :  { %v2471_v33 = vsel %vm214_vm2, %v6028_v17, 0.0 }
 0x7b6   :  { %v2397_v61 = vpop.f32.mrf.mxu0 }
 0x7b7   :  { %v6033_v11 = vadd.f32 %v5978_v27, %v2397_v61 }
 0x7b9   :  { %3234 = vmatmul.msk.bf16.gmra.mxu0 %vm214_vm2, %v2310_v16  ;;  %v6013_v16 = vadd.f32 %v5978_v27, %v2387_v53  ;;  %v2473_v18 = vsel %vm214_vm2, %v6033_v11, 0.0 }
 0x7bb   :  { %v2465_v10 = vsel %vm214_vm2, %v6013_v16, 0.0 }
 0x7be   :  { %v2399_v22 = vpop.f32.mrf.mxu0 }
 0x7bf   :  { %v6044_v25 = vadd.f32 %v5978_v27, %v2399_v22 }
 0x7c1   :  { %v2475_v24 = vsel %vm214_vm2, %v6044_v25, 0.0 }
 0x7c6   :  { %v2402_v31 = vpop.f32.mrf.mxu0 }
 0x7c7   :  { %v6049_v7 = vadd.f32 %v5978_v27, %v2402_v31 }
 0x7c9   :  { %3235 = vmatmul.msk.bf16.gmra.mxu0 %vm214_vm2, %v2311_v15  ;;  %v2460_v15 = vadd.f32 %v2459_v39, %v2458_v52  ;;  %v2477_v41 = vsel %vm214_vm2, %v6049_v7, 0.0 }
 0x7cb   :  { %v2462_v38 = vadd.f32 %v2461_v34, %v2460_v15 }
 0x7ce   :  { %v2404_v55 = vpop.f32.mrf.mxu0 }
 0x7cf   :  { %v6054_v30 = vadd.f32 %v5978_v27, %v2404_v55 }
 0x7d1   :  { %v2479_v50 = vsel %vm214_vm2, %v6054_v30, 0.0 }
 0x7d6   :  { %v2407_v37 = vpop.f32.mrf.mxu0 }
 0x7d7   :  { %v6059_v40 = vadd.f32 %v5978_v27, %v2407_v37 }
 0x7d9   :  { %3236 = vmatmul.msk.bf16.gmra.mxu0 %vm214_vm2, %v2312_v19  ;;  %v2463_v19 = vsel %vm214_vm2, %v6008_v48, 0.0  ;;  %v2481_v61 = vsel %vm214_vm2, %v6059_v40, 0.0 }
 0x7da   :  { %v2464_v4 = vadd.f32 %v2463_v19, %v2462_v38 }
 0x7dc   :  { %v2466_v42 = vadd.f32 %v2465_v10, %v2464_v4 }
 0x7de   :  { %v2409_v20 = vpop.f32.mrf.mxu0  ;;  %v2468_v3 = vadd.f32 %v2467_v29, %v2466_v42 }
 0x7df   :  { %v6064_v51 = vadd.f32 %v5978_v27, %v2409_v20 }
 0x7e0   :  { %v2470_v63 = vadd.f32 %v2469_v14, %v2468_v3 }
 0x7e1   :  { %v2483_v37 = vsel %vm214_vm2, %v6064_v51, 0.0 }
 0x7e2   :  { %v2472_v23 = vadd.f32 %v2471_v33, %v2470_v63 }
 0x7e4   :  { %v2474_v2 = vadd.f32 %v2473_v18, %v2472_v23 }
 0x7e6   :  { %v2412_v59 = vpop.f32.mrf.mxu0  ;;  %v2476_v53 = vadd.f32 %v2475_v24, %v2474_v2 }
 0x7e7   :  { %v6069_v22 = vadd.f32 %v5978_v27, %v2412_v59 }
 0x7e8   :  { %v2478_v5 = vadd.f32 %v2477_v41, %v2476_v53 }
 0x7e9   :  { %v2485_v20 = vsel %vm214_vm2, %v6069_v22, 0.0 }
 0x7ea   :  { %v2480_v31 = vadd.f32 %v2479_v50, %v2478_v5 }
 0x7ec   :  { %v2482_v46 = vadd.f32 %v2481_v61, %v2480_v31 }
 0x7ee   :  { %v2414_v57 = vpop.f32.mrf.mxu0  ;;  %v2484_v21 = vadd.f32 %v2483_v37, %v2482_v46 }
 0x7ef   :  { %v6074_v58 = vadd.f32 %v5978_v27, %v2414_v57 }
 0x7f0   :  { %v2486_v52 = vadd.f32 %v2485_v20, %v2484_v21 }
 0x7f1   :  { %v2487_v59 = vsel %vm214_vm2, %v6074_v58, 0.0 }
 0x7f2   :  { %v2488_v15 = vadd.f32 %v2487_v59, %v2486_v52 }
 0x7f6   :  { %v5965_v0 = vpop.f32.mrf.mxu0 }
 0x7f7   :  { %v6080_v54 = vadd.f32 %v5978_v27, %v5965_v0 }
 0x7f9   :  { %v2489_v57 = vsel %vm214_vm2, %v6080_v54, 0.0 }
 0x7fa   :  { %v2490_v10 = vadd.f32 %v2489_v57, %v2488_v15 }
 0x7fe   :  { %v5967_v8 = vpop.f32.mrf.mxu0 }
 0x7ff   :  { %v6086_v39 = vadd.f32 %v5978_v27, %v5967_v8 }
 0x801   :  { %v2491_v0 = vsel %vm214_vm2, %v6086_v39, 0.0 }
 0x802   :  { %v2492_v29 = vadd.f32 %v2491_v0, %v2490_v10 }
 0x806   :  { %v5969_v44 = vpop.f32.mrf.mxu0 }
 0x807   :  { %v6092_v34 = vadd.f32 %v5978_v27, %v5969_v44 }
 0x809   :  { %v2493_v8 = vsel %vm214_vm2, %v6092_v34, 0.0 }
 0x80a   :  { %v2494_v14 = vadd.f32 %v2493_v8, %v2492_v29 }
 0x80e   :  { %v5971_v28 = vpop.f32.mrf.mxu0 }
 0x80f   :  { %v6098_v38 = vadd.f32 %v5978_v27, %v5971_v28 }
 0x811   :  { %v2495_v44 = vsel %vm214_vm2, %v6098_v38, 0.0 }
 0x812   :  { %v2496_v12 = vadd.f32 %v2495_v44, %v2494_v14 }
 0x816   :  { %v5973_v13 = vpop.f32.mrf.mxu0 }
 0x817   :  { %v6104_v4 = vadd.f32 %v5978_v27, %v5973_v13 }
 0x819   :  { %v2497_v28 = vsel %vm214_vm2, %v6104_v4, 0.0 }
 0x81a   :  { %v2498_v49 = vadd.f32 %v2497_v28, %v2496_v12 }
 0x81e   :  { %v5980_v45 = vpop.f32.mrf.mxu0 }
 0x81f   :  { %v6110_v42 = vadd.f32 %v5978_v27, %v5980_v45 }
 0x821   :  { %v2499_v13 = vsel %vm214_vm2, %v6110_v42, 0.0 }
 0x822   :  { %v2500_v18 = vadd.f32 %v2499_v13, %v2498_v49 }
 0x826   :  { %v6003_v32 = vpop.f32.mrf.mxu0 }
 0x827   :  { %v6116_v3 = vadd.f32 %v5978_v27, %v6003_v32 }
 0x829   :  { %v2501_v45 = vsel %vm214_vm2, %v6116_v3, 0.0 }
 0x82a   :  { %v2502_v24 = vadd.f32 %v2501_v45, %v2500_v18 }
 0x82e   :  { %v2434_v62 = vpop.f32.mrf.mxu0 }
 0x82f   :  { %v6121_v33 = vadd.f32 %v5978_v27, %v2434_v62 }
 0x831   :  { %v2503_v32 = vsel %vm214_vm2, %v6121_v33, 0.0 }
 0x832   :  { %v2504_v41 = vadd.f32 %v2503_v32, %v2502_v24 }
 0x836   :  { %v2437_v47 = vpop.f32.mrf.mxu0 }
 0x837   :  { %v6126_v63 = vadd.f32 %v5978_v27, %v2437_v47 }
 0x839   :  { %v2505_v2 = vsel %vm214_vm2, %v6126_v63, 0.0 }
 0x83a   :  { %v2506_v5 = vadd.f32 %v2505_v2, %v2504_v41 }
 0x83e   :  { %v2439_v55 = vpop.f32.mrf.mxu0 }
 0x83f   :  { %v6131_v23 = vadd.f32 %v5978_v27, %v2439_v55 }
 0x841   :  { %v2507_v47 = vsel %vm214_vm2, %v6131_v23, 0.0 }
 0x842   :  { %v2508_v55 = vadd.f32 %v2507_v47, %v2506_v5 }
 0x846   :  { %v2442_v19 = vpop.f32.mrf.mxu0 }
 0x847   :  { %v6136_v62 = vadd.f32 %v5978_v27, %v2442_v19 }
 0x849   :  { %v2509_v61 = vsel %vm214_vm2, %v6136_v62, 0.0 }
 0x84a   :  { %v2510_v46 = vadd.f32 %v2509_v61, %v2508_v55 }
 0x84e   :  { %v2444_v9 = vpop.f32.mrf.mxu0 }
 0x84f   :  { %v6141_v50 = vadd.f32 %v5978_v27, %v2444_v9 }
 0x851   :  { %v2511_v37 = vsel %vm214_vm2, %v6141_v50, 0.0 }
 0x852   :  { %v2512_v21 = vadd.f32 %v2511_v37, %v2510_v46 }
 0x856   :  { %v2447_v53 = vpop.f32.mrf.mxu0 }
 0x857   :  { %v6146_v31 = vadd.f32 %v5978_v27, %v2447_v53 }
 0x859   :  { %v2513_v20 = vsel %vm214_vm2, %v6146_v31, 0.0 }
 0x85a   :  { %v2514_v57 = vadd.f32 %v2513_v20, %v2512_v21 }
 0x85e   :  { %v2449_v59 = vpop.f32.mrf.mxu0 }
 0x85f   :  { %v6153_v52 = vadd.f32 %v5978_v27, %v2449_v59 }
 0x861   :  { %v2515_v15 = vsel %vm214_vm2, %v6153_v52, 0.0 }
 0x862   :  { %v2516_v19 = vadd.f32 %v2515_v15, %v2514_v57 }
 0x864   :  { %v2517_v0 = vrot.slane %v2516_v19, 4 }
 0x866   :  { %v2518_v10 = vadd.f32 %v2517_v0, %v2516_v19 }
 0x868   :  { %v2519_v8 = vrot.slane %v2518_v10, 2 }
 0x86a   :  { %v2520_v29 = vadd.f32 %v2519_v8, %v2518_v10 }
 0x86c   :  { %v2521_v44 = vrot.slane %v2520_v29, 1 }
 0x86e   :  { %v2522_v14 = vadd.f32 %v2521_v44, %v2520_v29 }
 0x870   :  { %v6158_v28 = vmul.f32 %v2522_v14, %v3713_v43 }
 0x872   :  { %v6162_v12 = vsub.f32 %v5986_v36, %v6158_v28  ;;  %v6166_v27 = vsub.f32 %v5983_v56, %v6158_v28  ;;  %v6170_v9 = vsub.f32 %v5989_v35, %v6158_v28  ;;  %v6174_v13 = vsub.f32 %v5994_v26, %v6158_v28 }
 0x873   :  { %v6182_v36 = vsub.f32 %v6001_v1, %v6158_v28  ;;  %v6188_v35 = vsub.f32 %v6008_v48, %v6158_v28  ;;  %v6196_v2 = vsub.f32 %v6013_v16, %v6158_v28  ;;  %v6203_v48 = vsub.f32 %v6018_v6, %v6158_v28 }
 0x874   :  { %v2556_v49 = vmul.f32 %v6162_v12, %v6162_v12  ;;  %v2557_v45 = vmul.f32 %v6166_v27, %v6166_v27  ;;  %v2558_v56 = vmul.f32 %v6170_v9, %v6170_v9  ;;  %v2559_v26 = vmul.f32 %v6174_v13, %v6174_v13 }
 0x875   :  { %v2560_v1 = vmul.f32 %v6182_v36, %v6182_v36  ;;  %v2561_v47 = vmul.f32 %v6188_v35, %v6188_v35  ;;  %v6210_v16 = vsub.f32 %v6023_v60, %v6158_v28  ;;  %v2562_v55 = vmul.f32 %v6196_v2, %v6196_v2 }
 0x876   :  { %v2588_v18 = vsel %vm214_vm2, %v2556_v49, 0.0  ;;  %v2589_v32 = vsel %vm214_vm2, %v2557_v45, 0.0  ;;  %v2591_v41 = vsel %vm214_vm2, %v2558_v56, 0.0  ;;  %v2593_v5 = vsel %vm214_vm2, %v2559_v26, 0.0 }
 0x877   :  { %v2590_v24 = vadd.f32 %v2589_v32, %v2588_v18  ;;  %v2595_v37 = vsel %vm214_vm2, %v2560_v1, 0.0  ;;  %v6217_v6 = vsub.f32 %v6028_v17, %v6158_v28  ;;  %v2563_v20 = vmul.f32 %v6203_v48, %v6203_v48 }
 0x878   :  { %v2597_v21 = vsel %vm214_vm2, %v2561_v47, 0.0  ;;  %v6224_v60 = vsub.f32 %v6033_v11, %v6158_v28  ;;  %v2564_v57 = vmul.f32 %v6210_v16, %v6210_v16  ;;  %v2599_v15 = vsel %vm214_vm2, %v2562_v55, 0.0 }
 0x879   :  { %v2592_v53 = vadd.f32 %v2591_v41, %v2590_v24  ;;  %v6231_v17 = vsub.f32 %v6044_v25, %v6158_v28  ;;  %v2565_v0 = vmul.f32 %v6217_v6, %v6217_v6  ;;  %v2601_v10 = vsel %vm214_vm2, %v2563_v20, 0.0 }
 0x87a   :  { %v6238_v11 = vsub.f32 %v6049_v7, %v6158_v28  ;;  %v2566_v29 = vmul.f32 %v6224_v60, %v6224_v60  ;;  %v2603_v44 = vsel %vm214_vm2, %v2564_v57, 0.0  ;;  %v6245_v25 = vsub.f32 %v6054_v30, %v6158_v28 }
 0x87b   :  { %v2594_v61 = vadd.f32 %v2593_v5, %v2592_v53  ;;  %v2567_v49 = vmul.f32 %v6231_v17, %v6231_v17  ;;  %v2605_v45 = vsel %vm214_vm2, %v2565_v0, 0.0  ;;  %v6252_v7 = vsub.f32 %v6059_v40, %v6158_v28 }
 0x87c   :  { %v2568_v26 = vmul.f32 %v6238_v11, %v6238_v11  ;;  %v2607_v18 = vsel %vm214_vm2, %v2566_v29, 0.0  ;;  %v6259_v30 = vsub.f32 %v6064_v51, %v6158_v28  ;;  %v2569_v24 = vmul.f32 %v6245_v25, %v6245_v25 }
 0x87d   :  { %v2596_v46 = vadd.f32 %v2595_v37, %v2594_v61  ;;  %v2609_v1 = vsel %vm214_vm2, %v2567_v49, 0.0  ;;  %v6266_v40 = vsub.f32 %v6069_v22, %v6158_v28  ;;  %v2570_v53 = vmul.f32 %v6252_v7, %v6252_v7 }
 0x87e   :  { %v2611_v47 = vsel %vm214_vm2, %v2568_v26, 0.0  ;;  %v6273_v51 = vsub.f32 %v6074_v58, %v6158_v28  ;;  %v2571_v61 = vmul.f32 %v6259_v30, %v6259_v30  ;;  %v2613_v55 = vsel %vm214_vm2, %v2569_v24, 0.0 }
 0x87f   :  { %v2598_v59 = vadd.f32 %v2597_v21, %v2596_v46  ;;  %v6280_v22 = vsub.f32 %v6080_v54, %v6158_v28  ;;  %v2572_v46 = vmul.f32 %v6266_v40, %v6266_v40  ;;  %v2615_v20 = vsel %vm214_vm2, %v2570_v53, 0.0 }
 0x880   :  { %v6287_v58 = vsub.f32 %v6086_v39, %v6158_v28  ;;  %v2617_v57 = vsel %vm214_vm2, %v2571_v61, 0.0  ;;  %v6294_v54 = vsub.f32 %v6092_v34, %v6158_v28  ;;  %v6301_v39 = vsub.f32 %v6098_v38, %v6158_v28 }
 0x881   :  { %v2600_v19 = vadd.f32 %v2599_v15, %v2598_v59  ;;  %v2573_v59 = vmul.f32 %v6273_v51, %v6273_v51  ;;  %v2619_v0 = vsel %vm214_vm2, %v2572_v46, 0.0  ;;  %v6308_v34 = vsub.f32 %v6104_v4, %v6158_v28 }
 0x882   :  { %v6315_v38 = vsub.f32 %v6110_v42, %v6158_v28  ;;  %v6322_v4 = vsub.f32 %v6116_v3, %v6158_v28  ;;  %v6329_v42 = vsub.f32 %v6121_v33, %v6158_v28  ;;  %v6336_v3 = vsub.f32 %v6126_v63, %v6158_v28 }
 0x883   :  { %v2602_v8 = vadd.f32 %v2601_v10, %v2600_v19  ;;  %v2574_v19 = vmul.f32 %v6280_v22, %v6280_v22  ;;  %v2621_v29 = vsel %vm214_vm2, %v2573_v59, 0.0  ;;  %v6343_v33 = vsub.f32 %v6131_v23, %v6158_v28 }
 0x884   :  { %v6350_v63 = vsub.f32 %v6136_v62, %v6158_v28  ;;  %v6357_v23 = vsub.f32 %v6141_v50, %v6158_v28  ;;  %v6364_v62 = vsub.f32 %v6146_v31, %v6158_v28  ;;  %v2555_v50 = vsub.f32 %v6153_v52, %v6158_v28 }
 0x885   :  { %v2604_v14 = vadd.f32 %v2603_v44, %v2602_v8  ;;  %v2575_v8 = vmul.f32 %v6287_v58, %v6287_v58  ;;  %v2623_v49 = vsel %vm214_vm2, %v2574_v19, 0.0 }
 0x887   :  { %v2606_v56 = vadd.f32 %v2605_v45, %v2604_v14  ;;  %v2576_v14 = vmul.f32 %v6294_v54, %v6294_v54  ;;  %v2625_v26 = vsel %vm214_vm2, %v2575_v8, 0.0 }
 0x889   :  { %v2608_v32 = vadd.f32 %v2607_v18, %v2606_v56  ;;  %v2577_v56 = vmul.f32 %v6301_v39, %v6301_v39  ;;  %v2627_v24 = vsel %vm214_vm2, %v2576_v14, 0.0 }
 0x88b   :  { %v2610_v41 = vadd.f32 %v2609_v1, %v2608_v32  ;;  %v2578_v32 = vmul.f32 %v6308_v34, %v6308_v34  ;;  %v2629_v53 = vsel %vm214_vm2, %v2577_v56, 0.0 }
 0x88d   :  { %v2612_v5 = vadd.f32 %v2611_v47, %v2610_v41  ;;  %v2579_v41 = vmul.f32 %v6315_v38, %v6315_v38  ;;  %v2631_v61 = vsel %vm214_vm2, %v2578_v32, 0.0 }
 0x88f   :  { %v2614_v37 = vadd.f32 %v2613_v55, %v2612_v5  ;;  %v2580_v5 = vmul.f32 %v6322_v4, %v6322_v4  ;;  %v2633_v46 = vsel %vm214_vm2, %v2579_v41, 0.0 }
 0x891   :  { %v2616_v21 = vadd.f32 %v2615_v20, %v2614_v37  ;;  %v2581_v37 = vmul.f32 %v6329_v42, %v6329_v42  ;;  %v2635_v59 = vsel %vm214_vm2, %v2580_v5, 0.0 }
 0x893   :  { %v2618_v15 = vadd.f32 %v2617_v57, %v2616_v21  ;;  %v2582_v21 = vmul.f32 %v6336_v3, %v6336_v3  ;;  %v2637_v19 = vsel %vm214_vm2, %v2581_v37, 0.0 }
 0x895   :  { %v2620_v10 = vadd.f32 %v2619_v0, %v2618_v15  ;;  %v2583_v15 = vmul.f32 %v6343_v33, %v6343_v33  ;;  %v2639_v8 = vsel %vm214_vm2, %v2582_v21, 0.0 }
 0x897   :  { %v2622_v44 = vadd.f32 %v2621_v29, %v2620_v10  ;;  %v2584_v10 = vmul.f32 %v6350_v63, %v6350_v63  ;;  %v2641_v14 = vsel %vm214_vm2, %v2583_v15, 0.0 }
 0x899   :  { %v2624_v45 = vadd.f32 %v2623_v49, %v2622_v44  ;;  %v2585_v44 = vmul.f32 %v6357_v23, %v6357_v23  ;;  %v2643_v31 = vsel %vm214_vm2, %v2584_v10, 0.0 }
 0x89b   :  { %v2626_v18 = vadd.f32 %v2625_v26, %v2624_v45  ;;  %v2586_v45 = vmul.f32 %v6364_v62, %v6364_v62  ;;  %v2587_v26 = vmul.f32 %v2555_v50, %v2555_v50 }
 0x89d   :  { %v2628_v1 = vadd.f32 %v2627_v24, %v2626_v18  ;;  %v2645_v18 = vsel %vm214_vm2, %v2585_v44, 0.0  ;;  %v2647_v24 = vsel %vm214_vm2, %v2586_v45, 0.0  ;;  %v2649_v52 = vsel %vm214_vm2, %v2587_v26, 0.0  ;;  %v6397_v44 = vld [vmem:[%s6855_s3 + $0xc] ss:$0 sm:$0xff] }
 0x89f   :  { %v2630_v47 = vadd.f32 %v2629_v53, %v2628_v1 }
 0x8a1   :  { %v2632_v55 = vadd.f32 %v2631_v61, %v2630_v47 }
 0x8a3   :  { %v2634_v20 = vadd.f32 %v2633_v46, %v2632_v55 }
 0x8a5   :  { %v2636_v57 = vadd.f32 %v2635_v59, %v2634_v20 }
 0x8a7   :  { %v2638_v0 = vadd.f32 %v2637_v19, %v2636_v57  ;;  %v2799_v19 = vld [vmem:[%s6853_s2 + $0x70] sm:$0xff] }
 0x8a9   :  { %v2640_v29 = vadd.f32 %v2639_v8, %v2638_v0  ;;  %v2800_v0 = vld [vmem:[%s6853_s2 + $0x78] sm:$0xff] }
 0x8aa   :  { %v2803_v10 = vpack.c.bf16 %v2800_v0, %v2799_v19 }
 0x8ab   :  { %v2642_v49 = vadd.f32 %v2641_v14, %v2640_v29 }
 0x8ac   :  { %2878 = vmatpush.bf16.msrb.mxu3 %v2803_v10 }
 0x8ad   :  { %v2644_v56 = vadd.f32 %v2643_v31, %v2642_v49 }
 0x8af   :  { %v2646_v32 = vadd.f32 %v2645_v18, %v2644_v56 }
 0x8b1   :  { %v2648_v1 = vadd.f32 %v2647_v24, %v2646_v32 }
 0x8b3   :  { %v2650_v28 = vadd.f32 %v2649_v52, %v2648_v1 }
 0x8b5   :  { %v2651_v41 = vrot.slane %v2650_v28, 4 }
 0x8b7   :  { %v2652_v53 = vadd.f32 %v2651_v41, %v2650_v28 }
 0x8b9   :  { %v2653_v47 = vrot.slane %v2652_v53, 2 }
 0x8bb   :  { %v2654_v5 = vadd.f32 %v2653_v47, %v2652_v53 }
 0x8bd   :  { %v2655_v61 = vrot.slane %v2654_v5, 1 }
 0x8bf   :  { %v2656_v55 = vadd.f32 %v2655_v61, %v2654_v5 }
 0x8c1   :  { %v2657_v37 = vmul.f32 %v2656_v55, %v3713_v43  ;;  %v6390_v43 = vld [vmem:[%s6855_s3 + $0xb] ss:$0 sm:$0xff] }
 0x8c3   :  { %v2658_v46 = vadd.f32 1e-05, %v2657_v37 }
 0x8c5   :  { %3344 = vrsqrt.f32 %v2658_v46  ;;  %vm2665_vm3 = vweird.f32 %v2658_v46 }
 0x8cb   :  { %v3345_v20 = vpop.eup %3344 }
 0x8cc   :  { %v2660_v21 = vmul.f32 %v3345_v20, %v2658_v46  ;;  %vm2666_vm1 = vweird.f32 %v3345_v20 }
 0x8cd   :  { %vm2667_vm4 = vmor %vm2665_vm3, %vm2666_vm1 }
 0x8ce   :  { %v2661_v59 = vmul.f32 %v3345_v20, %v2660_v21 }
 0x8d0   :  { %v2662_v57 = vmul.f32 0.5, %v2661_v59 }
 0x8d2   :  { %v2663_v15 = vsub.f32 1.5, %v2662_v57 }
 0x8d4   :  { %v2664_v8 = vmul.f32 %v3345_v20, %v2663_v15 }
 0x8d6   :  { %v6392_v29 = vsel %vm2667_vm4, %v3345_v20, %v2664_v8 }
 0x8d7   :  { %v2700_v14 = vmul.f32 %v6392_v29, %v2555_v50  ;;  %v2669_v31 = vmul.f32 %v6392_v29, %v6162_v12  ;;  %v2670_v56 = vmul.f32 %v6392_v29, %v6166_v27  ;;  %v2677_v26 = vmul.f32 %v6392_v29, %v6210_v16 }
 0x8d8   :  { %v2678_v18 = vmul.f32 %v6392_v29, %v6217_v6  ;;  %v2679_v50 = vmul.f32 %v6392_v29, %v6224_v60  ;;  %v2680_v32 = vmul.f32 %v6392_v29, %v6231_v17  ;;  %v2681_v24 = vmul.f32 %v6392_v29, %v6238_v11 }
 0x8d9   :  { %v2733_v49 = vmul.f32 %v6390_v43, %v2700_v14  ;;  %v2682_v12 = vmul.f32 %v6392_v29, %v6245_v25  ;;  %v2683_v27 = vmul.f32 %v6392_v29, %v6252_v7  ;;  %v2684_v16 = vmul.f32 %v6392_v29, %v6259_v30 }
 0x8da   :  { %v2685_v6 = vmul.f32 %v6392_v29, %v6266_v40  ;;  %v2686_v60 = vmul.f32 %v6392_v29, %v6273_v51  ;;  %v2687_v17 = vmul.f32 %v6392_v29, %v6280_v22  ;;  %v2688_v11 = vmul.f32 %v6392_v29, %v6287_v58 }
 0x8db   :  { %v6402_v45 = vadd.f32 %v6397_v44, %v2733_v49  ;;  %v2689_v25 = vmul.f32 %v6392_v29, %v6294_v54  ;;  %v2690_v7 = vmul.f32 %v6392_v29, %v6301_v39  ;;  %v2691_v30 = vmul.f32 %v6392_v29, %v6308_v34 }
 0x8dc   :  { %v2692_v40 = vmul.f32 %v6392_v29, %v6315_v38  ;;  %v2693_v51 = vmul.f32 %v6392_v29, %v6322_v4  ;;  %v2694_v22 = vmul.f32 %v6392_v29, %v6329_v42  ;;  %v2695_v58 = vmul.f32 %v6392_v29, %v6336_v3 }
 0x8dd   :  { %v2696_v54 = vmul.f32 %v6392_v29, %v6343_v33  ;;  %v2697_v39 = vmul.f32 %v6392_v29, %v6350_v63  ;;  %v2698_v34 = vmul.f32 %v6392_v29, %v6357_v23  ;;  %v2699_v38 = vmul.f32 %v6392_v29, %v6364_v62 }
 0x8de   :  { %v2702_v4 = vmul.f32 %v6390_v43, %v2669_v31  ;;  %v2710_v1 = vmul.f32 %v6390_v43, %v2677_v26  ;;  %v2711_v42 = vmul.f32 %v6390_v43, %v2678_v18  ;;  %v2712_v3 = vmul.f32 %v6390_v43, %v2679_v50 }
 0x8df   :  { %v2713_v52 = vmul.f32 %v6390_v43, %v2680_v32  ;;  %v2714_v33 = vmul.f32 %v6390_v43, %v2681_v24  ;;  %v2715_v63 = vmul.f32 %v6390_v43, %v2682_v12  ;;  %v2716_v28 = vmul.f32 %v6390_v43, %v2683_v27 }
 0x8e0   :  { %v2717_v23 = vmul.f32 %v6390_v43, %v2684_v16  ;;  %v2718_v62 = vmul.f32 %v6390_v43, %v2685_v6  ;;  %v2719_v41 = vmul.f32 %v6390_v43, %v2686_v60  ;;  %v2720_v53 = vmul.f32 %v6390_v43, %v2687_v17 }
 0x8e1   :  { %v2721_v47 = vmul.f32 %v6390_v43, %v2688_v11  ;;  %v2722_v5 = vmul.f32 %v6390_v43, %v2689_v25  ;;  %v2723_v61 = vmul.f32 %v6390_v43, %v2690_v7  ;;  %v2724_v55 = vmul.f32 %v6390_v43, %v2691_v30 }
 0x8e2   :  { %v2725_v37 = vmul.f32 %v6390_v43, %v2692_v40  ;;  %v2726_v46 = vmul.f32 %v6390_v43, %v2693_v51  ;;  %v2727_v20 = vmul.f32 %v6390_v43, %v2694_v22  ;;  %v2728_v21 = vmul.f32 %v6390_v43, %v2695_v58 }
 0x8e3   :  { %v2729_v59 = vmul.f32 %v6390_v43, %v2696_v54  ;;  %v2730_v57 = vmul.f32 %v6390_v43, %v2697_v39  ;;  %v2731_v15 = vmul.f32 %v6390_v43, %v2698_v34  ;;  %v2732_v19 = vmul.f32 %v6390_v43, %v2699_v38 }
 0x8e4   :  { %v2703_v0 = vmul.f32 %v6390_v43, %v2670_v56  ;;  %v2735_v10 = vadd.f32 %v6397_v44, %v2702_v4  ;;  %v2743_v8 = vadd.f32 %v6397_v44, %v2710_v1  ;;  %v2744_v14 = vadd.f32 %v6397_v44, %v2711_v42 }
 0x8e5   :  { %v2745_v49 = vadd.f32 %v6397_v44, %v2712_v3  ;;  %v2746_v31 = vadd.f32 %v6397_v44, %v2713_v52  ;;  %v2747_v26 = vadd.f32 %v6397_v44, %v2714_v33  ;;  %v2748_v18 = vadd.f32 %v6397_v44, %v2715_v63 }
 0x8e6   :  { %v2749_v50 = vadd.f32 %v6397_v44, %v2716_v28  ;;  %v2750_v32 = vadd.f32 %v6397_v44, %v2717_v23  ;;  %v2751_v56 = vadd.f32 %v6397_v44, %v2718_v62  ;;  %v2752_v24 = vadd.f32 %v6397_v44, %v2719_v41 }
 0x8e7   :  { %v2753_v12 = vadd.f32 %v6397_v44, %v2720_v53  ;;  %v2754_v27 = vadd.f32 %v6397_v44, %v2721_v47  ;;  %v2755_v16 = vadd.f32 %v6397_v44, %v2722_v5  ;;  %v2756_v6 = vadd.f32 %v6397_v44, %v2723_v61 }
 0x8e8   :  { %v2757_v60 = vadd.f32 %v6397_v44, %v2724_v55  ;;  %v2758_v17 = vadd.f32 %v6397_v44, %v2725_v37  ;;  %v2759_v11 = vadd.f32 %v6397_v44, %v2726_v46  ;;  %v2760_v25 = vadd.f32 %v6397_v44, %v2727_v20 }
 0x8e9   :  { %v2761_v7 = vadd.f32 %v6397_v44, %v2728_v21  ;;  %v2762_v30 = vadd.f32 %v6397_v44, %v2729_v59  ;;  %v2763_v40 = vadd.f32 %v6397_v44, %v2730_v57  ;;  %v2764_v51 = vadd.f32 %v6397_v44, %v2731_v15 }
 0x8ea   :  { %v2765_v22 = vadd.f32 %v6397_v44, %v2732_v19  ;;  %v2798_v58 = vmax.f32 %v6402_v45, 0.0  ;;  %v2671_v54 = vmul.f32 %v6392_v29, %v6170_v9  ;;  %v2672_v39 = vmul.f32 %v6392_v29, %v6174_v13 }
 0x8eb   :  { %v2736_v34 = vadd.f32 %v6397_v44, %v2703_v0  ;;  %v2767_v38 = vmax.f32 %v2735_v10, 0.0  ;;  %v2775_v4 = vmax.f32 %v2743_v8, 0.0  ;;  %v2776_v1 = vmax.f32 %v2744_v14, 0.0 }
 0x8ec   :  { %v2777_v42 = vmax.f32 %v2745_v49, 0.0  ;;  %v2778_v3 = vmax.f32 %v2746_v31, 0.0  ;;  %v2779_v52 = vmax.f32 %v2747_v26, 0.0  ;;  %v2780_v33 = vmax.f32 %v2748_v18, 0.0 }
 0x8ed   :  { %v2781_v63 = vmax.f32 %v2749_v50, 0.0  ;;  %v2782_v28 = vmax.f32 %v2750_v32, 0.0  ;;  %v2783_v23 = vmax.f32 %v2751_v56, 0.0  ;;  %v2784_v62 = vmax.f32 %v2752_v24, 0.0 }
 0x8ee   :  { %v2785_v45 = vmax.f32 %v2753_v12, 0.0  ;;  %v2786_v41 = vmax.f32 %v2754_v27, 0.0  ;;  %v2787_v53 = vmax.f32 %v2755_v16, 0.0  ;;  %v2788_v9 = vmax.f32 %v2756_v6, 0.0 }
 0x8ef   :  { %v2789_v47 = vmax.f32 %v2757_v60, 0.0  ;;  %v2790_v5 = vmax.f32 %v2758_v17, 0.0  ;;  %v2791_v13 = vmax.f32 %v2759_v11, 0.0  ;;  %v2792_v61 = vmax.f32 %v2760_v25, 0.0 }
 0x8f0   :  { %v2768_v55 = vmax.f32 %v2736_v34, 0.0  ;;  %v2793_v37 = vmax.f32 %v2761_v7, 0.0  ;;  %v2794_v46 = vmax.f32 %v2762_v30, 0.0  ;;  %v2795_v20 = vmax.f32 %v2763_v40, 0.0 }
 0x8f1   :  { %v2796_v21 = vmax.f32 %v2764_v51, 0.0  ;;  %v2797_v59 = vmax.f32 %v2765_v22, 0.0  ;;  %v2809_v15 = vpack.c.bf16 %v2776_v1, %v2775_v4  ;;  %v2810_v19 = vpack.c.bf16 %v2778_v3, %v2777_v42 }
 0x8f2   :  { %v2805_v57 = vpack.c.bf16 %v2768_v55, %v2767_v38  ;;  %v2811_v0 = vpack.c.bf16 %v2780_v33, %v2779_v52  ;;  %v2812_v10 = vpack.c.bf16 %v2782_v28, %v2781_v63  ;;  %v2813_v8 = vpack.c.bf16 %v2784_v62, %v2783_v23  ;;  %v3027_v52 = vpop.permute.xlu2 %3026  ;;  %v3029_v28 = vpop.permute.xlu0 %3028 }
 0x8f3   :  { %v2814_v14 = vpack.c.bf16 %v2786_v41, %v2785_v45  ;;  %v2704_v49 = vmul.f32 %v6390_v43, %v2671_v54  ;;  %v2705_v31 = vmul.f32 %v6390_v43, %v2672_v39  ;;  %v2815_v26 = vpack.c.bf16 %v2788_v9, %v2787_v53 }
 0x8f4   :  { %3237 = vmatmul.msk.bf16.vlgmr.msrb.gmra.mxu3 %vm214_vm2, %v2805_v57  ;;  %v6512_v18 = vpack.c.bf16 %v2790_v5, %v2789_v47  ;;  %v6514_v50 = vpack.c.bf16 %v2792_v61, %v2791_v13  ;;  %v6516_v32 = vpack.c.bf16 %v2794_v46, %v2793_v37  ;;  %v6518_v56 = vpack.c.bf16 %v2796_v21, %v2795_v20 }
 0x8f5   :  { %v6520_v24 = vpack.c.bf16 %v2798_v58, %v2797_v59  ;;  %v2737_v12 = vadd.f32 %v6397_v44, %v2704_v49  ;;  %v2738_v27 = vadd.f32 %v6397_v44, %v2705_v31  ;;  %v2673_v60 = vmul.f32 %v6392_v29, %v6182_v36 }
 0x8f6   :  { %v2674_v17 = vmul.f32 %v6392_v29, %v6188_v35  ;;  %v2675_v58 = vmul.f32 %v6392_v29, %v6196_v2  ;;  %v2676_v36 = vmul.f32 %v6392_v29, %v6203_v48  ;;  %v6551_v2 = vld [vmem:[%s6855_s3 + $0xd] ss:$0 sm:$0xff]  ;;  %v3025_v29 = vpop.permute.xlu1 %3024 }
 0x8f7   :  { %v2769_v16 = vmax.f32 %v2737_v12, 0.0  ;;  %v2770_v6 = vmax.f32 %v2738_v27, 0.0  ;;  %v2706_v25 = vmul.f32 %v6390_v43, %v2673_v60 }
 0x8f8   :  { %v2707_v7 = vmul.f32 %v6390_v43, %v2674_v17  ;;  %v2708_v54 = vmul.f32 %v6390_v43, %v2675_v58  ;;  %v2709_v39 = vmul.f32 %v6390_v43, %v2676_v36 }
 0x8f9   :  { %v2806_v11 = vpack.c.bf16 %v2770_v6, %v2769_v16  ;;  %v2739_v30 = vadd.f32 %v6397_v44, %v2706_v25 }
 0x8fa   :  { %v2740_v40 = vadd.f32 %v6397_v44, %v2707_v7  ;;  %v2741_v34 = vadd.f32 %v6397_v44, %v2708_v54  ;;  %v2742_v38 = vadd.f32 %v6397_v44, %v2709_v39  ;;  %v3033_v9 = vpop.permute.xlu2 %3032  ;;  %v3035_v13 = vpop.permute.xlu0 %3034 }
 0x8fb   :  { %v2771_v51 = vmax.f32 %v2739_v30, 0.0 }
 0x8fc   :  { %v2772_v22 = vmax.f32 %v2740_v40, 0.0  ;;  %v2773_v4 = vmax.f32 %v2741_v34, 0.0  ;;  %v2774_v1 = vmax.f32 %v2742_v38, 0.0 }
 0x8fe   :  { %v2807_v35 = vpack.c.bf16 %v2772_v22, %v2771_v51  ;;  %v2808_v42 = vpack.c.bf16 %v2774_v1, %v2773_v4  ;;  %v3031_v45 = vpop.permute.xlu1 %3030 }
 0x902   :  { %v3039_v21 = vpop.permute.xlu2 %3038 }
 0x904   :  { %3238 = vmatmul.msk.bf16.gmra.mxu3 %vm214_vm2, %v2806_v11 }
 0x906   :  { %v3037_v37 = vpop.permute.xlu1 %3036 }
 0x90a   :  { %v3045_v49 = vpop.permute.xlu2 %3044 }
 0x912   :  { %v3051_v6 = vpop.permute.xlu2 %3050 }
 0x914   :  { %3239 = vmatmul.msk.bf16.gmra.mxu3 %vm214_vm2, %v2807_v35 }
 0x91a   :  { %v3057_v40 = vpop.permute.xlu2 %3056 }
 0x922   :  { %v3063_v38 = vpop.permute.xlu2 %3062 }
 0x924   :  { %3240 = vmatmul.msk.bf16.gmra.mxu3 %vm214_vm2, %v2808_v42 }
 0x934   :  { %3241 = vmatmul.msk.bf16.gmra.mxu3 %vm214_vm2, %v2809_v15  ;;  %v3041_v15 = vpop.permute.xlu0 %3040 }
 0x944   :  { %3242 = vmatmul.msk.bf16.gmra.mxu3 %vm214_vm2, %v2810_v19 }
 0x954   :  { %3243 = vmatmul.msk.bf16.gmra.mxu3 %vm214_vm2, %v2811_v0 }
 0x964   :  { %3244 = vmatmul.msk.bf16.gmra.mxu3 %vm214_vm2, %v2812_v10  ;;  %v3043_v10 = vpop.permute.xlu1 %3042 }
 0x96c   :  { %v3049_v12 = vpop.permute.xlu1 %3048 }
 0x974   :  { %3245 = vmatmul.msk.bf16.gmra.mxu3 %vm214_vm2, %v2813_v8  ;;  %v3055_v7 = vpop.permute.xlu1 %3054 }
 0x977   :  { %v2880_v48 = vpop.f32.mrf.mxu3 }
 0x978   :  { %v2881_v43 = vadd.f32 %v6551_v2, %v2880_v48 }
 0x97a   :  { %2960 = vst.msk [vmem:[%s6857_s4] sm:$0xff] %vm1802_vm13, %v2881_v43 }
 0x97b   :  { %3121 = vst.msk [vmem:[%s6857_s4] sm:$0xff] %vm3120_vm5, %v3025_v29 }
 0x97c   :  { %v3061_v54 = vpop.permute.xlu1 %3060 }
 0x97f   :  { %v2882_v44 = vpop.f32.mrf.mxu3 }
 0x980   :  { %v2883_v3 = vadd.f32 %v6551_v2, %v2882_v44 }
 0x982   :  { %2961 = vst.msk [vmem:[%s6857_s4 + $0x8] sm:$0xff] %vm1802_vm13, %v2883_v3 }
 0x983   :  { %3122 = vst.msk [vmem:[%s6857_s4 + $0x8] sm:$0xff] %vm3120_vm5, %v3027_v52  ;;  %v3069_v52 = vpop.permute.xlu2 %3068 }
 0x984   :  { %3246 = vmatmul.msk.bf16.gmra.mxu3 %vm214_vm2, %v2814_v14  ;;  %v3067_v29 = vpop.permute.xlu1 %3066 }
 0x987   :  { %v2885_v33 = vpop.f32.mrf.mxu3 }
 0x988   :  { %v2886_v63 = vadd.f32 %v6551_v2, %v2885_v33 }
 0x98a   :  { %2962 = vst.msk [vmem:[%s6857_s4 + $0x10] sm:$0xff] %vm1802_vm13, %v2886_v63 }
 0x98b   :  { %3123 = vst.msk [vmem:[%s6857_s4 + $0x10] sm:$0xff] %vm3120_vm5, %v3029_v28 }
 0x98f   :  { %v2887_v23 = vpop.f32.mrf.mxu3 }
 0x990   :  { %v2888_v62 = vadd.f32 %v6551_v2, %v2887_v23 }
 0x992   :  { %2963 = vst.msk [vmem:[%s6857_s4 + $0x18] sm:$0xff] %vm1802_vm13, %v2888_v62 }
 0x993   :  { %3124 = vst.msk [vmem:[%s6857_s4 + $0x18] sm:$0xff] %vm3120_vm5, %v3031_v45  ;;  %v3073_v45 = vpop.permute.xlu1 %3072 }
 0x994   :  { %3247 = vmatmul.msk.bf16.gmra.mxu3 %vm214_vm2, %v2815_v26 }
 0x997   :  { %v2890_v41 = vpop.f32.mrf.mxu3 }
 0x998   :  { %v2891_v53 = vadd.f32 %v6551_v2, %v2890_v41 }
 0x99a   :  { %2964 = vst.msk [vmem:[%s6857_s4 + $0x20] sm:$0xff] %vm1802_vm13, %v2891_v53 }
 0x99b   :  { %3125 = vst.msk [vmem:[%s6857_s4 + $0x20] sm:$0xff] %vm3120_vm5, %v3033_v9  ;;  %v3075_v9 = vpop.permute.xlu2 %3074 }
 0x99f   :  { %v2892_v47 = vpop.f32.mrf.mxu3 }
 0x9a0   :  { %v2893_v5 = vadd.f32 %v6551_v2, %v2892_v47 }
 0x9a2   :  { %2965 = vst.msk [vmem:[%s6857_s4 + $0x28] sm:$0xff] %vm1802_vm13, %v2893_v5 }
 0x9a3   :  { %3126 = vst.msk [vmem:[%s6857_s4 + $0x28] sm:$0xff] %vm3120_vm5, %v3035_v13 }
 0x9a4   :  { %3248 = vmatmul.msk.bf16.gmra.mxu3 %vm214_vm2, %v6512_v18  ;;  %v3047_v18 = vpop.permute.xlu0 %3046 }
 0x9a7   :  { %v2895_v61 = vpop.f32.mrf.mxu3 }
 0x9a8   :  { %v2896_v55 = vadd.f32 %v6551_v2, %v2895_v61 }
 0x9aa   :  { %2966 = vst.msk [vmem:[%s6857_s4 + $0x30] sm:$0xff] %vm1802_vm13, %v2896_v55 }
 0x9ab   :  { %3127 = vst.msk [vmem:[%s6857_s4 + $0x30] sm:$0xff] %vm3120_vm5, %v3037_v37  ;;  %v3079_v37 = vpop.permute.xlu1 %3078 }
 0x9ac   :  { %v3053_v17 = vpop.permute.xlu0 %3052 }
 0x9af   :  { %v2897_v46 = vpop.f32.mrf.mxu3 }
 0x9b0   :  { %v2898_v20 = vadd.f32 %v6551_v2, %v2897_v46 }
 0x9b2   :  { %2967 = vst.msk [vmem:[%s6857_s4 + $0x38] sm:$0xff] %vm1802_vm13, %v2898_v20 }
 0x9b3   :  { %3128 = vst.msk [vmem:[%s6857_s4 + $0x38] sm:$0xff] %vm3120_vm5, %v3039_v21  ;;  %v3081_v21 = vpop.permute.xlu2 %3080 }
 0x9b4   :  { %3249 = vmatmul.msk.bf16.gmra.mxu3 %vm214_vm2, %v6514_v50  ;;  %v3059_v58 = vpop.permute.xlu0 %3058 }
 0x9b7   :  { %v2900_v59 = vpop.f32.mrf.mxu3 }
 0x9b8   :  { %v2901_v57 = vadd.f32 %v6551_v2, %v2900_v59 }
 0x9ba   :  { %2968 = vst.msk [vmem:[%s6857_s4 + $0x40] sm:$0xff] %vm1802_vm13, %v2901_v57 }
 0x9bb   :  { %3129 = vst.msk [vmem:[%s6857_s4 + $0x40] sm:$0xff] %vm3120_vm5, %v3041_v15 }
 0x9bc   :  { %v3065_v42 = vpop.permute.xlu0 %3064 }
 0x9bf   :  { %v2902_v19 = vpop.f32.mrf.mxu3 }
 0x9c0   :  { %v2903_v0 = vadd.f32 %v6551_v2, %v2902_v19 }
 0x9c2   :  { %2969 = vst.msk [vmem:[%s6857_s4 + $0x48] sm:$0xff] %vm1802_vm13, %v2903_v0 }
 0x9c3   :  { %3130 = vst.msk [vmem:[%s6857_s4 + $0x48] sm:$0xff] %vm3120_vm5, %v3043_v10  ;;  %v3085_v10 = vpop.permute.xlu1 %3084 }
 0x9c4   :  { %3250 = vmatmul.msk.bf16.gmra.mxu3 %vm214_vm2, %v6516_v32  ;;  %v3071_v28 = vpop.permute.xlu0 %3070 }
 0x9c7   :  { %v2905_v8 = vpop.f32.mrf.mxu3 }
 0x9c8   :  { %v2906_v14 = vadd.f32 %v6551_v2, %v2905_v8 }
 0x9ca   :  { %2970 = vst.msk [vmem:[%s6857_s4 + $0x50] sm:$0xff] %vm1802_vm13, %v2906_v14 }
 0x9cb   :  { %3131 = vst.msk [vmem:[%s6857_s4 + $0x50] sm:$0xff] %vm3120_vm5, %v3045_v49  ;;  %v3087_v49 = vpop.permute.xlu2 %3086 }
 0x9cc   :  { %v3077_v13 = vpop.permute.xlu0 %3076 }
 0x9cf   :  { %v2907_v31 = vpop.f32.mrf.mxu3 }
 0x9d0   :  { %v2908_v26 = vadd.f32 %v6551_v2, %v2907_v31 }
 0x9d2   :  { %2971 = vst.msk [vmem:[%s6857_s4 + $0x58] sm:$0xff] %vm1802_vm13, %v2908_v26 }
 0x9d3   :  { %3132 = vst.msk [vmem:[%s6857_s4 + $0x58] sm:$0xff] %vm3120_vm5, %v3047_v18 }
 0x9d4   :  { %3251 = vmatmul.msk.bf16.gmra.mxu3 %vm214_vm2, %v6518_v56  ;;  %v3083_v15 = vpop.permute.xlu0 %3082 }
 0x9d7   :  { %v2910_v50 = vpop.f32.mrf.mxu3 }
 0x9d8   :  { %v2911_v32 = vadd.f32 %v6551_v2, %v2910_v50 }
 0x9da   :  { %2972 = vst.msk [vmem:[%s6857_s4 + $0x60] sm:$0xff] %vm1802_vm13, %v2911_v32 }
 0x9db   :  { %3133 = vst.msk [vmem:[%s6857_s4 + $0x60] sm:$0xff] %vm3120_vm5, %v3049_v12 }
 0x9df   :  { %v2912_v27 = vpop.f32.mrf.mxu3 }
 0x9e0   :  { %v2913_v16 = vadd.f32 %v6551_v2, %v2912_v27 }
 0x9e2   :  { %2973 = vst.msk [vmem:[%s6857_s4 + $0x68] sm:$0xff] %vm1802_vm13, %v2913_v16 }
 0x9e3   :  { %3134 = vst.msk [vmem:[%s6857_s4 + $0x68] sm:$0xff] %vm3120_vm5, %v3051_v6 }
 0x9e4   :  { %3252 = vmatmul.msk.bf16.gmra.mxu3 %vm214_vm2, %v6520_v24 }
 0x9e7   :  { %v2915_v56 = vpop.f32.mrf.mxu3 }
 0x9e8   :  { %v2916_v60 = vadd.f32 %v6551_v2, %v2915_v56 }
 0x9ea   :  { %2974 = vst.msk [vmem:[%s6857_s4 + $0x70] sm:$0xff] %vm1802_vm13, %v2916_v60 }
 0x9eb   :  { %3135 = vst.msk [vmem:[%s6857_s4 + $0x70] sm:$0xff] %vm3120_vm5, %v3053_v17 }
 0x9ef   :  { %v2917_v11 = vpop.f32.mrf.mxu3 }
 0x9f0   :  { %v2918_v25 = vadd.f32 %v6551_v2, %v2917_v11 }
 0x9f2   :  { %2975 = vst.msk [vmem:[%s6857_s4 + $0x78] sm:$0xff] %vm1802_vm13, %v2918_v25 }
 0x9f3   :  { %3136 = vst.msk [vmem:[%s6857_s4 + $0x78] sm:$0xff] %vm3120_vm5, %v3055_v7 }
 0x9f7   :  { %v2920_v24 = vpop.f32.mrf.mxu3 }
 0x9f8   :  { %v2921_v30 = vadd.f32 %v6551_v2, %v2920_v24 }
 0x9fa   :  { %2976 = vst.msk [vmem:[%s6857_s4 + $0x80] sm:$0xff] %vm1802_vm13, %v2921_v30 }
 0x9fb   :  { %3137 = vst.msk [vmem:[%s6857_s4 + $0x80] sm:$0xff] %vm3120_vm5, %v3057_v40 }
 0x9ff   :  { %v2922_v51 = vpop.f32.mrf.mxu3 }
 0xa00   :  { %v2923_v22 = vadd.f32 %v6551_v2, %v2922_v51 }
 0xa02   :  { %2977 = vst.msk [vmem:[%s6857_s4 + $0x88] sm:$0xff] %vm1802_vm13, %v2923_v22 }
 0xa03   :  { %3138 = vst.msk [vmem:[%s6857_s4 + $0x88] sm:$0xff] %vm3120_vm5, %v3059_v58 }
 0xa07   :  { %v2925_v36 = vpop.f32.mrf.mxu3 }
 0xa08   :  { %v2926_v35 = vadd.f32 %v6551_v2, %v2925_v36 }
 0xa0a   :  { %2978 = vst.msk [vmem:[%s6857_s4 + $0x90] sm:$0xff] %vm1802_vm13, %v2926_v35 }
 0xa0b   :  { %3139 = vst.msk [vmem:[%s6857_s4 + $0x90] sm:$0xff] %vm3120_vm5, %v3061_v54 }
 0xa0f   :  { %v2927_v39 = vpop.f32.mrf.mxu3 }
 0xa10   :  { %v2928_v34 = vadd.f32 %v6551_v2, %v2927_v39 }
 0xa12   :  { %2979 = vst.msk [vmem:[%s6857_s4 + $0x98] sm:$0xff] %vm1802_vm13, %v2928_v34 }
 0xa13   :  { %3140 = vst.msk [vmem:[%s6857_s4 + $0x98] sm:$0xff] %vm3120_vm5, %v3063_v38 }
 0xa17   :  { %v2930_v4 = vpop.f32.mrf.mxu3 }
 0xa18   :  { %v2931_v1 = vadd.f32 %v6551_v2, %v2930_v4 }
 0xa1a   :  { %2980 = vst.msk [vmem:[%s6857_s4 + $0xa0] sm:$0xff] %vm1802_vm13, %v2931_v1 }
 0xa1b   :  { %3141 = vst.msk [vmem:[%s6857_s4 + $0xa0] sm:$0xff] %vm3120_vm5, %v3065_v42 }
 0xa1f   :  { %v2932_v48 = vpop.f32.mrf.mxu3 }
 0xa20   :  { %v2933_v43 = vadd.f32 %v6551_v2, %v2932_v48 }
 0xa22   :  { %2981 = vst.msk [vmem:[%s6857_s4 + $0xa8] sm:$0xff] %vm1802_vm13, %v2933_v43 }
 0xa23   :  { %3142 = vst.msk [vmem:[%s6857_s4 + $0xa8] sm:$0xff] %vm3120_vm5, %v3067_v29 }
 0xa27   :  { %v2935_v44 = vpop.f32.mrf.mxu3 }
 0xa28   :  { %v2936_v3 = vadd.f32 %v6551_v2, %v2935_v44 }
 0xa2a   :  { %2982 = vst.msk [vmem:[%s6857_s4 + $0xb0] sm:$0xff] %vm1802_vm13, %v2936_v3 }
 0xa2b   :  { %3143 = vst.msk [vmem:[%s6857_s4 + $0xb0] sm:$0xff] %vm3120_vm5, %v3069_v52 }
 0xa2f   :  { %v2937_v33 = vpop.f32.mrf.mxu3 }
 0xa30   :  { %v2938_v63 = vadd.f32 %v6551_v2, %v2937_v33 }
 0xa32   :  { %2983 = vst.msk [vmem:[%s6857_s4 + $0xb8] sm:$0xff] %vm1802_vm13, %v2938_v63 }
 0xa33   :  { %3144 = vst.msk [vmem:[%s6857_s4 + $0xb8] sm:$0xff] %vm3120_vm5, %v3071_v28 }
 0xa37   :  { %v2940_v23 = vpop.f32.mrf.mxu3 }
 0xa38   :  { %v2941_v62 = vadd.f32 %v6551_v2, %v2940_v23 }
 0xa3a   :  { %2984 = vst.msk [vmem:[%s6857_s4 + $0xc0] sm:$0xff] %vm1802_vm13, %v2941_v62 }
 0xa3b   :  { %3145 = vst.msk [vmem:[%s6857_s4 + $0xc0] sm:$0xff] %vm3120_vm5, %v3073_v45 }
 0xa3f   :  { %v2942_v41 = vpop.f32.mrf.mxu3 }
 0xa40   :  { %v2943_v53 = vadd.f32 %v6551_v2, %v2942_v41 }
 0xa42   :  { %2985 = vst.msk [vmem:[%s6857_s4 + $0xc8] sm:$0xff] %vm1802_vm13, %v2943_v53 }
 0xa43   :  { %3146 = vst.msk [vmem:[%s6857_s4 + $0xc8] sm:$0xff] %vm3120_vm5, %v3075_v9 }
 0xa47   :  { %v2945_v47 = vpop.f32.mrf.mxu3 }
 0xa48   :  { %v2946_v5 = vadd.f32 %v6551_v2, %v2945_v47 }
 0xa4a   :  { %2986 = vst.msk [vmem:[%s6857_s4 + $0xd0] sm:$0xff] %vm1802_vm13, %v2946_v5 }
 0xa4b   :  { %3147 = vst.msk [vmem:[%s6857_s4 + $0xd0] sm:$0xff] %vm3120_vm5, %v3077_v13 }
 0xa4f   :  { %v2947_v61 = vpop.f32.mrf.mxu3 }
 0xa50   :  { %v2948_v55 = vadd.f32 %v6551_v2, %v2947_v61 }
 0xa52   :  { %2987 = vst.msk [vmem:[%s6857_s4 + $0xd8] sm:$0xff] %vm1802_vm13, %v2948_v55 }
 0xa53   :  { %3148 = vst.msk [vmem:[%s6857_s4 + $0xd8] sm:$0xff] %vm3120_vm5, %v3079_v37 }
 0xa57   :  { %v2950_v46 = vpop.f32.mrf.mxu3 }
 0xa58   :  { %v2951_v20 = vadd.f32 %v6551_v2, %v2950_v46 }
 0xa5a   :  { %2988 = vst.msk [vmem:[%s6857_s4 + $0xe0] sm:$0xff] %vm1802_vm13, %v2951_v20 }
 0xa5b   :  { %3149 = vst.msk [vmem:[%s6857_s4 + $0xe0] sm:$0xff] %vm3120_vm5, %v3081_v21 }
 0xa5f   :  { %v2952_v59 = vpop.f32.mrf.mxu3 }
 0xa60   :  { %v2953_v57 = vadd.f32 %v6551_v2, %v2952_v59 }
 0xa62   :  { %2989 = vst.msk [vmem:[%s6857_s4 + $0xe8] sm:$0xff] %vm1802_vm13, %v2953_v57 }
 0xa63   :  { %3150 = vst.msk [vmem:[%s6857_s4 + $0xe8] sm:$0xff] %vm3120_vm5, %v3083_v15 }
 0xa67   :  { %v2955_v19 = vpop.f32.mrf.mxu3 }
 0xa68   :  { %v2956_v0 = vadd.f32 %v6551_v2, %v2955_v19 }
 0xa6a   :  { %2990 = vst.msk [vmem:[%s6857_s4 + $0xf0] sm:$0xff] %vm1802_vm13, %v2956_v0 }
 0xa6b   :  { %3151 = vst.msk [vmem:[%s6857_s4 + $0xf0] sm:$0xff] %vm3120_vm5, %v3085_v10 }
 0xa6f   :  { %v2957_v8 = vpop.f32.mrf.mxu3 }
 0xa70   :  { %v2958_v14 = vadd.f32 %v6551_v2, %v2957_v8 }
 0xa72   :  { %2991 = vst.msk [vmem:[%s6857_s4 + $0xf8] sm:$0xff] %vm1802_vm13, %v2958_v14 }
 0xa73   :  { %3152 = vst.msk [vmem:[%s6857_s4 + $0xf8] sm:$0xff] %vm3120_vm5, %v3087_v49 }

</bundles_post_ra>
